<compile_context>
chip_gen: v6e
topology: v6e:2x2x1
jax: 0.10.0
libtpu: 0.0.40
codegen_flags: <defaults>
</compile_context>

<pallas_src>
import functools

import jax
import jax.numpy as jnp
from jax.experimental import pallas as pl
from jax.experimental.pallas import tpu as pltpu


def _round_up(x, m):
    return ((x + m - 1) // m) * m


# ---------------------------------------------------------------------------
# Kernel
# ---------------------------------------------------------------------------
def gru_model_kernel(x_ref,
                     w_ih0_ref, w_hh0_ref, bx0_ref, bhn0_ref,
                     w_ih1_ref, w_hh1_ref, bx1_ref, bhn1_ref,
                     w_fc_ref, b_fc_ref,
                     out_ref,
                     *, seq_len, batch_pad, hidden_pad):
    """Single invocation (no grid). All operands are full-array VMEM refs.

    x_ref:      (T*Bp, D)     time-major, batch padded to Bp sublanes
    w_ih*_ref:  (K, 3*Hg)     per-gate lane-padded, gate order [r, z, n]
    w_hh*_ref:  (Hg, 3*Hg)
    bx*_ref:    (1, 3*Hg)     b_ih with b_hh's r/z parts pre-folded in
    bhn*_ref:   (1, Hg)       hidden bias of the n gate (kept separate)
    w_fc_ref:   (Hg, Op), b_fc_ref: (1, Op)
    out_ref:    (Bp, Op)
    """
    T, Bp, Hg = seq_len, batch_pad, hidden_pad

    def gru_step(gx_t, h, w_hh, b_hn):
        # gx_t already contains b_ih (+ b_hh for r/z gates).
        gh = jnp.dot(h, w_hh, preferred_element_type=jnp.float32)
        r = jax.nn.sigmoid(gx_t[:, 0:Hg] + gh[:, 0:Hg])
        z = jax.nn.sigmoid(gx_t[:, Hg:2 * Hg] + gh[:, Hg:2 * Hg])
        n = jnp.tanh(gx_t[:, 2 * Hg:3 * Hg] + r * (gh[:, 2 * Hg:3 * Hg] + b_hn))
        return (1.0 - z) * n + z * h

    # ---- Layer 0: batched input-hidden matmul, hoisted out of the recurrence.
    gx0 = jnp.dot(x_ref[...], w_ih0_ref[...],
                  preferred_element_type=jnp.float32) + bx0_ref[...]
    w_hh0 = w_hh0_ref[...]
    bhn0 = bhn0_ref[...]
    h1 = jnp.zeros((Bp, Hg), jnp.float32)
    h1_steps = []
    for t in range(T):   # small static T: fully unrolled, h1 stays in vregs
        h1 = gru_step(gx0[t * Bp:(t + 1) * Bp, :], h1, w_hh0, bhn0)
        h1_steps.append(h1)

    # ---- Inter-layer dropout: identity at inference.
    # ---- Layer 1: batched input-hidden matmul over the whole h1 sequence.
    h1_all = jnp.concatenate(h1_steps, axis=0)          # (T*Bp, Hg)
    gx1 = jnp.dot(h1_all, w_ih1_ref[...],
                  preferred_element_type=jnp.float32) + bx1_ref[...]
    w_hh1 = w_hh1_ref[...]
    bhn1 = bhn1_ref[...]
    h2 = jnp.zeros((Bp, Hg), jnp.float32)
    for t in range(T):
        h2 = gru_step(gx1[t * Bp:(t + 1) * Bp, :], h2, w_hh1, bhn1)

    # ---- Dropout (identity, eval) -> FC -> Sigmoid (output lane-padded).
    logits = jnp.dot(h2, w_fc_ref[...],
                     preferred_element_type=jnp.float32) + b_fc_ref[...]
    out_ref[...] = jax.nn.sigmoid(logits)


# ---------------------------------------------------------------------------
# Wrapper: padding / bias folding + pallas_call
# ---------------------------------------------------------------------------
def _pad_gate_cols(w, H, Hg):
    """(K, 3H) -> (K, 3Hg): each gate's H columns start at a 128-lane boundary."""
    K = w.shape[0]
    out = jnp.zeros((K, 3 * Hg), w.dtype)
    for g in range(3):
        out = out.at[:, g * Hg:g * Hg + H].set(w[:, g * H:(g + 1) * H])
    return out


def _pad_rows(w, rows):
    return jnp.pad(w, ((0, rows - w.shape[0]), (0, 0)))


def _fold_biases(b_ih, b_hh, H, Hg):
    """Fold b_hh's r/z parts into the batched gx bias; keep b_hn separate."""
    b_comb = jnp.concatenate(
        [b_ih[:, 0:H] + b_hh[:, 0:H],
         b_ih[:, H:2 * H] + b_hh[:, H:2 * H],
         b_ih[:, 2 * H:3 * H]], axis=1)                  # (1, 3H)
    bx = _pad_gate_cols(b_comb, H, Hg)                   # (1, 3Hg)
    bhn = jnp.zeros((1, Hg), b_hh.dtype).at[:, :H].set(b_hh[:, 2 * H:3 * H])
    return bx, bhn


def gru_model_forward(x_btd, params):
    """x_btd: (B, T, D) float32, like the PyTorch module's batch_first input."""
    B, T, D = x_btd.shape
    H = params["w_hh0_t"].shape[0]
    O = params["w_fc_t"].shape[1]

    Bp = _round_up(B, 8)      # sublane-align the batch
    Hg = _round_up(H, 128)    # lane-align each gate
    Op = _round_up(O, 128)    # lane-dense output store

    # time-major, batch-padded, flattened to (T*Bp, D) rows.
    x_tbd = jnp.transpose(x_btd, (1, 0, 2))
    x_pad = jnp.zeros((T, Bp, D), x_btd.dtype).at[:, :B, :].set(x_tbd)
    x_flat = x_pad.reshape(T * Bp, D)

    # Per-gate lane-padded weights + folded biases.
    w_ih0 = _pad_gate_cols(params["w_ih0_t"], H, Hg)                    # (D, 3Hg)
    w_hh0 = _pad_gate_cols(_pad_rows(params["w_hh0_t"], Hg), H, Hg)     # (Hg, 3Hg)
    bx0, bhn0 = _fold_biases(params["b_ih0"], params["b_hh0"], H, Hg)
    w_ih1 = _pad_gate_cols(_pad_rows(params["w_ih1_t"], Hg), H, Hg)     # (Hg, 3Hg)
    w_hh1 = _pad_gate_cols(_pad_rows(params["w_hh1_t"], Hg), H, Hg)     # (Hg, 3Hg)
    bx1, bhn1 = _fold_biases(params["b_ih1"], params["b_hh1"], H, Hg)
    w_fc = jnp.zeros((Hg, Op), jnp.float32).at[:H, :O].set(params["w_fc_t"])
    b_fc = jnp.zeros((1, Op), jnp.float32).at[:, :O].set(params["b_fc"])

    kernel = functools.partial(gru_model_kernel,
                               seq_len=T, batch_pad=Bp, hidden_pad=Hg)

    vmem_spec = lambda: pl.BlockSpec(memory_space=pltpu.MemorySpace.VMEM)

    out_p = pl.pallas_call(
        kernel,
        out_shape=jax.ShapeDtypeStruct((Bp, Op), jnp.float32),
        in_specs=[vmem_spec() for _ in range(11)],
        out_specs=vmem_spec(),
    )(x_flat,
      w_ih0, w_hh0, bx0, bhn0,
      w_ih1, w_hh1, bx1, bhn1,
      w_fc, b_fc)

    return out_p[:B, :O]


# ---------------------------------------------------------------------------
# Params + pure-JAX reference
# ---------------------------------------------------------------------------
def init_params(key, input_dim, hidden_dim, output_dim):
    """Deterministic PyTorch-style uniform(-1/sqrt(H), 1/sqrt(H)) init."""
    k = 1.0 / jnp.sqrt(jnp.float32(hidden_dim))
    keys = jax.random.split(key, 11)
    u = lambda kk, shape: jax.random.uniform(
        kk, shape, dtype=jnp.float32, minval=-k, maxval=k)
    H, D, O = hidden_dim, input_dim, output_dim
    return {
        # layer 0 (input size D); stored transposed: (K, 3H), gate order r,z,n
        "w_ih0_t": u(keys[0], (D, 3 * H)),
        "w_hh0_t": u(keys[1], (H, 3 * H)),
        "b_ih0":   u(keys[2], (1, 3 * H)),
        "b_hh0":   u(keys[3], (1, 3 * H)),
        # layer 1 (input size H)
        "w_ih1_t": u(keys[4], (H, 3 * H)),
        "w_hh1_t": u(keys[5], (H, 3 * H)),
        "b_ih1":   u(keys[6], (1, 3 * H)),
        "b_hh1":   u(keys[7], (1, 3 * H)),
        # fc head
        "w_fc_t":  u(keys[8], (H, O)),
        "b_fc":    u(keys[9], (1, O)),
    }


def gru_model_reference(x_btd, params):
    """Pure-JAX reference of the same forward pass (for validation)."""
    H = params["w_hh0_t"].shape[0]
    B, T, D = x_btd.shape

    def cell(x_t, h, w_ih_t, w_hh_t, b_ih, b_hh):
        gx = x_t @ w_ih_t + b_ih
        gh = h @ w_hh_t + b_hh
        r = jax.nn.sigmoid(gx[:, 0:H] + gh[:, 0:H])
        z = jax.nn.sigmoid(gx[:, H:2 * H] + gh[:, H:2 * H])
        n = jnp.tanh(gx[:, 2 * H:3 * H] + r * gh[:, 2 * H:3 * H])
        return (1.0 - z) * n + z * h

    def layer(xs_tbd, w_ih_t, w_hh_t, b_ih, b_hh):
        def step(h, x_t):
            h_new = cell(x_t, h, w_ih_t, w_hh_t, b_ih, b_hh)
            return h_new, h_new
        h0 = jnp.zeros((B, H), jnp.float32)
        _, hs = jax.lax.scan(step, h0, xs_tbd)
        return hs  # (T, B, H)

    xs = jnp.transpose(x_btd, (1, 0, 2))
    h1_seq = layer(xs, params["w_ih0_t"], params["w_hh0_t"],
                   params["b_ih0"], params["b_hh0"])
    h2_seq = layer(h1_seq, params["w_ih1_t"], params["w_hh1_t"],
                   params["b_ih1"], params["b_hh1"])
    h_last = h2_seq[-1]
    return jax.nn.sigmoid(h_last @ params["w_fc_t"] + params["b_fc"])


if __name__ == "__main__":
    # Small shapes consistent with the module: batch=2, seq=8, input_dim=16,
    # hidden_dim=32, num_layers=2, output_dim=1.
    B, T, D, H, O = 2, 8, 16, 32, 1

    root = jax.random.PRNGKey(0)
    k_x, k_p = jax.random.split(root)
    x = jax.random.normal(k_x, (B, T, D), dtype=jnp.float32)
    params = init_params(k_p, D, H, O)

    out = gru_model_forward(x, params)
    out = jax.block_until_ready(out)

    ref = gru_model_reference(x, params)
    assert out.shape == (B, O)
    assert jnp.allclose(out, ref, atol=2e-4, rtol=2e-4), (out, ref)

    print("KERNEL_OK")
</pallas_src>

<mosaic_0001>
module attributes {stable_mosaic.version = 11 : i64} {
  func.func @gru_model_kernel(%arg0: memref<64x16xf32, #tpu.memory_space<vmem>>, %arg1: memref<16x384xf32, #tpu.memory_space<vmem>>, %arg2: memref<128x384xf32, #tpu.memory_space<vmem>>, %arg3: memref<1x384xf32, #tpu.memory_space<vmem>>, %arg4: memref<1x128xf32, #tpu.memory_space<vmem>>, %arg5: memref<128x384xf32, #tpu.memory_space<vmem>>, %arg6: memref<128x384xf32, #tpu.memory_space<vmem>>, %arg7: memref<1x384xf32, #tpu.memory_space<vmem>>, %arg8: memref<1x128xf32, #tpu.memory_space<vmem>>, %arg9: memref<128x128xf32, #tpu.memory_space<vmem>>, %arg10: memref<1x128xf32, #tpu.memory_space<vmem>>, %arg11: memref<8x128xf32, #tpu.memory_space<vmem>>) attributes {dimension_semantics = [], scalar_prefetch = 0 : i64, scratch_operands = 0 : i64, tpu.core_type = #tpu.core_type<tc>} {
    %c0 = arith.constant 0 : index
    %c0_0 = arith.constant 0 : index
    %0 = vector.load %arg0[%c0, %c0_0] : memref<64x16xf32, #tpu.memory_space<vmem>>, vector<64x16xf32>
    %c0_1 = arith.constant 0 : index
    %c0_2 = arith.constant 0 : index
    %1 = vector.load %arg1[%c0_1, %c0_2] : memref<16x384xf32, #tpu.memory_space<vmem>>, vector<16x384xf32>
    %cst = arith.constant dense<0.000000e+00> : vector<64x384xf32>
    %2 = tpu.matmul %0, %1, %cst {dimension_numbers = #tpu.dot_dimension_numbers<[1], [0], [0], [1], [0, 0, 1, 1], [], []>} : vector<64x16xf32>, vector<16x384xf32>, vector<64x384xf32> -> vector<64x384xf32>
    %c0_3 = arith.constant 0 : index
    %c0_4 = arith.constant 0 : index
    %3 = vector.load %arg3[%c0_3, %c0_4] : memref<1x384xf32, #tpu.memory_space<vmem>>, vector<1x384xf32>
    %4 = vector.broadcast %3 : vector<1x384xf32> to vector<64x384xf32>
    %5 = arith.addf %2, %4 : vector<64x384xf32>
    %c0_5 = arith.constant 0 : index
    %c0_6 = arith.constant 0 : index
    %6 = vector.load %arg2[%c0_5, %c0_6] : memref<128x384xf32, #tpu.memory_space<vmem>>, vector<128x384xf32>
    %c0_7 = arith.constant 0 : index
    %c0_8 = arith.constant 0 : index
    %7 = vector.load %arg4[%c0_7, %c0_8] : memref<1x128xf32, #tpu.memory_space<vmem>>, vector<1x128xf32>
    %cst_9 = arith.constant 0.000000e+00 : f32
    %8 = vector.broadcast %cst_9 : f32 to vector<8x128xf32>
    %9 = vector.extract_strided_slice %5 {offsets = [0, 0], sizes = [8, 384], strides = [1, 1]} : vector<64x384xf32> to vector<8x384xf32>
    %cst_10 = arith.constant dense<0.000000e+00> : vector<8x384xf32>
    %10 = tpu.matmul %8, %6, %cst_10 {dimension_numbers = #tpu.dot_dimension_numbers<[1], [0], [0], [1], [0, 0, 1, 1], [], []>} : vector<8x128xf32>, vector<128x384xf32>, vector<8x384xf32> -> vector<8x384xf32>
    %11 = vector.extract_strided_slice %9 {offsets = [0, 0], sizes = [8, 128], strides = [1, 1]} : vector<8x384xf32> to vector<8x128xf32>
    %12 = vector.extract_strided_slice %10 {offsets = [0, 0], sizes = [8, 128], strides = [1, 1]} : vector<8x384xf32> to vector<8x128xf32>
    %13 = arith.addf %11, %12 : vector<8x128xf32>
    %14 = arith.negf %13 : vector<8x128xf32>
    %15 = math.exp %14 : vector<8x128xf32>
    %cst_11 = arith.constant 1.000000e+00 : f32
    %16 = vector.broadcast %cst_11 : f32 to vector<8x128xf32>
    %17 = arith.addf %16, %15 : vector<8x128xf32>
    %18 = arith.divf %16, %17 : vector<8x128xf32>
    %19 = vector.extract_strided_slice %9 {offsets = [0, 128], sizes = [8, 128], strides = [1, 1]} : vector<8x384xf32> to vector<8x128xf32>
    %20 = vector.extract_strided_slice %10 {offsets = [0, 128], sizes = [8, 128], strides = [1, 1]} : vector<8x384xf32> to vector<8x128xf32>
    %21 = arith.addf %19, %20 : vector<8x128xf32>
    %22 = arith.negf %21 : vector<8x128xf32>
    %23 = math.exp %22 : vector<8x128xf32>
    %cst_12 = arith.constant 1.000000e+00 : f32
    %24 = vector.broadcast %cst_12 : f32 to vector<8x128xf32>
    %25 = arith.addf %24, %23 : vector<8x128xf32>
    %26 = arith.divf %24, %25 : vector<8x128xf32>
    %27 = vector.extract_strided_slice %9 {offsets = [0, 256], sizes = [8, 128], strides = [1, 1]} : vector<8x384xf32> to vector<8x128xf32>
    %28 = vector.extract_strided_slice %10 {offsets = [0, 256], sizes = [8, 128], strides = [1, 1]} : vector<8x384xf32> to vector<8x128xf32>
    %29 = vector.broadcast %7 : vector<1x128xf32> to vector<8x128xf32>
    %30 = arith.addf %28, %29 : vector<8x128xf32>
    %31 = arith.mulf %18, %30 : vector<8x128xf32>
    %32 = arith.addf %27, %31 : vector<8x128xf32>
    %33 = math.tanh %32 : vector<8x128xf32>
    %cst_13 = arith.constant 1.000000e+00 : f32
    %34 = vector.broadcast %cst_13 : f32 to vector<8x128xf32>
    %35 = arith.subf %34, %26 : vector<8x128xf32>
    %36 = arith.mulf %35, %33 : vector<8x128xf32>
    %37 = arith.mulf %26, %8 : vector<8x128xf32>
    %38 = arith.addf %36, %37 : vector<8x128xf32>
    %39 = vector.extract_strided_slice %5 {offsets = [8, 0], sizes = [8, 384], strides = [1, 1]} : vector<64x384xf32> to vector<8x384xf32>
    %cst_14 = arith.constant dense<0.000000e+00> : vector<8x384xf32>
    %40 = tpu.matmul %38, %6, %cst_14 {dimension_numbers = #tpu.dot_dimension_numbers<[1], [0], [0], [1], [0, 0, 1, 1], [], []>} : vector<8x128xf32>, vector<128x384xf32>, vector<8x384xf32> -> vector<8x384xf32>
    %41 = vector.extract_strided_slice %39 {offsets = [0, 0], sizes = [8, 128], strides = [1, 1]} : vector<8x384xf32> to vector<8x128xf32>
    %42 = vector.extract_strided_slice %40 {offsets = [0, 0], sizes = [8, 128], strides = [1, 1]} : vector<8x384xf32> to vector<8x128xf32>
    %43 = arith.addf %41, %42 : vector<8x128xf32>
    %44 = arith.negf %43 : vector<8x128xf32>
    %45 = math.exp %44 : vector<8x128xf32>
    %cst_15 = arith.constant 1.000000e+00 : f32
    %46 = vector.broadcast %cst_15 : f32 to vector<8x128xf32>
    %47 = arith.addf %46, %45 : vector<8x128xf32>
    %48 = arith.divf %46, %47 : vector<8x128xf32>
    %49 = vector.extract_strided_slice %39 {offsets = [0, 128], sizes = [8, 128], strides = [1, 1]} : vector<8x384xf32> to vector<8x128xf32>
    %50 = vector.extract_strided_slice %40 {offsets = [0, 128], sizes = [8, 128], strides = [1, 1]} : vector<8x384xf32> to vector<8x128xf32>
    %51 = arith.addf %49, %50 : vector<8x128xf32>
    %52 = arith.negf %51 : vector<8x128xf32>
    %53 = math.exp %52 : vector<8x128xf32>
    %cst_16 = arith.constant 1.000000e+00 : f32
    %54 = vector.broadcast %cst_16 : f32 to vector<8x128xf32>
    %55 = arith.addf %54, %53 : vector<8x128xf32>
    %56 = arith.divf %54, %55 : vector<8x128xf32>
    %57 = vector.extract_strided_slice %39 {offsets = [0, 256], sizes = [8, 128], strides = [1, 1]} : vector<8x384xf32> to vector<8x128xf32>
    %58 = vector.extract_strided_slice %40 {offsets = [0, 256], sizes = [8, 128], strides = [1, 1]} : vector<8x384xf32> to vector<8x128xf32>
    %59 = vector.broadcast %7 : vector<1x128xf32> to vector<8x128xf32>
    %60 = arith.addf %58, %59 : vector<8x128xf32>
    %61 = arith.mulf %48, %60 : vector<8x128xf32>
    %62 = arith.addf %57, %61 : vector<8x128xf32>
    %63 = math.tanh %62 : vector<8x128xf32>
    %cst_17 = arith.constant 1.000000e+00 : f32
    %64 = vector.broadcast %cst_17 : f32 to vector<8x128xf32>
    %65 = arith.subf %64, %56 : vector<8x128xf32>
    %66 = arith.mulf %65, %63 : vector<8x128xf32>
    %67 = arith.mulf %56, %38 : vector<8x128xf32>
    %68 = arith.addf %66, %67 : vector<8x128xf32>
    %69 = vector.extract_strided_slice %5 {offsets = [16, 0], sizes = [8, 384], strides = [1, 1]} : vector<64x384xf32> to vector<8x384xf32>
    %cst_18 = arith.constant dense<0.000000e+00> : vector<8x384xf32>
    %70 = tpu.matmul %68, %6, %cst_18 {dimension_numbers = #tpu.dot_dimension_numbers<[1], [0], [0], [1], [0, 0, 1, 1], [], []>} : vector<8x128xf32>, vector<128x384xf32>, vector<8x384xf32> -> vector<8x384xf32>
    %71 = vector.extract_strided_slice %69 {offsets = [0, 0], sizes = [8, 128], strides = [1, 1]} : vector<8x384xf32> to vector<8x128xf32>
    %72 = vector.extract_strided_slice %70 {offsets = [0, 0], sizes = [8, 128], strides = [1, 1]} : vector<8x384xf32> to vector<8x128xf32>
    %73 = arith.addf %71, %72 : vector<8x128xf32>
    %74 = arith.negf %73 : vector<8x128xf32>
    %75 = math.exp %74 : vector<8x128xf32>
    %cst_19 = arith.constant 1.000000e+00 : f32
    %76 = vector.broadcast %cst_19 : f32 to vector<8x128xf32>
    %77 = arith.addf %76, %75 : vector<8x128xf32>
    %78 = arith.divf %76, %77 : vector<8x128xf32>
    %79 = vector.extract_strided_slice %69 {offsets = [0, 128], sizes = [8, 128], strides = [1, 1]} : vector<8x384xf32> to vector<8x128xf32>
    %80 = vector.extract_strided_slice %70 {offsets = [0, 128], sizes = [8, 128], strides = [1, 1]} : vector<8x384xf32> to vector<8x128xf32>
    %81 = arith.addf %79, %80 : vector<8x128xf32>
    %82 = arith.negf %81 : vector<8x128xf32>
    %83 = math.exp %82 : vector<8x128xf32>
    %cst_20 = arith.constant 1.000000e+00 : f32
    %84 = vector.broadcast %cst_20 : f32 to vector<8x128xf32>
    %85 = arith.addf %84, %83 : vector<8x128xf32>
    %86 = arith.divf %84, %85 : vector<8x128xf32>
    %87 = vector.extract_strided_slice %69 {offsets = [0, 256], sizes = [8, 128], strides = [1, 1]} : vector<8x384xf32> to vector<8x128xf32>
    %88 = vector.extract_strided_slice %70 {offsets = [0, 256], sizes = [8, 128], strides = [1, 1]} : vector<8x384xf32> to vector<8x128xf32>
    %89 = vector.broadcast %7 : vector<1x128xf32> to vector<8x128xf32>
    %90 = arith.addf %88, %89 : vector<8x128xf32>
    %91 = arith.mulf %78, %90 : vector<8x128xf32>
    %92 = arith.addf %87, %91 : vector<8x128xf32>
    %93 = math.tanh %92 : vector<8x128xf32>
    %cst_21 = arith.constant 1.000000e+00 : f32
    %94 = vector.broadcast %cst_21 : f32 to vector<8x128xf32>
    %95 = arith.subf %94, %86 : vector<8x128xf32>
    %96 = arith.mulf %95, %93 : vector<8x128xf32>
    %97 = arith.mulf %86, %68 : vector<8x128xf32>
    %98 = arith.addf %96, %97 : vector<8x128xf32>
    %99 = vector.extract_strided_slice %5 {offsets = [24, 0], sizes = [8, 384], strides = [1, 1]} : vector<64x384xf32> to vector<8x384xf32>
    %cst_22 = arith.constant dense<0.000000e+00> : vector<8x384xf32>
    %100 = tpu.matmul %98, %6, %cst_22 {dimension_numbers = #tpu.dot_dimension_numbers<[1], [0], [0], [1], [0, 0, 1, 1], [], []>} : vector<8x128xf32>, vector<128x384xf32>, vector<8x384xf32> -> vector<8x384xf32>
    %101 = vector.extract_strided_slice %99 {offsets = [0, 0], sizes = [8, 128], strides = [1, 1]} : vector<8x384xf32> to vector<8x128xf32>
    %102 = vector.extract_strided_slice %100 {offsets = [0, 0], sizes = [8, 128], strides = [1, 1]} : vector<8x384xf32> to vector<8x128xf32>
    %103 = arith.addf %101, %102 : vector<8x128xf32>
    %104 = arith.negf %103 : vector<8x128xf32>
    %105 = math.exp %104 : vector<8x128xf32>
    %cst_23 = arith.constant 1.000000e+00 : f32
    %106 = vector.broadcast %cst_23 : f32 to vector<8x128xf32>
    %107 = arith.addf %106, %105 : vector<8x128xf32>
    %108 = arith.divf %106, %107 : vector<8x128xf32>
    %109 = vector.extract_strided_slice %99 {offsets = [0, 128], sizes = [8, 128], strides = [1, 1]} : vector<8x384xf32> to vector<8x128xf32>
    %110 = vector.extract_strided_slice %100 {offsets = [0, 128], sizes = [8, 128], strides = [1, 1]} : vector<8x384xf32> to vector<8x128xf32>
    %111 = arith.addf %109, %110 : vector<8x128xf32>
    %112 = arith.negf %111 : vector<8x128xf32>
    %113 = math.exp %112 : vector<8x128xf32>
    %cst_24 = arith.constant 1.000000e+00 : f32
    %114 = vector.broadcast %cst_24 : f32 to vector<8x128xf32>
    %115 = arith.addf %114, %113 : vector<8x128xf32>
    %116 = arith.divf %114, %115 : vector<8x128xf32>
    %117 = vector.extract_strided_slice %99 {offsets = [0, 256], sizes = [8, 128], strides = [1, 1]} : vector<8x384xf32> to vector<8x128xf32>
    %118 = vector.extract_strided_slice %100 {offsets = [0, 256], sizes = [8, 128], strides = [1, 1]} : vector<8x384xf32> to vector<8x128xf32>
    %119 = vector.broadcast %7 : vector<1x128xf32> to vector<8x128xf32>
    %120 = arith.addf %118, %119 : vector<8x128xf32>
    %121 = arith.mulf %108, %120 : vector<8x128xf32>
    %122 = arith.addf %117, %121 : vector<8x128xf32>
    %123 = math.tanh %122 : vector<8x128xf32>
    %cst_25 = arith.constant 1.000000e+00 : f32
    %124 = vector.broadcast %cst_25 : f32 to vector<8x128xf32>
    %125 = arith.subf %124, %116 : vector<8x128xf32>
    %126 = arith.mulf %125, %123 : vector<8x128xf32>
    %127 = arith.mulf %116, %98 : vector<8x128xf32>
    %128 = arith.addf %126, %127 : vector<8x128xf32>
    %129 = vector.extract_strided_slice %5 {offsets = [32, 0], sizes = [8, 384], strides = [1, 1]} : vector<64x384xf32> to vector<8x384xf32>
    %cst_26 = arith.constant dense<0.000000e+00> : vector<8x384xf32>
    %130 = tpu.matmul %128, %6, %cst_26 {dimension_numbers = #tpu.dot_dimension_numbers<[1], [0], [0], [1], [0, 0, 1, 1], [], []>} : vector<8x128xf32>, vector<128x384xf32>, vector<8x384xf32> -> vector<8x384xf32>
    %131 = vector.extract_strided_slice %129 {offsets = [0, 0], sizes = [8, 128], strides = [1, 1]} : vector<8x384xf32> to vector<8x128xf32>
    %132 = vector.extract_strided_slice %130 {offsets = [0, 0], sizes = [8, 128], strides = [1, 1]} : vector<8x384xf32> to vector<8x128xf32>
    %133 = arith.addf %131, %132 : vector<8x128xf32>
    %134 = arith.negf %133 : vector<8x128xf32>
    %135 = math.exp %134 : vector<8x128xf32>
    %cst_27 = arith.constant 1.000000e+00 : f32
    %136 = vector.broadcast %cst_27 : f32 to vector<8x128xf32>
    %137 = arith.addf %136, %135 : vector<8x128xf32>
    %138 = arith.divf %136, %137 : vector<8x128xf32>
    %139 = vector.extract_strided_slice %129 {offsets = [0, 128], sizes = [8, 128], strides = [1, 1]} : vector<8x384xf32> to vector<8x128xf32>
    %140 = vector.extract_strided_slice %130 {offsets = [0, 128], sizes = [8, 128], strides = [1, 1]} : vector<8x384xf32> to vector<8x128xf32>
    %141 = arith.addf %139, %140 : vector<8x128xf32>
    %142 = arith.negf %141 : vector<8x128xf32>
    %143 = math.exp %142 : vector<8x128xf32>
    %cst_28 = arith.constant 1.000000e+00 : f32
    %144 = vector.broadcast %cst_28 : f32 to vector<8x128xf32>
    %145 = arith.addf %144, %143 : vector<8x128xf32>
    %146 = arith.divf %144, %145 : vector<8x128xf32>
    %147 = vector.extract_strided_slice %129 {offsets = [0, 256], sizes = [8, 128], strides = [1, 1]} : vector<8x384xf32> to vector<8x128xf32>
    %148 = vector.extract_strided_slice %130 {offsets = [0, 256], sizes = [8, 128], strides = [1, 1]} : vector<8x384xf32> to vector<8x128xf32>
    %149 = vector.broadcast %7 : vector<1x128xf32> to vector<8x128xf32>
    %150 = arith.addf %148, %149 : vector<8x128xf32>
    %151 = arith.mulf %138, %150 : vector<8x128xf32>
    %152 = arith.addf %147, %151 : vector<8x128xf32>
    %153 = math.tanh %152 : vector<8x128xf32>
    %cst_29 = arith.constant 1.000000e+00 : f32
    %154 = vector.broadcast %cst_29 : f32 to vector<8x128xf32>
    %155 = arith.subf %154, %146 : vector<8x128xf32>
    %156 = arith.mulf %155, %153 : vector<8x128xf32>
    %157 = arith.mulf %146, %128 : vector<8x128xf32>
    %158 = arith.addf %156, %157 : vector<8x128xf32>
    %159 = vector.extract_strided_slice %5 {offsets = [40, 0], sizes = [8, 384], strides = [1, 1]} : vector<64x384xf32> to vector<8x384xf32>
    %cst_30 = arith.constant dense<0.000000e+00> : vector<8x384xf32>
    %160 = tpu.matmul %158, %6, %cst_30 {dimension_numbers = #tpu.dot_dimension_numbers<[1], [0], [0], [1], [0, 0, 1, 1], [], []>} : vector<8x128xf32>, vector<128x384xf32>, vector<8x384xf32> -> vector<8x384xf32>
    %161 = vector.extract_strided_slice %159 {offsets = [0, 0], sizes = [8, 128], strides = [1, 1]} : vector<8x384xf32> to vector<8x128xf32>
    %162 = vector.extract_strided_slice %160 {offsets = [0, 0], sizes = [8, 128], strides = [1, 1]} : vector<8x384xf32> to vector<8x128xf32>
    %163 = arith.addf %161, %162 : vector<8x128xf32>
    %164 = arith.negf %163 : vector<8x128xf32>
    %165 = math.exp %164 : vector<8x128xf32>
    %cst_31 = arith.constant 1.000000e+00 : f32
    %166 = vector.broadcast %cst_31 : f32 to vector<8x128xf32>
    %167 = arith.addf %166, %165 : vector<8x128xf32>
    %168 = arith.divf %166, %167 : vector<8x128xf32>
    %169 = vector.extract_strided_slice %159 {offsets = [0, 128], sizes = [8, 128], strides = [1, 1]} : vector<8x384xf32> to vector<8x128xf32>
    %170 = vector.extract_strided_slice %160 {offsets = [0, 128], sizes = [8, 128], strides = [1, 1]} : vector<8x384xf32> to vector<8x128xf32>
    %171 = arith.addf %169, %170 : vector<8x128xf32>
    %172 = arith.negf %171 : vector<8x128xf32>
    %173 = math.exp %172 : vector<8x128xf32>
    %cst_32 = arith.constant 1.000000e+00 : f32
    %174 = vector.broadcast %cst_32 : f32 to vector<8x128xf32>
    %175 = arith.addf %174, %173 : vector<8x128xf32>
    %176 = arith.divf %174, %175 : vector<8x128xf32>
    %177 = vector.extract_strided_slice %159 {offsets = [0, 256], sizes = [8, 128], strides = [1, 1]} : vector<8x384xf32> to vector<8x128xf32>
    %178 = vector.extract_strided_slice %160 {offsets = [0, 256], sizes = [8, 128], strides = [1, 1]} : vector<8x384xf32> to vector<8x128xf32>
    %179 = vector.broadcast %7 : vector<1x128xf32> to vector<8x128xf32>
    %180 = arith.addf %178, %179 : vector<8x128xf32>
    %181 = arith.mulf %168, %180 : vector<8x128xf32>
    %182 = arith.addf %177, %181 : vector<8x128xf32>
    %183 = math.tanh %182 : vector<8x128xf32>
    %cst_33 = arith.constant 1.000000e+00 : f32
    %184 = vector.broadcast %cst_33 : f32 to vector<8x128xf32>
    %185 = arith.subf %184, %176 : vector<8x128xf32>
    %186 = arith.mulf %185, %183 : vector<8x128xf32>
    %187 = arith.mulf %176, %158 : vector<8x128xf32>
    %188 = arith.addf %186, %187 : vector<8x128xf32>
    %189 = vector.extract_strided_slice %5 {offsets = [48, 0], sizes = [8, 384], strides = [1, 1]} : vector<64x384xf32> to vector<8x384xf32>
    %cst_34 = arith.constant dense<0.000000e+00> : vector<8x384xf32>
    %190 = tpu.matmul %188, %6, %cst_34 {dimension_numbers = #tpu.dot_dimension_numbers<[1], [0], [0], [1], [0, 0, 1, 1], [], []>} : vector<8x128xf32>, vector<128x384xf32>, vector<8x384xf32> -> vector<8x384xf32>
    %191 = vector.extract_strided_slice %189 {offsets = [0, 0], sizes = [8, 128], strides = [1, 1]} : vector<8x384xf32> to vector<8x128xf32>
    %192 = vector.extract_strided_slice %190 {offsets = [0, 0], sizes = [8, 128], strides = [1, 1]} : vector<8x384xf32> to vector<8x128xf32>
    %193 = arith.addf %191, %192 : vector<8x128xf32>
    %194 = arith.negf %193 : vector<8x128xf32>
    %195 = math.exp %194 : vector<8x128xf32>
    %cst_35 = arith.constant 1.000000e+00 : f32
    %196 = vector.broadcast %cst_35 : f32 to vector<8x128xf32>
    %197 = arith.addf %196, %195 : vector<8x128xf32>
    %198 = arith.divf %196, %197 : vector<8x128xf32>
    %199 = vector.extract_strided_slice %189 {offsets = [0, 128], sizes = [8, 128], strides = [1, 1]} : vector<8x384xf32> to vector<8x128xf32>
    %200 = vector.extract_strided_slice %190 {offsets = [0, 128], sizes = [8, 128], strides = [1, 1]} : vector<8x384xf32> to vector<8x128xf32>
    %201 = arith.addf %199, %200 : vector<8x128xf32>
    %202 = arith.negf %201 : vector<8x128xf32>
    %203 = math.exp %202 : vector<8x128xf32>
    %cst_36 = arith.constant 1.000000e+00 : f32
    %204 = vector.broadcast %cst_36 : f32 to vector<8x128xf32>
    %205 = arith.addf %204, %203 : vector<8x128xf32>
    %206 = arith.divf %204, %205 : vector<8x128xf32>
    %207 = vector.extract_strided_slice %189 {offsets = [0, 256], sizes = [8, 128], strides = [1, 1]} : vector<8x384xf32> to vector<8x128xf32>
    %208 = vector.extract_strided_slice %190 {offsets = [0, 256], sizes = [8, 128], strides = [1, 1]} : vector<8x384xf32> to vector<8x128xf32>
    %209 = vector.broadcast %7 : vector<1x128xf32> to vector<8x128xf32>
    %210 = arith.addf %208, %209 : vector<8x128xf32>
    %211 = arith.mulf %198, %210 : vector<8x128xf32>
    %212 = arith.addf %207, %211 : vector<8x128xf32>
    %213 = math.tanh %212 : vector<8x128xf32>
    %cst_37 = arith.constant 1.000000e+00 : f32
    %214 = vector.broadcast %cst_37 : f32 to vector<8x128xf32>
    %215 = arith.subf %214, %206 : vector<8x128xf32>
    %216 = arith.mulf %215, %213 : vector<8x128xf32>
    %217 = arith.mulf %206, %188 : vector<8x128xf32>
    %218 = arith.addf %216, %217 : vector<8x128xf32>
    %219 = vector.extract_strided_slice %5 {offsets = [56, 0], sizes = [8, 384], strides = [1, 1]} : vector<64x384xf32> to vector<8x384xf32>
    %cst_38 = arith.constant dense<0.000000e+00> : vector<8x384xf32>
    %220 = tpu.matmul %218, %6, %cst_38 {dimension_numbers = #tpu.dot_dimension_numbers<[1], [0], [0], [1], [0, 0, 1, 1], [], []>} : vector<8x128xf32>, vector<128x384xf32>, vector<8x384xf32> -> vector<8x384xf32>
    %221 = vector.extract_strided_slice %219 {offsets = [0, 0], sizes = [8, 128], strides = [1, 1]} : vector<8x384xf32> to vector<8x128xf32>
    %222 = vector.extract_strided_slice %220 {offsets = [0, 0], sizes = [8, 128], strides = [1, 1]} : vector<8x384xf32> to vector<8x128xf32>
    %223 = arith.addf %221, %222 : vector<8x128xf32>
    %224 = arith.negf %223 : vector<8x128xf32>
    %225 = math.exp %224 : vector<8x128xf32>
    %cst_39 = arith.constant 1.000000e+00 : f32
    %226 = vector.broadcast %cst_39 : f32 to vector<8x128xf32>
    %227 = arith.addf %226, %225 : vector<8x128xf32>
    %228 = arith.divf %226, %227 : vector<8x128xf32>
    %229 = vector.extract_strided_slice %219 {offsets = [0, 128], sizes = [8, 128], strides = [1, 1]} : vector<8x384xf32> to vector<8x128xf32>
    %230 = vector.extract_strided_slice %220 {offsets = [0, 128], sizes = [8, 128], strides = [1, 1]} : vector<8x384xf32> to vector<8x128xf32>
    %231 = arith.addf %229, %230 : vector<8x128xf32>
    %232 = arith.negf %231 : vector<8x128xf32>
    %233 = math.exp %232 : vector<8x128xf32>
    %cst_40 = arith.constant 1.000000e+00 : f32
    %234 = vector.broadcast %cst_40 : f32 to vector<8x128xf32>
    %235 = arith.addf %234, %233 : vector<8x128xf32>
    %236 = arith.divf %234, %235 : vector<8x128xf32>
    %237 = vector.extract_strided_slice %219 {offsets = [0, 256], sizes = [8, 128], strides = [1, 1]} : vector<8x384xf32> to vector<8x128xf32>
    %238 = vector.extract_strided_slice %220 {offsets = [0, 256], sizes = [8, 128], strides = [1, 1]} : vector<8x384xf32> to vector<8x128xf32>
    %239 = vector.broadcast %7 : vector<1x128xf32> to vector<8x128xf32>
    %240 = arith.addf %238, %239 : vector<8x128xf32>
    %241 = arith.mulf %228, %240 : vector<8x128xf32>
    %242 = arith.addf %237, %241 : vector<8x128xf32>
    %243 = math.tanh %242 : vector<8x128xf32>
    %cst_41 = arith.constant 1.000000e+00 : f32
    %244 = vector.broadcast %cst_41 : f32 to vector<8x128xf32>
    %245 = arith.subf %244, %236 : vector<8x128xf32>
    %246 = arith.mulf %245, %243 : vector<8x128xf32>
    %247 = arith.mulf %236, %218 : vector<8x128xf32>
    %248 = arith.addf %246, %247 : vector<8x128xf32>
    %249 = tpu.concatenate %38, %68, %98, %128, %158, %188, %218, %248 in 0 : vector<8x128xf32>, vector<8x128xf32>, vector<8x128xf32>, vector<8x128xf32>, vector<8x128xf32>, vector<8x128xf32>, vector<8x128xf32>, vector<8x128xf32> -> vector<64x128xf32>
    %c0_42 = arith.constant 0 : index
    %c0_43 = arith.constant 0 : index
    %250 = vector.load %arg5[%c0_42, %c0_43] : memref<128x384xf32, #tpu.memory_space<vmem>>, vector<128x384xf32>
    %cst_44 = arith.constant dense<0.000000e+00> : vector<64x384xf32>
    %251 = tpu.matmul %249, %250, %cst_44 {dimension_numbers = #tpu.dot_dimension_numbers<[1], [0], [0], [1], [0, 0, 1, 1], [], []>} : vector<64x128xf32>, vector<128x384xf32>, vector<64x384xf32> -> vector<64x384xf32>
    %c0_45 = arith.constant 0 : index
    %c0_46 = arith.constant 0 : index
    %252 = vector.load %arg7[%c0_45, %c0_46] : memref<1x384xf32, #tpu.memory_space<vmem>>, vector<1x384xf32>
    %253 = vector.broadcast %252 : vector<1x384xf32> to vector<64x384xf32>
    %254 = arith.addf %251, %253 : vector<64x384xf32>
    %c0_47 = arith.constant 0 : index
    %c0_48 = arith.constant 0 : index
    %255 = vector.load %arg6[%c0_47, %c0_48] : memref<128x384xf32, #tpu.memory_space<vmem>>, vector<128x384xf32>
    %c0_49 = arith.constant 0 : index
    %c0_50 = arith.constant 0 : index
    %256 = vector.load %arg8[%c0_49, %c0_50] : memref<1x128xf32, #tpu.memory_space<vmem>>, vector<1x128xf32>
    %cst_51 = arith.constant 0.000000e+00 : f32
    %257 = vector.broadcast %cst_51 : f32 to vector<8x128xf32>
    %258 = vector.extract_strided_slice %254 {offsets = [0, 0], sizes = [8, 384], strides = [1, 1]} : vector<64x384xf32> to vector<8x384xf32>
    %cst_52 = arith.constant dense<0.000000e+00> : vector<8x384xf32>
    %259 = tpu.matmul %257, %255, %cst_52 {dimension_numbers = #tpu.dot_dimension_numbers<[1], [0], [0], [1], [0, 0, 1, 1], [], []>} : vector<8x128xf32>, vector<128x384xf32>, vector<8x384xf32> -> vector<8x384xf32>
    %260 = vector.extract_strided_slice %258 {offsets = [0, 0], sizes = [8, 128], strides = [1, 1]} : vector<8x384xf32> to vector<8x128xf32>
    %261 = vector.extract_strided_slice %259 {offsets = [0, 0], sizes = [8, 128], strides = [1, 1]} : vector<8x384xf32> to vector<8x128xf32>
    %262 = arith.addf %260, %261 : vector<8x128xf32>
    %263 = arith.negf %262 : vector<8x128xf32>
    %264 = math.exp %263 : vector<8x128xf32>
    %cst_53 = arith.constant 1.000000e+00 : f32
    %265 = vector.broadcast %cst_53 : f32 to vector<8x128xf32>
    %266 = arith.addf %265, %264 : vector<8x128xf32>
    %267 = arith.divf %265, %266 : vector<8x128xf32>
    %268 = vector.extract_strided_slice %258 {offsets = [0, 128], sizes = [8, 128], strides = [1, 1]} : vector<8x384xf32> to vector<8x128xf32>
    %269 = vector.extract_strided_slice %259 {offsets = [0, 128], sizes = [8, 128], strides = [1, 1]} : vector<8x384xf32> to vector<8x128xf32>
    %270 = arith.addf %268, %269 : vector<8x128xf32>
    %271 = arith.negf %270 : vector<8x128xf32>
    %272 = math.exp %271 : vector<8x128xf32>
    %cst_54 = arith.constant 1.000000e+00 : f32
    %273 = vector.broadcast %cst_54 : f32 to vector<8x128xf32>
    %274 = arith.addf %273, %272 : vector<8x128xf32>
    %275 = arith.divf %273, %274 : vector<8x128xf32>
    %276 = vector.extract_strided_slice %258 {offsets = [0, 256], sizes = [8, 128], strides = [1, 1]} : vector<8x384xf32> to vector<8x128xf32>
    %277 = vector.extract_strided_slice %259 {offsets = [0, 256], sizes = [8, 128], strides = [1, 1]} : vector<8x384xf32> to vector<8x128xf32>
    %278 = vector.broadcast %256 : vector<1x128xf32> to vector<8x128xf32>
    %279 = arith.addf %277, %278 : vector<8x128xf32>
    %280 = arith.mulf %267, %279 : vector<8x128xf32>
    %281 = arith.addf %276, %280 : vector<8x128xf32>
    %282 = math.tanh %281 : vector<8x128xf32>
    %cst_55 = arith.constant 1.000000e+00 : f32
    %283 = vector.broadcast %cst_55 : f32 to vector<8x128xf32>
    %284 = arith.subf %283, %275 : vector<8x128xf32>
    %285 = arith.mulf %284, %282 : vector<8x128xf32>
    %286 = arith.mulf %275, %257 : vector<8x128xf32>
    %287 = arith.addf %285, %286 : vector<8x128xf32>
    %288 = vector.extract_strided_slice %254 {offsets = [8, 0], sizes = [8, 384], strides = [1, 1]} : vector<64x384xf32> to vector<8x384xf32>
    %cst_56 = arith.constant dense<0.000000e+00> : vector<8x384xf32>
    %289 = tpu.matmul %287, %255, %cst_56 {dimension_numbers = #tpu.dot_dimension_numbers<[1], [0], [0], [1], [0, 0, 1, 1], [], []>} : vector<8x128xf32>, vector<128x384xf32>, vector<8x384xf32> -> vector<8x384xf32>
    %290 = vector.extract_strided_slice %288 {offsets = [0, 0], sizes = [8, 128], strides = [1, 1]} : vector<8x384xf32> to vector<8x128xf32>
    %291 = vector.extract_strided_slice %289 {offsets = [0, 0], sizes = [8, 128], strides = [1, 1]} : vector<8x384xf32> to vector<8x128xf32>
    %292 = arith.addf %290, %291 : vector<8x128xf32>
    %293 = arith.negf %292 : vector<8x128xf32>
    %294 = math.exp %293 : vector<8x128xf32>
    %cst_57 = arith.constant 1.000000e+00 : f32
    %295 = vector.broadcast %cst_57 : f32 to vector<8x128xf32>
    %296 = arith.addf %295, %294 : vector<8x128xf32>
    %297 = arith.divf %295, %296 : vector<8x128xf32>
    %298 = vector.extract_strided_slice %288 {offsets = [0, 128], sizes = [8, 128], strides = [1, 1]} : vector<8x384xf32> to vector<8x128xf32>
    %299 = vector.extract_strided_slice %289 {offsets = [0, 128], sizes = [8, 128], strides = [1, 1]} : vector<8x384xf32> to vector<8x128xf32>
    %300 = arith.addf %298, %299 : vector<8x128xf32>
    %301 = arith.negf %300 : vector<8x128xf32>
    %302 = math.exp %301 : vector<8x128xf32>
    %cst_58 = arith.constant 1.000000e+00 : f32
    %303 = vector.broadcast %cst_58 : f32 to vector<8x128xf32>
    %304 = arith.addf %303, %302 : vector<8x128xf32>
    %305 = arith.divf %303, %304 : vector<8x128xf32>
    %306 = vector.extract_strided_slice %288 {offsets = [0, 256], sizes = [8, 128], strides = [1, 1]} : vector<8x384xf32> to vector<8x128xf32>
    %307 = vector.extract_strided_slice %289 {offsets = [0, 256], sizes = [8, 128], strides = [1, 1]} : vector<8x384xf32> to vector<8x128xf32>
    %308 = vector.broadcast %256 : vector<1x128xf32> to vector<8x128xf32>
    %309 = arith.addf %307, %308 : vector<8x128xf32>
    %310 = arith.mulf %297, %309 : vector<8x128xf32>
    %311 = arith.addf %306, %310 : vector<8x128xf32>
    %312 = math.tanh %311 : vector<8x128xf32>
    %cst_59 = arith.constant 1.000000e+00 : f32
    %313 = vector.broadcast %cst_59 : f32 to vector<8x128xf32>
    %314 = arith.subf %313, %305 : vector<8x128xf32>
    %315 = arith.mulf %314, %312 : vector<8x128xf32>
    %316 = arith.mulf %305, %287 : vector<8x128xf32>
    %317 = arith.addf %315, %316 : vector<8x128xf32>
    %318 = vector.extract_strided_slice %254 {offsets = [16, 0], sizes = [8, 384], strides = [1, 1]} : vector<64x384xf32> to vector<8x384xf32>
    %cst_60 = arith.constant dense<0.000000e+00> : vector<8x384xf32>
    %319 = tpu.matmul %317, %255, %cst_60 {dimension_numbers = #tpu.dot_dimension_numbers<[1], [0], [0], [1], [0, 0, 1, 1], [], []>} : vector<8x128xf32>, vector<128x384xf32>, vector<8x384xf32> -> vector<8x384xf32>
    %320 = vector.extract_strided_slice %318 {offsets = [0, 0], sizes = [8, 128], strides = [1, 1]} : vector<8x384xf32> to vector<8x128xf32>
    %321 = vector.extract_strided_slice %319 {offsets = [0, 0], sizes = [8, 128], strides = [1, 1]} : vector<8x384xf32> to vector<8x128xf32>
    %322 = arith.addf %320, %321 : vector<8x128xf32>
    %323 = arith.negf %322 : vector<8x128xf32>
    %324 = math.exp %323 : vector<8x128xf32>
    %cst_61 = arith.constant 1.000000e+00 : f32
    %325 = vector.broadcast %cst_61 : f32 to vector<8x128xf32>
    %326 = arith.addf %325, %324 : vector<8x128xf32>
    %327 = arith.divf %325, %326 : vector<8x128xf32>
    %328 = vector.extract_strided_slice %318 {offsets = [0, 128], sizes = [8, 128], strides = [1, 1]} : vector<8x384xf32> to vector<8x128xf32>
    %329 = vector.extract_strided_slice %319 {offsets = [0, 128], sizes = [8, 128], strides = [1, 1]} : vector<8x384xf32> to vector<8x128xf32>
    %330 = arith.addf %328, %329 : vector<8x128xf32>
    %331 = arith.negf %330 : vector<8x128xf32>
    %332 = math.exp %331 : vector<8x128xf32>
    %cst_62 = arith.constant 1.000000e+00 : f32
    %333 = vector.broadcast %cst_62 : f32 to vector<8x128xf32>
    %334 = arith.addf %333, %332 : vector<8x128xf32>
    %335 = arith.divf %333, %334 : vector<8x128xf32>
    %336 = vector.extract_strided_slice %318 {offsets = [0, 256], sizes = [8, 128], strides = [1, 1]} : vector<8x384xf32> to vector<8x128xf32>
    %337 = vector.extract_strided_slice %319 {offsets = [0, 256], sizes = [8, 128], strides = [1, 1]} : vector<8x384xf32> to vector<8x128xf32>
    %338 = vector.broadcast %256 : vector<1x128xf32> to vector<8x128xf32>
    %339 = arith.addf %337, %338 : vector<8x128xf32>
    %340 = arith.mulf %327, %339 : vector<8x128xf32>
    %341 = arith.addf %336, %340 : vector<8x128xf32>
    %342 = math.tanh %341 : vector<8x128xf32>
    %cst_63 = arith.constant 1.000000e+00 : f32
    %343 = vector.broadcast %cst_63 : f32 to vector<8x128xf32>
    %344 = arith.subf %343, %335 : vector<8x128xf32>
    %345 = arith.mulf %344, %342 : vector<8x128xf32>
    %346 = arith.mulf %335, %317 : vector<8x128xf32>
    %347 = arith.addf %345, %346 : vector<8x128xf32>
    %348 = vector.extract_strided_slice %254 {offsets = [24, 0], sizes = [8, 384], strides = [1, 1]} : vector<64x384xf32> to vector<8x384xf32>
    %cst_64 = arith.constant dense<0.000000e+00> : vector<8x384xf32>
    %349 = tpu.matmul %347, %255, %cst_64 {dimension_numbers = #tpu.dot_dimension_numbers<[1], [0], [0], [1], [0, 0, 1, 1], [], []>} : vector<8x128xf32>, vector<128x384xf32>, vector<8x384xf32> -> vector<8x384xf32>
    %350 = vector.extract_strided_slice %348 {offsets = [0, 0], sizes = [8, 128], strides = [1, 1]} : vector<8x384xf32> to vector<8x128xf32>
    %351 = vector.extract_strided_slice %349 {offsets = [0, 0], sizes = [8, 128], strides = [1, 1]} : vector<8x384xf32> to vector<8x128xf32>
    %352 = arith.addf %350, %351 : vector<8x128xf32>
    %353 = arith.negf %352 : vector<8x128xf32>
    %354 = math.exp %353 : vector<8x128xf32>
    %cst_65 = arith.constant 1.000000e+00 : f32
    %355 = vector.broadcast %cst_65 : f32 to vector<8x128xf32>
    %356 = arith.addf %355, %354 : vector<8x128xf32>
    %357 = arith.divf %355, %356 : vector<8x128xf32>
    %358 = vector.extract_strided_slice %348 {offsets = [0, 128], sizes = [8, 128], strides = [1, 1]} : vector<8x384xf32> to vector<8x128xf32>
    %359 = vector.extract_strided_slice %349 {offsets = [0, 128], sizes = [8, 128], strides = [1, 1]} : vector<8x384xf32> to vector<8x128xf32>
    %360 = arith.addf %358, %359 : vector<8x128xf32>
    %361 = arith.negf %360 : vector<8x128xf32>
    %362 = math.exp %361 : vector<8x128xf32>
    %cst_66 = arith.constant 1.000000e+00 : f32
    %363 = vector.broadcast %cst_66 : f32 to vector<8x128xf32>
    %364 = arith.addf %363, %362 : vector<8x128xf32>
    %365 = arith.divf %363, %364 : vector<8x128xf32>
    %366 = vector.extract_strided_slice %348 {offsets = [0, 256], sizes = [8, 128], strides = [1, 1]} : vector<8x384xf32> to vector<8x128xf32>
    %367 = vector.extract_strided_slice %349 {offsets = [0, 256], sizes = [8, 128], strides = [1, 1]} : vector<8x384xf32> to vector<8x128xf32>
    %368 = vector.broadcast %256 : vector<1x128xf32> to vector<8x128xf32>
    %369 = arith.addf %367, %368 : vector<8x128xf32>
    %370 = arith.mulf %357, %369 : vector<8x128xf32>
    %371 = arith.addf %366, %370 : vector<8x128xf32>
    %372 = math.tanh %371 : vector<8x128xf32>
    %cst_67 = arith.constant 1.000000e+00 : f32
    %373 = vector.broadcast %cst_67 : f32 to vector<8x128xf32>
    %374 = arith.subf %373, %365 : vector<8x128xf32>
    %375 = arith.mulf %374, %372 : vector<8x128xf32>
    %376 = arith.mulf %365, %347 : vector<8x128xf32>
    %377 = arith.addf %375, %376 : vector<8x128xf32>
    %378 = vector.extract_strided_slice %254 {offsets = [32, 0], sizes = [8, 384], strides = [1, 1]} : vector<64x384xf32> to vector<8x384xf32>
    %cst_68 = arith.constant dense<0.000000e+00> : vector<8x384xf32>
    %379 = tpu.matmul %377, %255, %cst_68 {dimension_numbers = #tpu.dot_dimension_numbers<[1], [0], [0], [1], [0, 0, 1, 1], [], []>} : vector<8x128xf32>, vector<128x384xf32>, vector<8x384xf32> -> vector<8x384xf32>
    %380 = vector.extract_strided_slice %378 {offsets = [0, 0], sizes = [8, 128], strides = [1, 1]} : vector<8x384xf32> to vector<8x128xf32>
    %381 = vector.extract_strided_slice %379 {offsets = [0, 0], sizes = [8, 128], strides = [1, 1]} : vector<8x384xf32> to vector<8x128xf32>
    %382 = arith.addf %380, %381 : vector<8x128xf32>
    %383 = arith.negf %382 : vector<8x128xf32>
    %384 = math.exp %383 : vector<8x128xf32>
    %cst_69 = arith.constant 1.000000e+00 : f32
    %385 = vector.broadcast %cst_69 : f32 to vector<8x128xf32>
    %386 = arith.addf %385, %384 : vector<8x128xf32>
    %387 = arith.divf %385, %386 : vector<8x128xf32>
    %388 = vector.extract_strided_slice %378 {offsets = [0, 128], sizes = [8, 128], strides = [1, 1]} : vector<8x384xf32> to vector<8x128xf32>
    %389 = vector.extract_strided_slice %379 {offsets = [0, 128], sizes = [8, 128], strides = [1, 1]} : vector<8x384xf32> to vector<8x128xf32>
    %390 = arith.addf %388, %389 : vector<8x128xf32>
    %391 = arith.negf %390 : vector<8x128xf32>
    %392 = math.exp %391 : vector<8x128xf32>
    %cst_70 = arith.constant 1.000000e+00 : f32
    %393 = vector.broadcast %cst_70 : f32 to vector<8x128xf32>
    %394 = arith.addf %393, %392 : vector<8x128xf32>
    %395 = arith.divf %393, %394 : vector<8x128xf32>
    %396 = vector.extract_strided_slice %378 {offsets = [0, 256], sizes = [8, 128], strides = [1, 1]} : vector<8x384xf32> to vector<8x128xf32>
    %397 = vector.extract_strided_slice %379 {offsets = [0, 256], sizes = [8, 128], strides = [1, 1]} : vector<8x384xf32> to vector<8x128xf32>
    %398 = vector.broadcast %256 : vector<1x128xf32> to vector<8x128xf32>
    %399 = arith.addf %397, %398 : vector<8x128xf32>
    %400 = arith.mulf %387, %399 : vector<8x128xf32>
    %401 = arith.addf %396, %400 : vector<8x128xf32>
    %402 = math.tanh %401 : vector<8x128xf32>
    %cst_71 = arith.constant 1.000000e+00 : f32
    %403 = vector.broadcast %cst_71 : f32 to vector<8x128xf32>
    %404 = arith.subf %403, %395 : vector<8x128xf32>
    %405 = arith.mulf %404, %402 : vector<8x128xf32>
    %406 = arith.mulf %395, %377 : vector<8x128xf32>
    %407 = arith.addf %405, %406 : vector<8x128xf32>
    %408 = vector.extract_strided_slice %254 {offsets = [40, 0], sizes = [8, 384], strides = [1, 1]} : vector<64x384xf32> to vector<8x384xf32>
    %cst_72 = arith.constant dense<0.000000e+00> : vector<8x384xf32>
    %409 = tpu.matmul %407, %255, %cst_72 {dimension_numbers = #tpu.dot_dimension_numbers<[1], [0], [0], [1], [0, 0, 1, 1], [], []>} : vector<8x128xf32>, vector<128x384xf32>, vector<8x384xf32> -> vector<8x384xf32>
    %410 = vector.extract_strided_slice %408 {offsets = [0, 0], sizes = [8, 128], strides = [1, 1]} : vector<8x384xf32> to vector<8x128xf32>
    %411 = vector.extract_strided_slice %409 {offsets = [0, 0], sizes = [8, 128], strides = [1, 1]} : vector<8x384xf32> to vector<8x128xf32>
    %412 = arith.addf %410, %411 : vector<8x128xf32>
    %413 = arith.negf %412 : vector<8x128xf32>
    %414 = math.exp %413 : vector<8x128xf32>
    %cst_73 = arith.constant 1.000000e+00 : f32
    %415 = vector.broadcast %cst_73 : f32 to vector<8x128xf32>
    %416 = arith.addf %415, %414 : vector<8x128xf32>
    %417 = arith.divf %415, %416 : vector<8x128xf32>
    %418 = vector.extract_strided_slice %408 {offsets = [0, 128], sizes = [8, 128], strides = [1, 1]} : vector<8x384xf32> to vector<8x128xf32>
    %419 = vector.extract_strided_slice %409 {offsets = [0, 128], sizes = [8, 128], strides = [1, 1]} : vector<8x384xf32> to vector<8x128xf32>
    %420 = arith.addf %418, %419 : vector<8x128xf32>
    %421 = arith.negf %420 : vector<8x128xf32>
    %422 = math.exp %421 : vector<8x128xf32>
    %cst_74 = arith.constant 1.000000e+00 : f32
    %423 = vector.broadcast %cst_74 : f32 to vector<8x128xf32>
    %424 = arith.addf %423, %422 : vector<8x128xf32>
    %425 = arith.divf %423, %424 : vector<8x128xf32>
    %426 = vector.extract_strided_slice %408 {offsets = [0, 256], sizes = [8, 128], strides = [1, 1]} : vector<8x384xf32> to vector<8x128xf32>
    %427 = vector.extract_strided_slice %409 {offsets = [0, 256], sizes = [8, 128], strides = [1, 1]} : vector<8x384xf32> to vector<8x128xf32>
    %428 = vector.broadcast %256 : vector<1x128xf32> to vector<8x128xf32>
    %429 = arith.addf %427, %428 : vector<8x128xf32>
    %430 = arith.mulf %417, %429 : vector<8x128xf32>
    %431 = arith.addf %426, %430 : vector<8x128xf32>
    %432 = math.tanh %431 : vector<8x128xf32>
    %cst_75 = arith.constant 1.000000e+00 : f32
    %433 = vector.broadcast %cst_75 : f32 to vector<8x128xf32>
    %434 = arith.subf %433, %425 : vector<8x128xf32>
    %435 = arith.mulf %434, %432 : vector<8x128xf32>
    %436 = arith.mulf %425, %407 : vector<8x128xf32>
    %437 = arith.addf %435, %436 : vector<8x128xf32>
    %438 = vector.extract_strided_slice %254 {offsets = [48, 0], sizes = [8, 384], strides = [1, 1]} : vector<64x384xf32> to vector<8x384xf32>
    %cst_76 = arith.constant dense<0.000000e+00> : vector<8x384xf32>
    %439 = tpu.matmul %437, %255, %cst_76 {dimension_numbers = #tpu.dot_dimension_numbers<[1], [0], [0], [1], [0, 0, 1, 1], [], []>} : vector<8x128xf32>, vector<128x384xf32>, vector<8x384xf32> -> vector<8x384xf32>
    %440 = vector.extract_strided_slice %438 {offsets = [0, 0], sizes = [8, 128], strides = [1, 1]} : vector<8x384xf32> to vector<8x128xf32>
    %441 = vector.extract_strided_slice %439 {offsets = [0, 0], sizes = [8, 128], strides = [1, 1]} : vector<8x384xf32> to vector<8x128xf32>
    %442 = arith.addf %440, %441 : vector<8x128xf32>
    %443 = arith.negf %442 : vector<8x128xf32>
    %444 = math.exp %443 : vector<8x128xf32>
    %cst_77 = arith.constant 1.000000e+00 : f32
    %445 = vector.broadcast %cst_77 : f32 to vector<8x128xf32>
    %446 = arith.addf %445, %444 : vector<8x128xf32>
    %447 = arith.divf %445, %446 : vector<8x128xf32>
    %448 = vector.extract_strided_slice %438 {offsets = [0, 128], sizes = [8, 128], strides = [1, 1]} : vector<8x384xf32> to vector<8x128xf32>
    %449 = vector.extract_strided_slice %439 {offsets = [0, 128], sizes = [8, 128], strides = [1, 1]} : vector<8x384xf32> to vector<8x128xf32>
    %450 = arith.addf %448, %449 : vector<8x128xf32>
    %451 = arith.negf %450 : vector<8x128xf32>
    %452 = math.exp %451 : vector<8x128xf32>
    %cst_78 = arith.constant 1.000000e+00 : f32
    %453 = vector.broadcast %cst_78 : f32 to vector<8x128xf32>
    %454 = arith.addf %453, %452 : vector<8x128xf32>
    %455 = arith.divf %453, %454 : vector<8x128xf32>
    %456 = vector.extract_strided_slice %438 {offsets = [0, 256], sizes = [8, 128], strides = [1, 1]} : vector<8x384xf32> to vector<8x128xf32>
    %457 = vector.extract_strided_slice %439 {offsets = [0, 256], sizes = [8, 128], strides = [1, 1]} : vector<8x384xf32> to vector<8x128xf32>
    %458 = vector.broadcast %256 : vector<1x128xf32> to vector<8x128xf32>
    %459 = arith.addf %457, %458 : vector<8x128xf32>
    %460 = arith.mulf %447, %459 : vector<8x128xf32>
    %461 = arith.addf %456, %460 : vector<8x128xf32>
    %462 = math.tanh %461 : vector<8x128xf32>
    %cst_79 = arith.constant 1.000000e+00 : f32
    %463 = vector.broadcast %cst_79 : f32 to vector<8x128xf32>
    %464 = arith.subf %463, %455 : vector<8x128xf32>
    %465 = arith.mulf %464, %462 : vector<8x128xf32>
    %466 = arith.mulf %455, %437 : vector<8x128xf32>
    %467 = arith.addf %465, %466 : vector<8x128xf32>
    %468 = vector.extract_strided_slice %254 {offsets = [56, 0], sizes = [8, 384], strides = [1, 1]} : vector<64x384xf32> to vector<8x384xf32>
    %cst_80 = arith.constant dense<0.000000e+00> : vector<8x384xf32>
    %469 = tpu.matmul %467, %255, %cst_80 {dimension_numbers = #tpu.dot_dimension_numbers<[1], [0], [0], [1], [0, 0, 1, 1], [], []>} : vector<8x128xf32>, vector<128x384xf32>, vector<8x384xf32> -> vector<8x384xf32>
    %470 = vector.extract_strided_slice %468 {offsets = [0, 0], sizes = [8, 128], strides = [1, 1]} : vector<8x384xf32> to vector<8x128xf32>
    %471 = vector.extract_strided_slice %469 {offsets = [0, 0], sizes = [8, 128], strides = [1, 1]} : vector<8x384xf32> to vector<8x128xf32>
    %472 = arith.addf %470, %471 : vector<8x128xf32>
    %473 = arith.negf %472 : vector<8x128xf32>
    %474 = math.exp %473 : vector<8x128xf32>
    %cst_81 = arith.constant 1.000000e+00 : f32
    %475 = vector.broadcast %cst_81 : f32 to vector<8x128xf32>
    %476 = arith.addf %475, %474 : vector<8x128xf32>
    %477 = arith.divf %475, %476 : vector<8x128xf32>
    %478 = vector.extract_strided_slice %468 {offsets = [0, 128], sizes = [8, 128], strides = [1, 1]} : vector<8x384xf32> to vector<8x128xf32>
    %479 = vector.extract_strided_slice %469 {offsets = [0, 128], sizes = [8, 128], strides = [1, 1]} : vector<8x384xf32> to vector<8x128xf32>
    %480 = arith.addf %478, %479 : vector<8x128xf32>
    %481 = arith.negf %480 : vector<8x128xf32>
    %482 = math.exp %481 : vector<8x128xf32>
    %cst_82 = arith.constant 1.000000e+00 : f32
    %483 = vector.broadcast %cst_82 : f32 to vector<8x128xf32>
    %484 = arith.addf %483, %482 : vector<8x128xf32>
    %485 = arith.divf %483, %484 : vector<8x128xf32>
    %486 = vector.extract_strided_slice %468 {offsets = [0, 256], sizes = [8, 128], strides = [1, 1]} : vector<8x384xf32> to vector<8x128xf32>
    %487 = vector.extract_strided_slice %469 {offsets = [0, 256], sizes = [8, 128], strides = [1, 1]} : vector<8x384xf32> to vector<8x128xf32>
    %488 = vector.broadcast %256 : vector<1x128xf32> to vector<8x128xf32>
    %489 = arith.addf %487, %488 : vector<8x128xf32>
    %490 = arith.mulf %477, %489 : vector<8x128xf32>
    %491 = arith.addf %486, %490 : vector<8x128xf32>
    %492 = math.tanh %491 : vector<8x128xf32>
    %cst_83 = arith.constant 1.000000e+00 : f32
    %493 = vector.broadcast %cst_83 : f32 to vector<8x128xf32>
    %494 = arith.subf %493, %485 : vector<8x128xf32>
    %495 = arith.mulf %494, %492 : vector<8x128xf32>
    %496 = arith.mulf %485, %467 : vector<8x128xf32>
    %497 = arith.addf %495, %496 : vector<8x128xf32>
    %c0_84 = arith.constant 0 : index
    %c0_85 = arith.constant 0 : index
    %498 = vector.load %arg9[%c0_84, %c0_85] : memref<128x128xf32, #tpu.memory_space<vmem>>, vector<128x128xf32>
    %cst_86 = arith.constant dense<0.000000e+00> : vector<8x128xf32>
    %499 = tpu.matmul %497, %498, %cst_86 {dimension_numbers = #tpu.dot_dimension_numbers<[1], [0], [0], [1], [0, 0, 1, 1], [], []>} : vector<8x128xf32>, vector<128x128xf32>, vector<8x128xf32> -> vector<8x128xf32>
    %c0_87 = arith.constant 0 : index
    %c0_88 = arith.constant 0 : index
    %500 = vector.load %arg10[%c0_87, %c0_88] : memref<1x128xf32, #tpu.memory_space<vmem>>, vector<1x128xf32>
    %501 = vector.broadcast %500 : vector<1x128xf32> to vector<8x128xf32>
    %502 = arith.addf %499, %501 : vector<8x128xf32>
    %503 = arith.negf %502 : vector<8x128xf32>
    %504 = math.exp %503 : vector<8x128xf32>
    %cst_89 = arith.constant 1.000000e+00 : f32
    %505 = vector.broadcast %cst_89 : f32 to vector<8x128xf32>
    %506 = arith.addf %505, %504 : vector<8x128xf32>
    %507 = arith.divf %505, %506 : vector<8x128xf32>
    %c0_90 = arith.constant 0 : index
    %c0_91 = arith.constant 0 : index
    %508 = vector.load %arg11[%c0_90, %c0_91] : memref<8x128xf32, #tpu.memory_space<vmem>>, vector<8x128xf32>
    tpu.vector_store %arg11[%c0_90, %c0_91], %507 {strides = array<i32>} : memref<8x128xf32, #tpu.memory_space<vmem>>, vector<8x128xf32>,
    return
  }
}

</mosaic_0001>

<bundles_post_ra>
// kernel: tpu_custom_call.1
= control target key start
LH: loop header
LB: loop body
LE: loop exit
PB: predicated region body
PF: predicated region fallthrough
CT: control target
= control target key end

     0   :  { %16 = vsyncpa [#allocation3], 0  ;;  %s6853_s0 = inlined_call_operand.vmem [shape: f32[64,16], index: 0, kind: input, shape index: {}]   ;;  %s6854_s1 = inlined_call_operand.vmem [shape: f32[16,384], index: 1, kind: input, shape index: {}]   ;;  %s6855_s2 = inlined_call_operand.hbm [shape: f32[128,384], index: 2, kind: input, shape index: {}]   ;;  %s6856_s3 = inlined_call_operand.vmem [shape: f32[1,384], index: 3, kind: input, shape index: {}]   ;;  %s6857_s4 = inlined_call_operand.vmem [shape: f32[1,128], index: 4, kind: input, shape index: {}]   ;;  %s6858_s5 = inlined_call_operand.hbm [shape: f32[128,384], index: 5, kind: input, shape index: {}]   ;;  %s6859_s6 = inlined_call_operand.hbm [shape: f32[128,384], index: 6, kind: input, shape index: {}]   ;;  %s6860_s7 = inlined_call_operand.vmem [shape: f32[1,384], index: 7, kind: input, shape index: {}]   ;;  %s6861_s8 = inlined_call_operand.vmem [shape: f32[1,128], index: 8, kind: input, shape index: {}]   ;;  %s6862_s9 = inlined_call_operand.hbm [shape: f32[128,128], index: 9, kind: input, shape index: {}]   ;;  %s6863_s10 = inlined_call_operand.vmem [shape: f32[1,128], index: 10, kind: input, shape index: {}]   ;;  %s6864_s11 = inlined_call_operand.hbm [shape: f32[8,128], index: 11, kind: output, shape index: {}]  }
   0x1   :  { %17 = vsyncpa [#allocation6], 0 }
   0x2   :  { %18 = vsyncpa [#allocation9], 0 }
   0x3   :  { %19 = vsyncpa [#allocation4], 0  ;;  %s4897_s17 = smov [#allocation5]   ;;  %s4898_s19 = smov [#allocation2]  }
   0x4   :  { %s45_s18 = sshll.u32 %s4897_s17, 4  ;;  %s29_s20 = sshll.u32 %s4898_s19, 4  ;;  %s46_s18 = int_to_ptr.vmem [resolvable:$true] %s45_s18  ;;  %s30_s20 = int_to_ptr.vmem [resolvable:$true] %s29_s20 }
   0x5   :  { %s4797_s21 = scalar_lea.vmem %s46_s18, 6144  ;;  %p4802_p1 = scmp.lt.s32.totalorder %s46_s18, %s46_s18 }
   0x6   :  { %p4798_p0 = scmp.ne.s32.totalorder %s46_s18, %s4797_s21  ;;  %p4803_p2 = scmp.lt.s32.totalorder %s4797_s21, %s4797_s21 }
   0x8   :  { %p4804_p3 = por %p4803_p2, %p4802_p1 }
   0xa   :  { %p4805_p4 = pnand %p4804_p3, %p4798_p0 }
   0xc   :  { %4808 = shalt.err (!%p4805_p4)
}
   0xd   :  { %s4899_s22 = smov 384   ;;  %s4900_s23 = smov 24  }
   0xe   :  { %51 = dma.hbm_to_vmem [thread:$0]  %s6858_s5, 6144, %s46_s18, [#allocation6], %s4899_s22, %s4899_s22, %s4900_s23  }
   0xf   :  { %s4817_s26 = scalar_lea.vmem %s30_s20, 6144  ;;  %p4822_p6 = scmp.lt.s32.totalorder %s30_s20, %s30_s20 }
  0x10   :  { %p4818_p5 = scmp.ne.s32.totalorder %s30_s20, %s4817_s26  ;;  %p4823_p7 = scmp.lt.s32.totalorder %s4817_s26, %s4817_s26 }
  0x12   :  { %p4824_p8 = por %p4823_p7, %p4822_p6 }
  0x14   :  { %p4825_p9 = pnand %p4824_p8, %p4818_p5 }
  0x16   :  { %4828 = shalt.err (!%p4825_p9)
}
  0x17   :  { %35 = dma.hbm_to_vmem [thread:$0]  %s6855_s2, 6144, %s30_s20, [#allocation3], %s4899_s22, %s4899_s22, %s4900_s23  }
  0x18   :  { %s4901_s29 = smov [#allocation7]   ;;  %s4902_s12 = smov [#allocation8]  }
  0x19   :  { %s57_s30 = sshll.u32 %s4901_s29, 4  ;;  %s73_s13 = sshll.u32 %s4902_s12, 4  ;;  %s58_s30 = int_to_ptr.vmem [resolvable:$true] %s57_s30  ;;  %s74_s13 = int_to_ptr.vmem [resolvable:$true] %s73_s13 }
  0x1a   :  { %s4837_s14 = scalar_lea.vmem %s58_s30, 6144  ;;  %p4842_p11 = scmp.lt.s32.totalorder %s58_s30, %s58_s30 }
  0x1b   :  { %p4838_p10 = scmp.ne.s32.totalorder %s58_s30, %s4837_s14  ;;  %p4843_p12 = scmp.lt.s32.totalorder %s4837_s14, %s4837_s14 }
  0x1d   :  { %p4844_p13 = por %p4843_p12, %p4842_p11 }
  0x1f   :  { %p4845_p0 = pnand %p4844_p13, %p4838_p10 }
  0x21   :  { %4848 = shalt.err (!%p4845_p0)
}
  0x22   :  { %63 = dma.hbm_to_vmem [thread:$0]  %s6859_s6, 6144, %s58_s30, [#allocation6], %s4899_s22, %s4899_s22, %s4900_s23  }
  0x23   :  { %s4857_s16 = scalar_lea.vmem %s74_s13, 2048  ;;  %p4862_p2 = scmp.lt.s32.totalorder %s74_s13, %s74_s13 }
  0x24   :  { %p4858_p1 = scmp.ne.s32.totalorder %s74_s13, %s4857_s16  ;;  %p4863_p3 = scmp.lt.s32.totalorder %s4857_s16, %s4857_s16 }
  0x26   :  { %p4864_p4 = por %p4863_p3, %p4862_p2 }
  0x28   :  { %p4865_p5 = pnand %p4864_p4, %p4858_p1 }
  0x2a   :  { %4868 = shalt.err (!%p4865_p5)
}
  0x2b   :  { %s4903_s2 = smov 128   ;;  %s4904_s17 = smov 8  }
  0x2c   :  { %79 = dma.hbm_to_vmem [thread:$0]  %s6862_s9, 2048, %s74_s13, [#allocation9], %s4903_s2, %s4903_s2, %s4904_s17  }
  0x2d   :  { %4889 = dma.done.wait [#allocation3], 6144  }
  0x2e   :  { %4890 = vsyncadd [#allocation3], 4294961152 }
  0x2f   :  { %4891 = dma.done.wait [#allocation6], 12288  }
  0x30   :  { %4892 = vsyncadd [#allocation6], 4294955008 }
  0x31   :  { %4893 = dma.done.wait [#allocation9], 2048  }
  0x32   :  { %4894 = vsyncadd [#allocation9], 4294965248  ;;  %v6865_v0 = vmov 0.0   ;;  %v106_v1 = vld [vmem:[%s6854_s1 + $0x20] sm:$0xff]  ;;  %v105_v2 = vld [vmem:[%s6854_s1 + $0x18] sm:$0xff]  ;;  %vm125_vm0 = vcmask 130048   ;;  %v110_v63 = vlaneseq }
  0x33   :  { %214 = vmatprep.mubr.f32.mxu0 %v6865_v0  ;;  %v103_v3 = vld [vmem:[%s6854_s1 + $0x8] sm:$0xff]  ;;  %178 = vmatprep.subr.mxu0 %v106_v1  ;;  %v102_v4 = vld [vmem:[%s6854_s1] sm:$0xff]  ;;  %v4996_v6 = vld [vmem:[#allocation2 + $0x170] sm:$0xff]  ;;  %vm4906_vm1 = vmmov 0   ;;  %s4907_s12 = smov [#allocation10]  }
  0x34   :  { %v94_v5 = vld [vmem:[%s6853_s0] sm:$0xff]  ;;  %179 = vmatpush1.msra.mxu0 %v105_v2  ;;  %6916 = vst [vmem:[#allocation15_spill] sm:$0xff] %v4996_v6  ;;  %v4999_v7 = vld [vmem:[#allocation2 + $0x168] sm:$0xff]  ;;  %v5001_v8 = vld [vmem:[#allocation2 + $0x158] sm:$0xff]  ;;  %v5296_v1 = vshrl.u32 %v110_v63, 7  ;;  %s3475_s13 = sshll.u32 %s4907_s12, 4  ;;  %s3476_s13 = int_to_ptr.vmem [resolvable:$true] %s3475_s13 }
  0x35   :  { %3865 = vmatprep.mubr.msk.f32.mxu1 %vm125_vm0, %v94_v5  ;;  %180 = vmatprep.subr.mxu0 %v103_v3  ;;  %v5005_v9 = vld [vmem:[#allocation2 + $0x150] sm:$0xff]  ;;  %v95_v10 = vld [vmem:[%s6853_s0 + $0x8] sm:$0xff]  ;;  %v5012_v11 = vld [vmem:[#allocation2 + $0x140] sm:$0xff]  ;;  %s4869_s14 = scalar_lea.vmem %s3476_s13, 128  ;;  %p4874_p7 = scmp.lt.s32.totalorder %s3476_s13, %s3476_s13 }
  0x36   :  { %181 = vmatpush1.msra.mxu0 %v102_v4  ;;  %v5015_v12 = vld [vmem:[#allocation2 + $0x138] sm:$0xff]  ;;  %v5018_v13 = vld [vmem:[#allocation2 + $0x128] sm:$0xff]  ;;  %v5022_v14 = vld [vmem:[#allocation2 + $0x120] sm:$0xff]  ;;  %6921 = vst [vmem:[#allocation20_spill] sm:$0xff] %v5296_v1  ;;  %v6873_v2 = vsub.s32 0, %v5296_v1  ;;  %p4870_p6 = scmp.ne.s32.totalorder %s3476_s13, %s4869_s14  ;;  %p4875_p8 = scmp.lt.s32.totalorder %s4869_s14, %s4869_s14 }
  0x37   :  { %3486 = vmatmul.mubr.msk.f32.vlgmr.msra.gmra.mxu0 %vm125_vm0, %v94_v5  ;;  %417 = vmatprep.subr.mxu0 %v4996_v6  ;;  %v5029_v15 = vld [vmem:[%s6853_s0 + $0x10] sm:$0xff]  ;;  %v5034_v17 = vld [vmem:[#allocation2 + $0x108] sm:$0xff]  ;;  %v5037_v18 = vld [vmem:[#allocation2 + $0xf8] sm:$0xff]  ;;  %v6876_v5 = vsub.s32 1, %v5296_v1 }
  0x38   :  { %418 = vmatpush1.msra.mxu0 %v4999_v7  ;;  %220 = vmatprep.mubr.f32.mxu0 %v6865_v0  ;;  %v5031_v16 = vld [vmem:[#allocation2 + $0x110] sm:$0xff]  ;;  %v107_v19 = vld [vmem:[%s6854_s1 + $0x28] sm:$0xff]  ;;  %v5052_v21 = vld [vmem:[%s6853_s0 + $0x18] sm:$0xff]  ;;  %p4876_p9 = por %p4875_p8, %p4874_p7 }
  0x39   :  { %419 = vmatprep.subr.mxu0 %v5001_v8  ;;  %v5045_v20 = vld [vmem:[#allocation2 + $0xf0] sm:$0xff]  ;;  %v5054_v22 = vld [vmem:[#allocation2 + $0xe0] sm:$0xff]  ;;  %v5057_v23 = vld [vmem:[#allocation2 + $0xd8] sm:$0xff]  ;;  %3861 = vmatprep.subr.mxu1 %v107_v19 }
  0x3a   :  { %420 = vmatpush1.msra.mxu0 %v5005_v9  ;;  %v5060_v24 = vld [vmem:[#allocation2 + $0xc8] sm:$0xff]  ;;  %3862 = vmatpush3.msra.mxu1 %v107_v19  ;;  %v104_v25 = vld [vmem:[%s6854_s1 + $0x10] sm:$0xff]  ;;  %v5068_v26 = vld [vmem:[#allocation2 + $0xc0] sm:$0xff]  ;;  %p4877_p10 = pnand %p4876_p9, %p4870_p6 }
  0x3b   :  { %3487 = vmatmul.mubr.msk.f32.gmra.mxu0 %vm125_vm0, %v95_v10  ;;  %421 = vmatprep.subr.mxu0 %v5012_v11  ;;  %v5075_v27 = vld [vmem:[%s6853_s0 + $0x20] sm:$0xff]  ;;  %v5077_v28 = vld [vmem:[#allocation2 + $0xb0] sm:$0xff]  ;;  %v5080_v29 = vld [vmem:[#allocation2 + $0xa8] sm:$0xff] }
  0x3c   :  { %422 = vmatpush1.msra.mxu0 %v5015_v12  ;;  %226 = vmatprep.mubr.f32.mxu0 %v6865_v0  ;;  %v5083_v30 = vld [vmem:[#allocation2 + $0x98] sm:$0xff]  ;;  %v5088_v31 = vld [vmem:[#allocation2 + $0x90] sm:$0xff]  ;;  %v5095_v32 = vld [vmem:[%s6853_s0 + $0x28] sm:$0xff] }
  0x3d   :  { %423 = vmatprep.subr.mxu0 %v5018_v13  ;;  %3863 = vmatprep.subr.mxu1 %v104_v25  ;;  %v5097_v33 = vld [vmem:[#allocation2 + $0x80] sm:$0xff]  ;;  %v5100_v34 = vld [vmem:[#allocation2 + $0x78] sm:$0xff]  ;;  %v5104_v35 = vld [vmem:[#allocation2 + $0x68] sm:$0xff] }
  0x3e   :  { %424 = vmatpush1.msra.mxu0 %v5022_v14  ;;  %3864 = vmatpush3.msra.mxu1 %v104_v25  ;;  %v5107_v36 = vld [vmem:[#allocation2 + $0x178] sm:$0xff]  ;;  %v5112_v37 = vld [vmem:[#allocation2 + $0x60] sm:$0xff]  ;;  %v100_v38 = vld [vmem:[%s6853_s0 + $0x30] sm:$0xff] }
  0x3f   :  { %3488 = vmatmul.mubr.msk.f32.gmra.mxu0 %vm125_vm0, %v5029_v15  ;;  %425 = vmatprep.subr.mxu0 %v5031_v16  ;;  %v5119_v39 = vld [vmem:[#allocation2 + $0x50] sm:$0xff]  ;;  %v5122_v40 = vld [vmem:[#allocation2 + $0x48] sm:$0xff]  ;;  %v5126_v41 = vld [vmem:[#allocation2 + $0x38] sm:$0xff] }
  0x40   :  { %426 = vmatpush1.msra.mxu0 %v5034_v17  ;;  %232 = vmatprep.mubr.f32.mxu0 %v6865_v0  ;;  %v5129_v42 = vld [vmem:[#allocation2 + $0x160] sm:$0xff]  ;;  %v5133_v43 = vld [vmem:[#allocation2 + $0x30] sm:$0xff]  ;;  %v101_v44 = vld [vmem:[%s6853_s0 + $0x38] sm:$0xff] }
  0x41   :  { %427 = vmatprep.subr.mxu0 %v5037_v18  ;;  %3877 = vmatprep.subr.mxu1 %v6865_v0  ;;  %v5140_v45 = vld [vmem:[#allocation2 + $0x20] sm:$0xff]  ;;  %v5143_v46 = vld [vmem:[#allocation2 + $0x18] sm:$0xff]  ;;  %v5147_v47 = vld [vmem:[#allocation2 + $0x8] sm:$0xff] }
  0x42   :  { %428 = vmatpush1.msra.mxu0 %v5045_v20  ;;  %3866 = vmatmul.mubr.msk.f32.vlgmr.msra.gmra.mxu1 %vm125_vm0, %v95_v10  ;;  %6917 = vst [vmem:[#allocation16_spill] sm:$0xff] %v5147_v47  ;;  %v5150_v48 = vld [vmem:[#allocation2 + $0x148] sm:$0xff]  ;;  %v5154_v49 = vld [vmem:[#allocation2] sm:$0xff]  ;;  %v5158_v50 = vld [vmem:[#allocation2 + $0x130] sm:$0xff] }
  0x43   :  { %3489 = vmatmul.mubr.msk.f32.gmra.mxu0 %vm125_vm0, %v5052_v21  ;;  %429 = vmatprep.subr.mxu0 %v5054_v22  ;;  %6918 = vst [vmem:[#allocation17_spill] sm:$0xff] %v5154_v49  ;;  %v5164_v51 = vld [vmem:[#allocation2 + $0x118] sm:$0xff]  ;;  %v5169_v52 = vld [vmem:[#allocation2 + $0x100] sm:$0xff]  ;;  %v5176_v53 = vld [vmem:[#allocation2 + $0xe8] sm:$0xff] }
  0x44   :  { %430 = vmatpush1.msra.mxu0 %v5057_v23  ;;  %238 = vmatprep.mubr.f32.mxu0 %v6865_v0  ;;  %v5184_v54 = vld [vmem:[#allocation2 + $0xd0] sm:$0xff]  ;;  %v5190_v55 = vld [vmem:[#allocation2 + $0xb8] sm:$0xff]  ;;  %v5197_v56 = vld [vmem:[#allocation2 + $0xa0] sm:$0xff] }
  0x45   :  { %431 = vmatprep.subr.mxu0 %v5060_v24  ;;  %3878 = vmatpush3.msra.mxu1 %v5107_v36  ;;  %v5203_v57 = vld [vmem:[#allocation2 + $0x88] sm:$0xff]  ;;  %v5210_v58 = vld [vmem:[#allocation2 + $0x70] sm:$0xff]  ;;  %v5216_v59 = vld [vmem:[#allocation2 + $0x58] sm:$0xff] }
  0x46   :  { %432 = vmatpush1.msra.mxu0 %v5068_v26  ;;  %3879 = vmatprep.subr.mxu1 %v6865_v0  ;;  %v5222_v60 = vld [vmem:[#allocation2 + $0x40] sm:$0xff]  ;;  %v5228_v61 = vld [vmem:[#allocation2 + $0x28] sm:$0xff]  ;;  %v5234_v62 = vld [vmem:[#allocation2 + $0x10] sm:$0xff] }
  0x47   :  { %3490 = vmatmul.mubr.msk.f32.gmra.mxu0 %vm125_vm0, %v5075_v27  ;;  %433 = vmatprep.subr.mxu0 %v5077_v28  ;;  %6919 = vst [vmem:[#allocation18_spill] sm:$0xff] %v5228_v61  ;;  %6920 = vst [vmem:[#allocation19_spill] sm:$0xff] %v5234_v62  ;;  %v108_v3 = vld [vmem:[%s6856_s3] sm:$0x7] }
  0x48   :  { %434 = vmatpush1.msra.mxu0 %v5080_v29  ;;  %244 = vmatprep.mubr.f32.mxu0 %v6865_v0 }
  0x49   :  { %435 = vmatprep.subr.mxu0 %v5083_v30  ;;  %3880 = vmatpush3.msra.mxu1 %v5129_v42 }
  0x4a   :  { %436 = vmatpush1.msra.mxu0 %v5088_v31  ;;  %3881 = vmatprep.subr.mxu1 %v6865_v0 }
  0x4b   :  { %3491 = vmatmul.mubr.msk.f32.gmra.mxu0 %vm125_vm0, %v5095_v32  ;;  %437 = vmatprep.subr.mxu0 %v5097_v33 }
  0x4c   :  { %438 = vmatpush1.msra.mxu0 %v5100_v34  ;;  %250 = vmatprep.mubr.f32.mxu0 %v6865_v0 }
  0x4d   :  { %439 = vmatprep.subr.mxu0 %v5104_v35  ;;  %3882 = vmatpush3.msra.mxu1 %v5150_v48 }
  0x4e   :  { %440 = vmatpush1.msra.mxu0 %v5112_v37  ;;  %3883 = vmatprep.subr.mxu1 %v6865_v0 }
  0x4f   :  { %3492 = vmatmul.mubr.msk.f32.gmra.mxu0 %vm125_vm0, %v100_v38  ;;  %441 = vmatprep.subr.mxu0 %v5119_v39 }
  0x50   :  { %442 = vmatpush1.msra.mxu0 %v5122_v40  ;;  %256 = vmatprep.mubr.f32.mxu0 %v6865_v0 }
  0x51   :  { %443 = vmatprep.subr.mxu0 %v5126_v41  ;;  %3884 = vmatpush3.msra.mxu1 %v5158_v50 }
  0x52   :  { %444 = vmatpush1.msra.mxu0 %v5133_v43  ;;  %3885 = vmatprep.subr.mxu1 %v6865_v0 }
  0x53   :  { %3493 = vmatmul.mubr.msk.f32.gmra.mxu0 %vm125_vm0, %v101_v44  ;;  %445 = vmatprep.subr.mxu0 %v5140_v45 }
  0x54   :  { %446 = vmatpush1.msra.mxu0 %v5143_v46  ;;  %481 = vmatprep.mubr.f32.mxu0 %v6865_v0 }
  0x55   :  { %447 = vmatprep.subr.mxu0 %v5147_v47  ;;  %3868 = vmatprep.mubr.msk.f32.mxu1 %vm125_vm0, %v5029_v15  ;;  %v113_v15 = vrot.slane %v108_v3, %v6873_v2 }
  0x56   :  { %448 = vmatpush1.msra.mxu0 %v5154_v49  ;;  %3886 = vmatpush3.msra.mxu1 %v5164_v51 }
  0x57   :  { %482 = vmatmul.mubr.f32.vlgmr.msra.gmra.mxu0 %v6865_v0  ;;  %586 = vmatprep.subr.mxu0 %v4996_v6 }
  0x58   :  { %3887 = vmatprep.subr.mxu1 %v6865_v0  ;;  %3869 = vmatmul.mubr.msk.f32.gmra.mxu1 %vm125_vm0, %v5052_v21  ;;  %v117_v21 = vrot.slane %v108_v3, %v6876_v5 }
  0x59   :  { %3888 = vmatpush3.msra.mxu1 %v5169_v52  ;;  %3871 = vmatprep.mubr.msk.f32.mxu1 %vm125_vm0, %v5075_v27 }
  0x5a   :  { %3889 = vmatprep.subr.mxu1 %v6865_v0  ;;  %587 = vmatpush1.msra.mxu0 %v4999_v7 }
  0x5b   :  { %3890 = vmatpush3.msra.mxu1 %v5176_v53  ;;  %588 = vmatprep.subr.mxu0 %v5001_v8 }
  0x5c   :  { %3891 = vmatprep.subr.mxu1 %v6865_v0  ;;  %3872 = vmatmul.mubr.msk.f32.gmra.mxu1 %vm125_vm0, %v5095_v32 }
  0x5d   :  { %3892 = vmatpush3.msra.mxu1 %v5184_v54  ;;  %3874 = vmatprep.mubr.msk.f32.mxu1 %vm125_vm0, %v100_v38 }
  0x5e   :  { %3893 = vmatprep.subr.mxu1 %v6865_v0  ;;  %589 = vmatpush1.msra.mxu0 %v5005_v9 }
  0x5f   :  { %3894 = vmatpush3.msra.mxu1 %v5190_v55  ;;  %590 = vmatprep.subr.mxu0 %v5012_v11 }
  0x60   :  { %3895 = vmatprep.subr.mxu1 %v6865_v0  ;;  %3875 = vmatmul.mubr.msk.f32.gmra.mxu1 %vm125_vm0, %v101_v44 }
  0x61   :  { %3896 = vmatpush3.msra.mxu1 %v5197_v56  ;;  %3909 = vmatprep.mubr.msk.f32.mxu1 %vm4906_vm1, %v6865_v0 }
  0x62   :  { %3897 = vmatprep.subr.mxu1 %v6865_v0  ;;  %591 = vmatpush1.msra.mxu0 %v5015_v12 }
  0x63   :  { %3898 = vmatpush3.msra.mxu1 %v5203_v57  ;;  %592 = vmatprep.subr.mxu0 %v5018_v13 }
  0x64   :  { %3899 = vmatprep.subr.mxu1 %v6865_v0  ;;  %593 = vmatpush1.msra.mxu0 %v5022_v14 }
  0x65   :  { %3900 = vmatpush3.msra.mxu1 %v5210_v58  ;;  %594 = vmatprep.subr.mxu0 %v5031_v16 }
  0x66   :  { %3901 = vmatprep.subr.mxu1 %v6865_v0  ;;  %595 = vmatpush1.msra.mxu0 %v5034_v17 }
  0x67   :  { %3902 = vmatpush3.msra.mxu1 %v5216_v59  ;;  %596 = vmatprep.subr.mxu0 %v5037_v18 }
  0x68   :  { %3903 = vmatprep.subr.mxu1 %v6865_v0  ;;  %597 = vmatpush1.msra.mxu0 %v5045_v20 }
  0x69   :  { %3904 = vmatpush3.msra.mxu1 %v5222_v60  ;;  %598 = vmatprep.subr.mxu0 %v5054_v22 }
  0x6a   :  { %3905 = vmatprep.subr.mxu1 %v6865_v0  ;;  %599 = vmatpush1.msra.mxu0 %v5057_v23 }
  0x6b   :  { %3906 = vmatpush3.msra.mxu1 %v5228_v61  ;;  %600 = vmatprep.subr.mxu0 %v5060_v24 }
  0x6c   :  { %3907 = vmatprep.subr.mxu1 %v6865_v0  ;;  %601 = vmatpush1.msra.mxu0 %v5068_v26 }
  0x6d   :  { %3908 = vmatpush3.msra.mxu1 %v5234_v62  ;;  %602 = vmatprep.subr.mxu0 %v5077_v28 }
  0x6e   :  { %3910 = vmatmul.mubr.f32.vlgmr.msra.gmra.mxu1 %v6865_v0  ;;  %3912 = vmatprep.subr.mxu1 %v6865_v0 }
  0x6f   :  { %3913 = vmatpush3.msra.mxu1 %v5107_v36  ;;  %603 = vmatpush1.msra.mxu0 %v5080_v29 }
  0x70   :  { %3914 = vmatprep.subr.mxu1 %v6865_v0  ;;  %604 = vmatprep.subr.mxu0 %v5083_v30 }
  0x71   :  { %3915 = vmatpush3.msra.mxu1 %v5129_v42  ;;  %605 = vmatpush1.msra.mxu0 %v5088_v31 }
  0x72   :  { %3916 = vmatprep.subr.mxu1 %v6865_v0  ;;  %606 = vmatprep.subr.mxu0 %v5097_v33 }
  0x73   :  { %3917 = vmatpush3.msra.mxu1 %v5150_v48  ;;  %607 = vmatpush1.msra.mxu0 %v5100_v34 }
  0x74   :  { %3918 = vmatprep.subr.mxu1 %v6865_v0  ;;  %608 = vmatprep.subr.mxu0 %v5104_v35 }
  0x75   :  { %3919 = vmatpush3.msra.mxu1 %v5158_v50  ;;  %609 = vmatpush1.msra.mxu0 %v5112_v37 }
  0x76   :  { %3920 = vmatprep.subr.mxu1 %v6865_v0  ;;  %610 = vmatprep.subr.mxu0 %v5119_v39 }
  0x77   :  { %3921 = vmatpush3.msra.mxu1 %v5164_v51  ;;  %611 = vmatpush1.msra.mxu0 %v5122_v40 }
  0x78   :  { %3922 = vmatprep.subr.mxu1 %v6865_v0  ;;  %612 = vmatprep.subr.mxu0 %v5126_v41 }
  0x79   :  { %3923 = vmatpush3.msra.mxu1 %v5169_v52  ;;  %613 = vmatpush1.msra.mxu0 %v5133_v43 }
  0x7a   :  { %3924 = vmatprep.subr.mxu1 %v6865_v0  ;;  %614 = vmatprep.subr.mxu0 %v5140_v45 }
  0x7b   :  { %3925 = vmatpush3.msra.mxu1 %v5176_v53  ;;  %615 = vmatpush1.msra.mxu0 %v5143_v46 }
  0x7c   :  { %3926 = vmatprep.subr.mxu1 %v6865_v0  ;;  %616 = vmatprep.subr.mxu0 %v5147_v47 }
  0x7d   :  { %3927 = vmatpush3.msra.mxu1 %v5184_v54  ;;  %617 = vmatpush1.msra.mxu0 %v5154_v49 }
  0x7e   :  { %3928 = vmatprep.subr.mxu1 %v6865_v0  ;;  %650 = vmatprep.mubr.f32.mxu0 %v6865_v0 }
  0x7f   :  { %3929 = vmatpush3.msra.mxu1 %v5190_v55  ;;  %3944 = vmatprep.mubr.msk.f32.mxu1 %vm4906_vm1, %v6865_v0 }
  0x80   :  { %3930 = vmatprep.subr.mxu1 %v6865_v0  ;;  %749 = vmatprep.subr.mxu0 %v4996_v6 }
  0x81   :  { %3931 = vmatpush3.msra.mxu1 %v5197_v56 }
  0x82   :  { %3932 = vmatprep.subr.mxu1 %v6865_v0 }
  0x83   :  { %3933 = vmatpush3.msra.mxu1 %v5203_v57 }
  0x84   :  { %3934 = vmatprep.subr.mxu1 %v6865_v0 }
  0x85   :  { %3935 = vmatpush3.msra.mxu1 %v5210_v58 }
  0x86   :  { %3936 = vmatprep.subr.mxu1 %v6865_v0 }
  0x87   :  { %3937 = vmatpush3.msra.mxu1 %v5216_v59 }
  0x88   :  { %3938 = vmatprep.subr.mxu1 %v6865_v0 }
  0x89   :  { %3939 = vmatpush3.msra.mxu1 %v5222_v60 }
  0x8a   :  { %3940 = vmatprep.subr.mxu1 %v6865_v0 }
  0x8b   :  { %3941 = vmatpush3.msra.mxu1 %v5228_v61 }
  0x8c   :  { %3942 = vmatprep.subr.mxu1 %v6865_v0 }
  0x8d   :  { %3943 = vmatpush3.msra.mxu1 %v5234_v62  ;;  %v6881_v62 = vsub.s32 2, %v5296_v1 }
  0x8e   :  { %3947 = vmatprep.subr.mxu1 %v6865_v0 }
  0xf7   :  { %v216_v4 = vpop.f32.mrf.mxu0 }
  0xf9   :  { %v218_v10 = vpop.f32.mrf.mxu0 }
  0xfb   :  { %v222_v19 = vpop.f32.mrf.mxu0 }
  0xfc   :  { %v5307_v25 = vadd.f32 %v222_v19, %v113_v15  ;;  %v121_v19 = vrot.slane %v108_v3, %v6881_v62  ;;  %v217_v62 = vadd.f32 %v216_v4, %v113_v15 }
  0xfd   :  { %v224_v27 = vpop.f32.mrf.mxu0 }
  0xfe   :  { %6922 = vst [vmem:[#allocation21_spill] sm:$0xff] %v5307_v25  ;;  %v5309_v32 = vadd.f32 %v224_v27, %v117_v21 }
  0xff   :  { %v228_v38 = vpop.f32.mrf.mxu0 }
 0x100   :  { %6923 = vst [vmem:[#allocation22_spill] sm:$0xff] %v5309_v32  ;;  %v5311_v44 = vadd.f32 %v228_v38, %v113_v15 }
 0x101   :  { %v230_v63 = vpop.f32.mrf.mxu0 }
 0x102   :  { %6924 = vst [vmem:[#allocation23_spill] sm:$0xff] %v5311_v44  ;;  %v5313_v0 = vadd.f32 %v230_v63, %v117_v21  ;;  %v3867_v44 = vpop.f32.mrf.mxu1 }
 0x103   :  { %v234_v6 = vpop.f32.mrf.mxu0 }
 0x104   :  { %6925 = vst [vmem:[#allocation24_spill] sm:$0xff] %v5313_v0  ;;  %v5316_v49 = vadd.f32 %v234_v6, %v113_v15  ;;  %v5326_v0 = vadd.f32 %v3867_v44, %v121_v19 }
 0x105   :  { %v236_v2 = vpop.f32.mrf.mxu0 }
 0x106   :  { %6926 = vst [vmem:[#allocation25_spill] sm:$0xff] %v5316_v49  ;;  %v5318_v47 = vadd.f32 %v236_v2, %v117_v21  ;;  %6930 = vst [vmem:[#allocation29_spill] sm:$0xff] %v5326_v0 }
 0x107   :  { %v240_v5 = vpop.f32.mrf.mxu0 }
 0x108   :  { %6927 = vst [vmem:[#allocation26_spill] sm:$0xff] %v5318_v47  ;;  %v5322_v27 = vadd.f32 %v240_v5, %v113_v15 }
 0x109   :  { %v242_v32 = vpop.f32.mrf.mxu0 }
 0x10a   :  { %6928 = vst [vmem:[#allocation27_spill] sm:$0xff] %v5322_v27  ;;  %v5324_v38 = vadd.f32 %v242_v32, %v117_v21 }
 0x10b   :  { %v246_v63 = vpop.f32.mrf.mxu0 }
 0x10c   :  { %6929 = vst [vmem:[#allocation28_spill] sm:$0xff] %v5324_v38  ;;  %v5328_v25 = vadd.f32 %v246_v63, %v113_v15  ;;  %v329_v63 = vpop.f32.mrf.mxu1 }
 0x10d   :  { %v248_v6 = vpop.f32.mrf.mxu0 }
 0x10e   :  { %6931 = vst [vmem:[#allocation30_spill] sm:$0xff] %v5328_v25  ;;  %v5330_v49 = vadd.f32 %v248_v6, %v117_v21 }
 0x10f   :  { %v252_v2 = vpop.f32.mrf.mxu0 }
 0x110   :  { %6932 = vst [vmem:[#allocation31_spill] sm:$0xff] %v5330_v49  ;;  %v5332_v47 = vadd.f32 %v252_v2, %v113_v15  ;;  %v219_v2 = vadd.f32 %v218_v10, %v117_v21 }
 0x111   :  { %v254_v61 = vpop.f32.mrf.mxu0 }
 0x112   :  { %6933 = vst [vmem:[#allocation32_spill] sm:$0xff] %v5332_v47  ;;  %v5334_v1 = vadd.f32 %v254_v61, %v117_v21 }
 0x113   :  { %v258_v3 = vpop.f32.mrf.mxu0 }
 0x114   :  { %6934 = vst [vmem:[#allocation33_spill] sm:$0xff] %v5334_v1  ;;  %v5336_v5 = vadd.f32 %v258_v3, %v113_v15 }
 0x115   :  { %v260_v32 = vpop.f32.mrf.mxu0 }
 0x116   :  { %6935 = vst [vmem:[#allocation34_spill] sm:$0xff] %v5336_v5  ;;  %v5338_v38 = vadd.f32 %v260_v32, %v117_v21 }
 0x117   :  { %v483_v44 = vpop.f32.mrf.mxu0 }
 0x118   :  { %6936 = vst [vmem:[#allocation35_spill] sm:$0xff] %v5338_v38  ;;  %v558_v27 = vadd.f32 %v483_v44, %v217_v62  ;;  %v3870_v0 = vpop.f32.mrf.mxu1 }
 0x119   :  { %v485_v6 = vpop.f32.mrf.mxu0  ;;  %v5340_v49 = vadd.f32 %v3870_v0, %v121_v19 }
 0x11a   :  { %v3502_v25 = vmul.f32 -1.442695, %v558_v27  ;;  %v339_v47 = vpop.f32.mrf.mxu1  ;;  %v565_v1 = vadd.f32 %v485_v6, %v219_v2  ;;  %v5355_v6 = vld [vmem:[%s6857_s4] ss:$0 sm:$0xff] }
 0x11b   :  { %6937 = vst [vmem:[#allocation36_spill] sm:$0xff] %v5340_v49  ;;  %v5342_v61 = vadd.f32 %v339_v47, %v121_v19 }
 0x11c   :  { %4527 = vpow2.f32 %v3502_v25  ;;  %v3873_v3 = vpop.f32.mrf.mxu1  ;;  %v3503_v32 = vmul.f32 -1.442695, %v565_v1 }
 0x11d   :  { %6938 = vst [vmem:[#allocation37_spill] sm:$0xff] %v5342_v61  ;;  %v5344_v5 = vadd.f32 %v3873_v3, %v121_v19 }
 0x11e   :  { %v349_v4 = vpop.f32.mrf.mxu1  ;;  %4529 = vpow2.f32 %v3503_v32 }
 0x11f   :  { %6939 = vst [vmem:[#allocation38_spill] sm:$0xff] %v5344_v5  ;;  %v5346_v15 = vadd.f32 %v349_v4, %v121_v19  ;;  %v330_v4 = vadd.f32 %v329_v63, %v121_v19  ;;  %v6945_v63 = vld [vmem:[#allocation18_spill] sm:$0xff] }
 0x120   :  { %v3876_v62 = vpop.f32.mrf.mxu1 }
 0x121   :  { %6940 = vst [vmem:[#allocation39_spill] sm:$0xff] %v5346_v15  ;;  %v5348_v44 = vadd.f32 %v3876_v62, %v121_v19 }
 0x122   :  { %v359_v27 = vpop.f32.mrf.mxu1 }
 0x123   :  { %6941 = vst [vmem:[#allocation40_spill] sm:$0xff] %v5348_v44  ;;  %v5350_v38 = vadd.f32 %v359_v27, %v121_v19  ;;  %v6944_v19 = vmov 0.0  }
 0x125   :  { %6942 = vst [vmem:[#allocation41_spill] sm:$0xff] %v5350_v38 }
 0x129   :  { %v4528_v0 = vpop.eup %4527 }
 0x12a   :  { %v562_v10 = vadd.f32 1.0, %v4528_v0 }
 0x12b   :  { %v4530_v25 = vpop.eup %4529 }
 0x12c   :  { %4531 = vrcp.f32 %v562_v10  ;;  %v569_v2 = vadd.f32 1.0, %v4530_v25  ;;  %v6948_v25 = vld [vmem:[#allocation19_spill] sm:$0xff] }
 0x12e   :  { %v554_v47 = vpop.f32.mrf.mxu1  ;;  %4533 = vrcp.f32 %v569_v2  ;;  %v6949_v2 = vld [vmem:[#allocation15_spill] sm:$0xff] }
 0x12f   :  { %v578_v1 = vadd.f32 %v5355_v6, %v554_v47  ;;  %v6947_v47 = vld [vmem:[#allocation17_spill] sm:$0xff] }
 0x130   :  { %v3911_v21 = vpop.f32.mrf.mxu1 }
 0x139   :  { %v4532_v3 = vpop.eup %4531 }
 0x13a   :  { %v579_v62 = vmul.f32 %v4532_v3, %v578_v1 }
 0x13b   :  { %v4534_v32 = vpop.eup %4533 }
 0x13c   :  { %v580_v27 = vadd.f32 %v579_v62, %v330_v4  ;;  %v582_v0 = vsub.f32 1.0, %v4534_v32  ;;  %v584_v21 = vmul.f32 0.0, %v4534_v32  ;;  %v6950_v4 = vld [vmem:[#allocation21_spill] sm:$0xff] }
 0x13e   :  { %4535 = vtanh.f32 %v580_v27 }
 0x14b   :  { %v4536_v10 = vpop.eup %4535 }
 0x14c   :  { %v583_v44 = vmul.f32 %v4536_v10, %v582_v0  ;;  %v6951_v10 = vld [vmem:[#allocation22_spill] sm:$0xff] }
 0x14e   :  { %v5358_v38 = vadd.f32 %v584_v21, %v583_v44  ;;  %v6946_v44 = vld [vmem:[#allocation16_spill] sm:$0xff] }
 0x150   :  { %6943 = vst [vmem:[#allocation42_spill] sm:$0xff] %v5358_v38  ;;  %651 = vmatmul.mubr.f32.vlgmr.msra.gmra.mxu0 %v5358_v38  ;;  %3945 = vmatmul.mubr.f32.vlgmr.msra.gmra.mxu1 %v5358_v38 }
 0x151   :  { %750 = vmatpush1.msra.mxu0 %v4999_v7  ;;  %3948 = vmatpush3.msra.mxu1 %v5107_v36 }
 0x152   :  { %751 = vmatprep.subr.mxu0 %v5001_v8  ;;  %3949 = vmatprep.subr.mxu1 %v6944_v19 }
 0x153   :  { %752 = vmatpush1.msra.mxu0 %v5005_v9  ;;  %3950 = vmatpush3.msra.mxu1 %v5129_v42 }
 0x154   :  { %753 = vmatprep.subr.mxu0 %v5012_v11  ;;  %3951 = vmatprep.subr.mxu1 %v6944_v19 }
 0x155   :  { %754 = vmatpush1.msra.mxu0 %v5015_v12  ;;  %3952 = vmatpush3.msra.mxu1 %v5150_v48 }
 0x156   :  { %755 = vmatprep.subr.mxu0 %v5018_v13  ;;  %3953 = vmatprep.subr.mxu1 %v6944_v19 }
 0x157   :  { %756 = vmatpush1.msra.mxu0 %v5022_v14  ;;  %3954 = vmatpush3.msra.mxu1 %v5158_v50 }
 0x158   :  { %757 = vmatprep.subr.mxu0 %v5031_v16  ;;  %3955 = vmatprep.subr.mxu1 %v6944_v19 }
 0x159   :  { %758 = vmatpush1.msra.mxu0 %v5034_v17  ;;  %3956 = vmatpush3.msra.mxu1 %v5164_v51 }
 0x15a   :  { %759 = vmatprep.subr.mxu0 %v5037_v18  ;;  %3957 = vmatprep.subr.mxu1 %v6944_v19 }
 0x15b   :  { %760 = vmatpush1.msra.mxu0 %v5045_v20  ;;  %3958 = vmatpush3.msra.mxu1 %v5169_v52 }
 0x15c   :  { %761 = vmatprep.subr.mxu0 %v5054_v22  ;;  %3959 = vmatprep.subr.mxu1 %v6944_v19 }
 0x15d   :  { %762 = vmatpush1.msra.mxu0 %v5057_v23  ;;  %3960 = vmatpush3.msra.mxu1 %v5176_v53 }
 0x15e   :  { %763 = vmatprep.subr.mxu0 %v5060_v24  ;;  %3961 = vmatprep.subr.mxu1 %v6944_v19 }
 0x15f   :  { %764 = vmatpush1.msra.mxu0 %v5068_v26  ;;  %3962 = vmatpush3.msra.mxu1 %v5184_v54 }
 0x160   :  { %765 = vmatprep.subr.mxu0 %v5077_v28  ;;  %3963 = vmatprep.subr.mxu1 %v6944_v19 }
 0x161   :  { %766 = vmatpush1.msra.mxu0 %v5080_v29  ;;  %3964 = vmatpush3.msra.mxu1 %v5190_v55 }
 0x162   :  { %767 = vmatprep.subr.mxu0 %v5083_v30  ;;  %3965 = vmatprep.subr.mxu1 %v6944_v19 }
 0x163   :  { %768 = vmatpush1.msra.mxu0 %v5088_v31  ;;  %3966 = vmatpush3.msra.mxu1 %v5197_v56 }
 0x164   :  { %769 = vmatprep.subr.mxu0 %v5097_v33  ;;  %3967 = vmatprep.subr.mxu1 %v6944_v19 }
 0x165   :  { %770 = vmatpush1.msra.mxu0 %v5100_v34  ;;  %3968 = vmatpush3.msra.mxu1 %v5203_v57 }
 0x166   :  { %771 = vmatprep.subr.mxu0 %v5104_v35  ;;  %3969 = vmatprep.subr.mxu1 %v6944_v19 }
 0x167   :  { %772 = vmatpush1.msra.mxu0 %v5112_v37  ;;  %3970 = vmatpush3.msra.mxu1 %v5210_v58 }
 0x168   :  { %773 = vmatprep.subr.mxu0 %v5119_v39  ;;  %3971 = vmatprep.subr.mxu1 %v6944_v19 }
 0x169   :  { %774 = vmatpush1.msra.mxu0 %v5122_v40  ;;  %3972 = vmatpush3.msra.mxu1 %v5216_v59 }
 0x16a   :  { %775 = vmatprep.subr.mxu0 %v5126_v41  ;;  %3973 = vmatprep.subr.mxu1 %v6944_v19 }
 0x16b   :  { %776 = vmatpush1.msra.mxu0 %v5133_v43  ;;  %3974 = vmatpush3.msra.mxu1 %v5222_v60 }
 0x16c   :  { %777 = vmatprep.subr.mxu0 %v5140_v45  ;;  %3975 = vmatprep.subr.mxu1 %v6944_v19 }
 0x16d   :  { %778 = vmatpush1.msra.mxu0 %v5143_v46  ;;  %3976 = vmatpush3.msra.mxu1 %v6945_v63  ;;  %v6952_v63 = vld [vmem:[#allocation29_spill] sm:$0xff] }
 0x16e   :  { %779 = vmatprep.subr.mxu0 %v6946_v44  ;;  %3977 = vmatprep.subr.mxu1 %v6944_v19 }
 0x16f   :  { %780 = vmatpush1.msra.mxu0 %v6947_v47  ;;  %813 = vmatprep.mubr.f32.mxu0 %v6944_v19 }
 0x170   :  { %3978 = vmatpush3.msra.mxu1 %v6948_v25  ;;  %3979 = vmatprep.mubr.msk.f32.mxu1 %vm4906_vm1, %v6944_v19 }
 0x171   :  { %912 = vmatprep.subr.mxu0 %v6949_v2  ;;  %3982 = vmatprep.subr.mxu1 %v6944_v19 }
 0x210   :  { %v652_v1 = vpop.f32.mrf.mxu0  ;;  %v723_v3 = vpop.f32.mrf.mxu1 }
 0x211   :  { %v727_v62 = vadd.f32 %v652_v1, %v6950_v4  ;;  %v741_v2 = vadd.f32 %v5355_v6, %v723_v3 }
 0x212   :  { %v3946_v27 = vpop.f32.mrf.mxu1  ;;  %v654_v0 = vpop.f32.mrf.mxu0 }
 0x213   :  { %v3505_v32 = vmul.f32 -1.442695, %v727_v62  ;;  %v734_v21 = vadd.f32 %v654_v0, %v6951_v10 }
 0x215   :  { %4537 = vpow2.f32 %v3505_v32  ;;  %v3506_v5 = vmul.f32 -1.442695, %v734_v21 }
 0x217   :  { %4539 = vpow2.f32 %v3506_v5 }
 0x222   :  { %v4538_v15 = vpop.eup %4537 }
 0x223   :  { %v731_v49 = vadd.f32 1.0, %v4538_v15  ;;  %v6956_v15 = vld [vmem:[#allocation17_spill] sm:$0xff] }
 0x224   :  { %v4540_v61 = vpop.eup %4539 }
 0x225   :  { %4541 = vrcp.f32 %v731_v49  ;;  %v738_v25 = vadd.f32 1.0, %v4540_v61  ;;  %v6954_v49 = vld [vmem:[#allocation18_spill] sm:$0xff]  ;;  %v6955_v61 = vld [vmem:[#allocation16_spill] sm:$0xff] }
 0x227   :  { %4543 = vrcp.f32 %v738_v25 }
 0x232   :  { %v4542_v47 = vpop.eup %4541 }
 0x233   :  { %v742_v44 = vmul.f32 %v4542_v47, %v741_v2  ;;  %v6959_v2 = vld [vmem:[#allocation23_spill] sm:$0xff] }
 0x234   :  { %v4544_v4 = vpop.eup %4543 }
 0x235   :  { %v743_v1 = vadd.f32 %v742_v44, %v6952_v63  ;;  %v745_v62 = vsub.f32 1.0, %v4544_v4  ;;  %v747_v0 = vmul.f32 %v4544_v4, %v5358_v38  ;;  %v6957_v63 = vld [vmem:[#allocation19_spill] sm:$0xff]  ;;  %v6960_v4 = vld [vmem:[#allocation24_spill] sm:$0xff] }
 0x236   :  { %v6958_v44 = vld [vmem:[#allocation15_spill] sm:$0xff] }
 0x237   :  { %4545 = vtanh.f32 %v743_v1 }
 0x244   :  { %v4546_v27 = vpop.eup %4545 }
 0x245   :  { %v746_v32 = vmul.f32 %v4546_v27, %v745_v62 }
 0x247   :  { %v5434_v5 = vadd.f32 %v747_v0, %v746_v32 }
 0x249   :  { %6953 = vst [vmem:[#allocation21_spill] sm:$0xff] %v5434_v5  ;;  %814 = vmatmul.mubr.f32.vlgmr.msra.gmra.mxu0 %v5434_v5  ;;  %3980 = vmatmul.mubr.f32.vlgmr.msra.gmra.mxu1 %v5434_v5 }
 0x24a   :  { %913 = vmatpush1.msra.mxu0 %v4999_v7  ;;  %3983 = vmatpush3.msra.mxu1 %v5107_v36 }
 0x24b   :  { %914 = vmatprep.subr.mxu0 %v5001_v8  ;;  %3984 = vmatprep.subr.mxu1 %v6944_v19 }
 0x24c   :  { %915 = vmatpush1.msra.mxu0 %v5005_v9  ;;  %3985 = vmatpush3.msra.mxu1 %v5129_v42 }
 0x24d   :  { %916 = vmatprep.subr.mxu0 %v5012_v11  ;;  %3986 = vmatprep.subr.mxu1 %v6944_v19 }
 0x24e   :  { %917 = vmatpush1.msra.mxu0 %v5015_v12  ;;  %3987 = vmatpush3.msra.mxu1 %v5150_v48 }
 0x24f   :  { %918 = vmatprep.subr.mxu0 %v5018_v13  ;;  %3988 = vmatprep.subr.mxu1 %v6944_v19 }
 0x250   :  { %919 = vmatpush1.msra.mxu0 %v5022_v14  ;;  %3989 = vmatpush3.msra.mxu1 %v5158_v50 }
 0x251   :  { %920 = vmatprep.subr.mxu0 %v5031_v16  ;;  %3990 = vmatprep.subr.mxu1 %v6944_v19 }
 0x252   :  { %921 = vmatpush1.msra.mxu0 %v5034_v17  ;;  %3991 = vmatpush3.msra.mxu1 %v5164_v51 }
 0x253   :  { %922 = vmatprep.subr.mxu0 %v5037_v18  ;;  %3992 = vmatprep.subr.mxu1 %v6944_v19 }
 0x254   :  { %923 = vmatpush1.msra.mxu0 %v5045_v20  ;;  %3993 = vmatpush3.msra.mxu1 %v5169_v52 }
 0x255   :  { %924 = vmatprep.subr.mxu0 %v5054_v22  ;;  %3994 = vmatprep.subr.mxu1 %v6944_v19 }
 0x256   :  { %925 = vmatpush1.msra.mxu0 %v5057_v23  ;;  %3995 = vmatpush3.msra.mxu1 %v5176_v53 }
 0x257   :  { %926 = vmatprep.subr.mxu0 %v5060_v24  ;;  %3996 = vmatprep.subr.mxu1 %v6944_v19 }
 0x258   :  { %927 = vmatpush1.msra.mxu0 %v5068_v26  ;;  %3997 = vmatpush3.msra.mxu1 %v5184_v54 }
 0x259   :  { %928 = vmatprep.subr.mxu0 %v5077_v28  ;;  %3998 = vmatprep.subr.mxu1 %v6944_v19 }
 0x25a   :  { %929 = vmatpush1.msra.mxu0 %v5080_v29  ;;  %3999 = vmatpush3.msra.mxu1 %v5190_v55 }
 0x25b   :  { %930 = vmatprep.subr.mxu0 %v5083_v30  ;;  %4000 = vmatprep.subr.mxu1 %v6944_v19 }
 0x25c   :  { %931 = vmatpush1.msra.mxu0 %v5088_v31  ;;  %4001 = vmatpush3.msra.mxu1 %v5197_v56 }
 0x25d   :  { %932 = vmatprep.subr.mxu0 %v5097_v33  ;;  %4002 = vmatprep.subr.mxu1 %v6944_v19 }
 0x25e   :  { %933 = vmatpush1.msra.mxu0 %v5100_v34  ;;  %4003 = vmatpush3.msra.mxu1 %v5203_v57 }
 0x25f   :  { %934 = vmatprep.subr.mxu0 %v5104_v35  ;;  %4004 = vmatprep.subr.mxu1 %v6944_v19 }
 0x260   :  { %935 = vmatpush1.msra.mxu0 %v5112_v37  ;;  %4005 = vmatpush3.msra.mxu1 %v5210_v58 }
 0x261   :  { %936 = vmatprep.subr.mxu0 %v5119_v39  ;;  %4006 = vmatprep.subr.mxu1 %v6944_v19 }
 0x262   :  { %937 = vmatpush1.msra.mxu0 %v5122_v40  ;;  %4007 = vmatpush3.msra.mxu1 %v5216_v59 }
 0x263   :  { %938 = vmatprep.subr.mxu0 %v5126_v41  ;;  %4008 = vmatprep.subr.mxu1 %v6944_v19 }
 0x264   :  { %939 = vmatpush1.msra.mxu0 %v5133_v43  ;;  %4009 = vmatpush3.msra.mxu1 %v5222_v60 }
 0x265   :  { %940 = vmatprep.subr.mxu0 %v5140_v45  ;;  %4010 = vmatprep.subr.mxu1 %v6944_v19 }
 0x266   :  { %941 = vmatpush1.msra.mxu0 %v5143_v46  ;;  %4011 = vmatpush3.msra.mxu1 %v6954_v49  ;;  %v6961_v49 = vld [vmem:[#allocation37_spill] sm:$0xff] }
 0x267   :  { %942 = vmatprep.subr.mxu0 %v6955_v61  ;;  %4012 = vmatprep.subr.mxu1 %v6944_v19 }
 0x268   :  { %943 = vmatpush1.msra.mxu0 %v6956_v15  ;;  %976 = vmatprep.mubr.f32.mxu0 %v6944_v19 }
 0x269   :  { %4013 = vmatpush3.msra.mxu1 %v6957_v63  ;;  %4014 = vmatprep.mubr.msk.f32.mxu1 %vm4906_vm1, %v6944_v19 }
 0x26a   :  { %1075 = vmatprep.subr.mxu0 %v6958_v44  ;;  %4017 = vmatprep.subr.mxu1 %v6944_v19 }
 0x309   :  { %v815_v47 = vpop.f32.mrf.mxu0  ;;  %v886_v25 = vpop.f32.mrf.mxu1 }
 0x30a   :  { %v890_v3 = vadd.f32 %v815_v47, %v6959_v2  ;;  %v904_v44 = vadd.f32 %v5355_v6, %v886_v25  ;;  %v5612_v25 = vld [vmem:[#allocation2 + $0x138] sm:$0xff] }
 0x30b   :  { %v3981_v10 = vpop.f32.mrf.mxu1  ;;  %v817_v1 = vpop.f32.mrf.mxu0 }
 0x30c   :  { %v3507_v21 = vmul.f32 -1.442695, %v890_v3  ;;  %v897_v62 = vadd.f32 %v817_v1, %v6960_v4 }
 0x30e   :  { %4547 = vpow2.f32 %v3507_v21  ;;  %v3508_v27 = vmul.f32 -1.442695, %v897_v62  ;;  %v5616_v62 = vld [vmem:[#allocation2 + $0x128] sm:$0xff] }
 0x310   :  { %4549 = vpow2.f32 %v3508_v27  ;;  %v5620_v27 = vld [vmem:[#allocation2 + $0x120] sm:$0xff] }
 0x31b   :  { %v4548_v32 = vpop.eup %4547 }
 0x31c   :  { %v894_v0 = vadd.f32 1.0, %v4548_v32  ;;  %v5624_v32 = vld [vmem:[#allocation2 + $0x110] sm:$0xff] }
 0x31d   :  { %v4550_v38 = vpop.eup %4549 }
 0x31e   :  { %4551 = vrcp.f32 %v894_v0  ;;  %v901_v63 = vadd.f32 1.0, %v4550_v38  ;;  %v5595_v38 = vld [vmem:[#allocation2 + $0x178] sm:$0xff]  ;;  %v5628_v0 = vld [vmem:[#allocation2 + $0x108] sm:$0xff] }
 0x320   :  { %4553 = vrcp.f32 %v901_v63  ;;  %v5608_v63 = vld [vmem:[#allocation2 + $0x140] sm:$0xff] }
 0x32b   :  { %v4552_v15 = vpop.eup %4551 }
 0x32c   :  { %v905_v61 = vmul.f32 %v4552_v15, %v904_v44  ;;  %v5605_v15 = vld [vmem:[#allocation2 + $0x160] sm:$0xff]  ;;  %v5636_v44 = vld [vmem:[#allocation2 + $0xf0] sm:$0xff] }
 0x32d   :  { %v4554_v2 = vpop.eup %4553 }
 0x32e   :  { %v906_v47 = vadd.f32 %v905_v61, %v6961_v49  ;;  %v908_v3 = vsub.f32 1.0, %v4554_v2  ;;  %v910_v1 = vmul.f32 %v4554_v2, %v5434_v5  ;;  %v5598_v49 = vld [vmem:[#allocation2 + $0x158] sm:$0xff]  ;;  %v5602_v61 = vld [vmem:[#allocation2 + $0x150] sm:$0xff]  ;;  %v5652_v2 = vld [vmem:[#allocation2 + $0xc0] sm:$0xff] }
 0x330   :  { %4555 = vtanh.f32 %v906_v47  ;;  %v5644_v47 = vld [vmem:[#allocation2 + $0xd8] sm:$0xff] }
 0x33d   :  { %v4556_v10 = vpop.eup %4555 }
 0x33e   :  { %v909_v21 = vmul.f32 %v4556_v10, %v908_v3  ;;  %v5660_v3 = vld [vmem:[#allocation2 + $0xa8] sm:$0xff]  ;;  %v5668_v10 = vld [vmem:[#allocation2 + $0x90] sm:$0xff] }
 0x340   :  { %v5510_v4 = vadd.f32 %v910_v1, %v909_v21  ;;  %v5676_v21 = vld [vmem:[#allocation2 + $0x78] sm:$0xff]  ;;  %v5684_v1 = vld [vmem:[#allocation2 + $0x60] sm:$0xff] }
 0x342   :  { %6962 = vst [vmem:[#allocation22_spill] sm:$0xff] %v5510_v4  ;;  %977 = vmatmul.mubr.f32.vlgmr.msra.gmra.mxu0 %v5510_v4  ;;  %4015 = vmatmul.mubr.f32.vlgmr.msra.gmra.mxu1 %v5510_v4 }
 0x343   :  { %1076 = vmatpush1.msra.mxu0 %v4999_v7  ;;  %4018 = vmatpush3.msra.mxu1 %v5107_v36  ;;  %v6963_v7 = vld [vmem:[#allocation18_spill] sm:$0xff]  ;;  %v6969_v36 = vld [vmem:[#allocation36_spill] sm:$0xff] }
 0x344   :  { %1077 = vmatprep.subr.mxu0 %v5001_v8  ;;  %4019 = vmatprep.subr.mxu1 %v6944_v19  ;;  %v6964_v8 = vld [vmem:[#allocation16_spill] sm:$0xff] }
 0x345   :  { %1078 = vmatpush1.msra.mxu0 %v5005_v9  ;;  %4020 = vmatpush3.msra.mxu1 %v5129_v42  ;;  %v6965_v9 = vld [vmem:[#allocation17_spill] sm:$0xff] }
 0x346   :  { %1079 = vmatprep.subr.mxu0 %v5012_v11  ;;  %4021 = vmatprep.subr.mxu1 %v6944_v19  ;;  %v6966_v11 = vld [vmem:[#allocation19_spill] sm:$0xff] }
 0x347   :  { %1080 = vmatpush1.msra.mxu0 %v5015_v12  ;;  %4022 = vmatpush3.msra.mxu1 %v5150_v48  ;;  %v5579_v12 = vld [vmem:[#allocation2 + $0x170] sm:$0xff] }
 0x348   :  { %1081 = vmatprep.subr.mxu0 %v5018_v13  ;;  %4023 = vmatprep.subr.mxu1 %v6944_v19 }
 0x349   :  { %1082 = vmatpush1.msra.mxu0 %v5022_v14  ;;  %4024 = vmatpush3.msra.mxu1 %v5158_v50 }
 0x34a   :  { %1083 = vmatprep.subr.mxu0 %v5031_v16  ;;  %4025 = vmatprep.subr.mxu1 %v6944_v19  ;;  %v6967_v16 = vld [vmem:[#allocation25_spill] sm:$0xff] }
 0x34b   :  { %1084 = vmatpush1.msra.mxu0 %v5034_v17  ;;  %4026 = vmatpush3.msra.mxu1 %v5164_v51 }
 0x34c   :  { %1085 = vmatprep.subr.mxu0 %v5037_v18  ;;  %4027 = vmatprep.subr.mxu1 %v6944_v19 }
 0x34d   :  { %1086 = vmatpush1.msra.mxu0 %v5045_v20  ;;  %4028 = vmatpush3.msra.mxu1 %v5169_v52 }
 0x34e   :  { %1087 = vmatprep.subr.mxu0 %v5054_v22  ;;  %4029 = vmatprep.subr.mxu1 %v6944_v19 }
 0x34f   :  { %1088 = vmatpush1.msra.mxu0 %v5057_v23  ;;  %4030 = vmatpush3.msra.mxu1 %v5176_v53  ;;  %v6968_v23 = vld [vmem:[#allocation26_spill] sm:$0xff] }
 0x350   :  { %1089 = vmatprep.subr.mxu0 %v5060_v24  ;;  %4031 = vmatprep.subr.mxu1 %v6944_v19 }
 0x351   :  { %1090 = vmatpush1.msra.mxu0 %v5068_v26  ;;  %4032 = vmatpush3.msra.mxu1 %v5184_v54 }
 0x352   :  { %1091 = vmatprep.subr.mxu0 %v5077_v28  ;;  %4033 = vmatprep.subr.mxu1 %v6944_v19 }
 0x353   :  { %1092 = vmatpush1.msra.mxu0 %v5080_v29  ;;  %4034 = vmatpush3.msra.mxu1 %v5190_v55 }
 0x354   :  { %1093 = vmatprep.subr.mxu0 %v5083_v30  ;;  %4035 = vmatprep.subr.mxu1 %v6944_v19 }
 0x355   :  { %1094 = vmatpush1.msra.mxu0 %v5088_v31  ;;  %4036 = vmatpush3.msra.mxu1 %v5197_v56 }
 0x356   :  { %1095 = vmatprep.subr.mxu0 %v5097_v33  ;;  %4037 = vmatprep.subr.mxu1 %v6944_v19 }
 0x357   :  { %1096 = vmatpush1.msra.mxu0 %v5100_v34  ;;  %4038 = vmatpush3.msra.mxu1 %v5203_v57 }
 0x358   :  { %1097 = vmatprep.subr.mxu0 %v5104_v35  ;;  %4039 = vmatprep.subr.mxu1 %v6944_v19 }
 0x359   :  { %1098 = vmatpush1.msra.mxu0 %v5112_v37  ;;  %4040 = vmatpush3.msra.mxu1 %v5210_v58 }
 0x35a   :  { %1099 = vmatprep.subr.mxu0 %v5119_v39  ;;  %4041 = vmatprep.subr.mxu1 %v6944_v19 }
 0x35b   :  { %1100 = vmatpush1.msra.mxu0 %v5122_v40  ;;  %4042 = vmatpush3.msra.mxu1 %v5216_v59 }
 0x35c   :  { %1101 = vmatprep.subr.mxu0 %v5126_v41  ;;  %4043 = vmatprep.subr.mxu1 %v6944_v19 }
 0x35d   :  { %1102 = vmatpush1.msra.mxu0 %v5133_v43  ;;  %4044 = vmatpush3.msra.mxu1 %v5222_v60 }
 0x35e   :  { %1103 = vmatprep.subr.mxu0 %v5140_v45  ;;  %4045 = vmatprep.subr.mxu1 %v6944_v19 }
 0x35f   :  { %1104 = vmatpush1.msra.mxu0 %v5143_v46  ;;  %4046 = vmatpush3.msra.mxu1 %v6963_v7  ;;  %v5592_v46 = vld [vmem:[#allocation2 + $0x168] sm:$0xff] }
 0x360   :  { %1105 = vmatprep.subr.mxu0 %v6964_v8  ;;  %4047 = vmatprep.subr.mxu1 %v6944_v19  ;;  %v5692_v8 = vld [vmem:[#allocation2 + $0x48] sm:$0xff] }
 0x361   :  { %1106 = vmatpush1.msra.mxu0 %v6965_v9  ;;  %1139 = vmatprep.mubr.f32.mxu0 %v6944_v19  ;;  %v5700_v9 = vld [vmem:[#allocation2 + $0x30] sm:$0xff] }
 0x362   :  { %4048 = vmatpush3.msra.mxu1 %v6966_v11  ;;  %4049 = vmatprep.mubr.msk.f32.mxu1 %vm4906_vm1, %v6944_v19 }
 0x363   :  { %1238 = vmatprep.subr.mxu0 %v5579_v12  ;;  %4052 = vmatprep.subr.mxu1 %v6944_v19 }
 0x402   :  { %v978_v13 = vpop.f32.mrf.mxu0  ;;  %v1049_v14 = vpop.f32.mrf.mxu1 }
 0x403   :  { %v1053_v17 = vadd.f32 %v978_v13, %v6967_v16  ;;  %v1067_v33 = vadd.f32 %v5355_v6, %v1049_v14  ;;  %v5708_v13 = vld [vmem:[#allocation2 + $0x18] sm:$0xff]  ;;  %v5716_v14 = vld [vmem:[#allocation2] sm:$0xff]  ;;  %v6973_v16 = vld [vmem:[#allocation27_spill] sm:$0xff] }
 0x404   :  { %v4016_v18 = vpop.f32.mrf.mxu1  ;;  %v980_v22 = vpop.f32.mrf.mxu0  ;;  %6972 = vst [vmem:[#allocation23_spill] sm:$0xff] %v5716_v14 }
 0x405   :  { %v3509_v20 = vmul.f32 -1.442695, %v1053_v17  ;;  %v1060_v24 = vadd.f32 %v980_v22, %v6968_v23  ;;  %v6974_v23 = vld [vmem:[#allocation28_spill] sm:$0xff] }
 0x407   :  { %4557 = vpow2.f32 %v3509_v20  ;;  %v3510_v26 = vmul.f32 -1.442695, %v1060_v24 }
 0x409   :  { %4559 = vpow2.f32 %v3510_v26 }
 0x414   :  { %v4558_v28 = vpop.eup %4557 }
 0x415   :  { %v1057_v29 = vadd.f32 1.0, %v4558_v28 }
 0x416   :  { %v4560_v30 = vpop.eup %4559 }
 0x417   :  { %4561 = vrcp.f32 %v1057_v29  ;;  %v1064_v31 = vadd.f32 1.0, %v4560_v30 }
 0x419   :  { %4563 = vrcp.f32 %v1064_v31 }
 0x424   :  { %v4562_v34 = vpop.eup %4561 }
 0x425   :  { %v1068_v35 = vmul.f32 %v4562_v34, %v1067_v33 }
 0x426   :  { %v4564_v39 = vpop.eup %4563 }
 0x427   :  { %v1069_v37 = vadd.f32 %v1068_v35, %v6969_v36  ;;  %v1071_v40 = vsub.f32 1.0, %v4564_v39  ;;  %v1073_v43 = vmul.f32 %v4564_v39, %v5510_v4  ;;  %v6975_v35 = vld [vmem:[#allocation39_spill] sm:$0xff] }
 0x429   :  { %4565 = vtanh.f32 %v1069_v37 }
 0x436   :  { %v4566_v41 = vpop.eup %4565 }
 0x437   :  { %v1072_v42 = vmul.f32 %v4566_v41, %v1071_v40 }
 0x439   :  { %v5588_v45 = vadd.f32 %v1073_v43, %v1072_v42 }
 0x43b   :  { %6970 = vst [vmem:[#allocation29_spill] sm:$0xff] %v5588_v45  ;;  %1140 = vmatmul.mubr.f32.vlgmr.msra.gmra.mxu0 %v5588_v45  ;;  %4050 = vmatmul.mubr.f32.vlgmr.msra.gmra.mxu1 %v5588_v45 }
 0x43c   :  { %1239 = vmatpush1.msra.mxu0 %v5592_v46  ;;  %4053 = vmatpush3.msra.mxu1 %v5595_v38 }
 0x43d   :  { %1240 = vmatprep.subr.mxu0 %v5598_v49  ;;  %4054 = vmatprep.subr.mxu1 %v6944_v19 }
 0x43e   :  { %1241 = vmatpush1.msra.mxu0 %v5602_v61  ;;  %4055 = vmatpush3.msra.mxu1 %v5605_v15 }
 0x43f   :  { %1242 = vmatprep.subr.mxu0 %v5608_v63  ;;  %4056 = vmatprep.subr.mxu1 %v6944_v19 }
 0x440   :  { %1243 = vmatpush1.msra.mxu0 %v5612_v25  ;;  %4057 = vmatpush3.msra.mxu1 %v5150_v48  ;;  %v5632_v48 = vld [vmem:[#allocation2 + $0xf8] sm:$0xff] }
 0x441   :  { %1244 = vmatprep.subr.mxu0 %v5616_v62  ;;  %4058 = vmatprep.subr.mxu1 %v6944_v19 }
 0x442   :  { %1245 = vmatpush1.msra.mxu0 %v5620_v27  ;;  %4059 = vmatpush3.msra.mxu1 %v5158_v50  ;;  %v5640_v50 = vld [vmem:[#allocation2 + $0xe0] sm:$0xff] }
 0x443   :  { %1246 = vmatprep.subr.mxu0 %v5624_v32  ;;  %4060 = vmatprep.subr.mxu1 %v6944_v19 }
 0x444   :  { %1247 = vmatpush1.msra.mxu0 %v5628_v0  ;;  %4061 = vmatpush3.msra.mxu1 %v5164_v51  ;;  %v5648_v51 = vld [vmem:[#allocation2 + $0xc8] sm:$0xff] }
 0x445   :  { %1248 = vmatprep.subr.mxu0 %v5632_v48  ;;  %4062 = vmatprep.subr.mxu1 %v6944_v19 }
 0x446   :  { %1249 = vmatpush1.msra.mxu0 %v5636_v44  ;;  %4063 = vmatpush3.msra.mxu1 %v5169_v52  ;;  %v5656_v52 = vld [vmem:[#allocation2 + $0xb0] sm:$0xff] }
 0x447   :  { %1250 = vmatprep.subr.mxu0 %v5640_v50  ;;  %4064 = vmatprep.subr.mxu1 %v6944_v19 }
 0x448   :  { %1251 = vmatpush1.msra.mxu0 %v5644_v47  ;;  %4065 = vmatpush3.msra.mxu1 %v5176_v53  ;;  %v5664_v53 = vld [vmem:[#allocation2 + $0x98] sm:$0xff] }
 0x449   :  { %1252 = vmatprep.subr.mxu0 %v5648_v51  ;;  %4066 = vmatprep.subr.mxu1 %v6944_v19 }
 0x44a   :  { %1253 = vmatpush1.msra.mxu0 %v5652_v2  ;;  %4067 = vmatpush3.msra.mxu1 %v5184_v54  ;;  %v5672_v54 = vld [vmem:[#allocation2 + $0x80] sm:$0xff] }
 0x44b   :  { %1254 = vmatprep.subr.mxu0 %v5656_v52  ;;  %4068 = vmatprep.subr.mxu1 %v6944_v19 }
 0x44c   :  { %1255 = vmatpush1.msra.mxu0 %v5660_v3  ;;  %4069 = vmatpush3.msra.mxu1 %v5190_v55  ;;  %v5680_v55 = vld [vmem:[#allocation2 + $0x68] sm:$0xff] }
 0x44d   :  { %1256 = vmatprep.subr.mxu0 %v5664_v53  ;;  %4070 = vmatprep.subr.mxu1 %v6944_v19 }
 0x44e   :  { %1257 = vmatpush1.msra.mxu0 %v5668_v10  ;;  %4071 = vmatpush3.msra.mxu1 %v5197_v56  ;;  %v5688_v56 = vld [vmem:[#allocation2 + $0x50] sm:$0xff] }
 0x44f   :  { %1258 = vmatprep.subr.mxu0 %v5672_v54  ;;  %4072 = vmatprep.subr.mxu1 %v6944_v19 }
 0x450   :  { %1259 = vmatpush1.msra.mxu0 %v5676_v21  ;;  %4073 = vmatpush3.msra.mxu1 %v5203_v57  ;;  %v5696_v57 = vld [vmem:[#allocation2 + $0x38] sm:$0xff] }
 0x451   :  { %1260 = vmatprep.subr.mxu0 %v5680_v55  ;;  %4074 = vmatprep.subr.mxu1 %v6944_v19 }
 0x452   :  { %1261 = vmatpush1.msra.mxu0 %v5684_v1  ;;  %4075 = vmatpush3.msra.mxu1 %v5210_v58  ;;  %v5704_v58 = vld [vmem:[#allocation2 + $0x20] sm:$0xff] }
 0x453   :  { %1262 = vmatprep.subr.mxu0 %v5688_v56  ;;  %4076 = vmatprep.subr.mxu1 %v6944_v19 }
 0x454   :  { %1263 = vmatpush1.msra.mxu0 %v5692_v8  ;;  %4077 = vmatpush3.msra.mxu1 %v5216_v59  ;;  %v5712_v59 = vld [vmem:[#allocation2 + $0x8] sm:$0xff] }
 0x455   :  { %1264 = vmatprep.subr.mxu0 %v5696_v57  ;;  %4078 = vmatprep.subr.mxu1 %v6944_v19  ;;  %6971 = vst [vmem:[#allocation15_spill] sm:$0xff] %v5712_v59 }
 0x456   :  { %1265 = vmatpush1.msra.mxu0 %v5700_v9  ;;  %4079 = vmatpush3.msra.mxu1 %v5222_v60 }
 0x457   :  { %1266 = vmatprep.subr.mxu0 %v5704_v58  ;;  %4080 = vmatprep.subr.mxu1 %v6944_v19 }
 0x458   :  { %1267 = vmatpush1.msra.mxu0 %v5708_v13  ;;  %4081 = vmatpush3.msra.mxu1 %v6963_v7 }
 0x459   :  { %1268 = vmatprep.subr.mxu0 %v5712_v59  ;;  %4082 = vmatprep.subr.mxu1 %v6944_v19 }
 0x45a   :  { %1269 = vmatpush1.msra.mxu0 %v5716_v14  ;;  %1302 = vmatprep.mubr.f32.mxu0 %v6944_v19 }
 0x45b   :  { %4083 = vmatpush3.msra.mxu1 %v6966_v11  ;;  %4084 = vmatprep.mubr.msk.f32.mxu1 %vm4906_vm1, %v6944_v19 }
 0x45c   :  { %1401 = vmatprep.subr.mxu0 %v5579_v12  ;;  %4087 = vmatprep.subr.mxu1 %v6944_v19 }
 0x4fb   :  { %v1141_v60 = vpop.f32.mrf.mxu0  ;;  %v1212_v7 = vpop.f32.mrf.mxu1 }
 0x4fc   :  { %v1216_v17 = vadd.f32 %v1141_v60, %v6973_v16  ;;  %v1230_v31 = vadd.f32 %v5355_v6, %v1212_v7  ;;  %v5743_v60 = vld [vmem:[#allocation2 + $0x148] sm:$0xff]  ;;  %v5749_v7 = vld [vmem:[#allocation2 + $0x130] sm:$0xff]  ;;  %v5755_v16 = vld [vmem:[#allocation2 + $0x118] sm:$0xff] }
 0x4fd   :  { %v4051_v18 = vpop.f32.mrf.mxu1  ;;  %v1143_v22 = vpop.f32.mrf.mxu0 }
 0x4fe   :  { %v3511_v20 = vmul.f32 -1.442695, %v1216_v17  ;;  %v1223_v24 = vadd.f32 %v1143_v22, %v6974_v23  ;;  %v5761_v17 = vld [vmem:[#allocation2 + $0x100] sm:$0xff]  ;;  %v5767_v18 = vld [vmem:[#allocation2 + $0xe8] sm:$0xff]  ;;  %v5779_v22 = vld [vmem:[#allocation2 + $0xb8] sm:$0xff] }
 0x4ff   :  { %v5785_v23 = vld [vmem:[#allocation2 + $0xa0] sm:$0xff] }
 0x500   :  { %4567 = vpow2.f32 %v3511_v20  ;;  %v3512_v26 = vmul.f32 -1.442695, %v1223_v24  ;;  %v5773_v20 = vld [vmem:[#allocation2 + $0xd0] sm:$0xff]  ;;  %v5791_v24 = vld [vmem:[#allocation2 + $0x88] sm:$0xff] }
 0x502   :  { %4569 = vpow2.f32 %v3512_v26  ;;  %v5797_v26 = vld [vmem:[#allocation2 + $0x70] sm:$0xff] }
 0x50d   :  { %v4568_v11 = vpop.eup %4567 }
 0x50e   :  { %v1220_v28 = vadd.f32 1.0, %v4568_v11  ;;  %v5803_v11 = vld [vmem:[#allocation2 + $0x58] sm:$0xff] }
 0x50f   :  { %v4570_v29 = vpop.eup %4569 }
 0x510   :  { %4571 = vrcp.f32 %v1220_v28  ;;  %v1227_v30 = vadd.f32 1.0, %v4570_v29  ;;  %v5809_v28 = vld [vmem:[#allocation2 + $0x40] sm:$0xff]  ;;  %v5815_v29 = vld [vmem:[#allocation2 + $0x28] sm:$0xff] }
 0x511   :  { %6976 = vst [vmem:[#allocation24_spill] sm:$0xff] %v5815_v29 }
 0x512   :  { %4573 = vrcp.f32 %v1227_v30  ;;  %v5822_v30 = vld [vmem:[#allocation2 + $0x10] sm:$0xff] }
 0x513   :  { %6977 = vst [vmem:[#allocation37_spill] sm:$0xff] %v5822_v30 }
 0x51d   :  { %v4572_v33 = vpop.eup %4571 }
 0x51e   :  { %v1231_v34 = vmul.f32 %v4572_v33, %v1230_v31 }
 0x51f   :  { %v4574_v37 = vpop.eup %4573 }
 0x520   :  { %v1232_v36 = vadd.f32 %v1231_v34, %v6975_v35  ;;  %v1234_v39 = vsub.f32 1.0, %v4574_v37  ;;  %v1236_v42 = vmul.f32 %v4574_v37, %v5588_v45  ;;  %v6978_v34 = vld [vmem:[#allocation30_spill] sm:$0xff] }
 0x522   :  { %4575 = vtanh.f32 %v1232_v36 }
 0x52f   :  { %v4576_v40 = vpop.eup %4575 }
 0x530   :  { %v1235_v41 = vmul.f32 %v4576_v40, %v1234_v39  ;;  %v6979_v40 = vld [vmem:[#allocation31_spill] sm:$0xff] }
 0x532   :  { %v5730_v43 = vadd.f32 %v1236_v42, %v1235_v41 }
 0x534   :  { %1303 = vmatmul.mubr.f32.vlgmr.msra.gmra.mxu0 %v5730_v43  ;;  %4085 = vmatmul.mubr.f32.vlgmr.msra.gmra.mxu1 %v5730_v43 }
 0x535   :  { %1402 = vmatpush1.msra.mxu0 %v5592_v46  ;;  %4088 = vmatpush3.msra.mxu1 %v5595_v38 }
 0x536   :  { %1403 = vmatprep.subr.mxu0 %v5598_v49  ;;  %4089 = vmatprep.subr.mxu1 %v6944_v19 }
 0x537   :  { %1404 = vmatpush1.msra.mxu0 %v5602_v61  ;;  %4090 = vmatpush3.msra.mxu1 %v5605_v15 }
 0x538   :  { %1405 = vmatprep.subr.mxu0 %v5608_v63  ;;  %4091 = vmatprep.subr.mxu1 %v6944_v19 }
 0x539   :  { %1406 = vmatpush1.msra.mxu0 %v5612_v25  ;;  %4092 = vmatpush3.msra.mxu1 %v5743_v60 }
 0x53a   :  { %1407 = vmatprep.subr.mxu0 %v5616_v62  ;;  %4093 = vmatprep.subr.mxu1 %v6944_v19 }
 0x53b   :  { %1408 = vmatpush1.msra.mxu0 %v5620_v27  ;;  %4094 = vmatpush3.msra.mxu1 %v5749_v7 }
 0x53c   :  { %1409 = vmatprep.subr.mxu0 %v5624_v32  ;;  %4095 = vmatprep.subr.mxu1 %v6944_v19 }
 0x53d   :  { %1410 = vmatpush1.msra.mxu0 %v5628_v0  ;;  %4096 = vmatpush3.msra.mxu1 %v5755_v16 }
 0x53e   :  { %1411 = vmatprep.subr.mxu0 %v5632_v48  ;;  %4097 = vmatprep.subr.mxu1 %v6944_v19 }
 0x53f   :  { %1412 = vmatpush1.msra.mxu0 %v5636_v44  ;;  %4098 = vmatpush3.msra.mxu1 %v5761_v17 }
 0x540   :  { %1413 = vmatprep.subr.mxu0 %v5640_v50  ;;  %4099 = vmatprep.subr.mxu1 %v6944_v19 }
 0x541   :  { %1414 = vmatpush1.msra.mxu0 %v5644_v47  ;;  %4100 = vmatpush3.msra.mxu1 %v5767_v18 }
 0x542   :  { %1415 = vmatprep.subr.mxu0 %v5648_v51  ;;  %4101 = vmatprep.subr.mxu1 %v6944_v19 }
 0x543   :  { %1416 = vmatpush1.msra.mxu0 %v5652_v2  ;;  %4102 = vmatpush3.msra.mxu1 %v5773_v20 }
 0x544   :  { %1417 = vmatprep.subr.mxu0 %v5656_v52  ;;  %4103 = vmatprep.subr.mxu1 %v6944_v19 }
 0x545   :  { %1418 = vmatpush1.msra.mxu0 %v5660_v3  ;;  %4104 = vmatpush3.msra.mxu1 %v5779_v22 }
 0x546   :  { %1419 = vmatprep.subr.mxu0 %v5664_v53  ;;  %4105 = vmatprep.subr.mxu1 %v6944_v19 }
 0x547   :  { %1420 = vmatpush1.msra.mxu0 %v5668_v10  ;;  %4106 = vmatpush3.msra.mxu1 %v5785_v23 }
 0x548   :  { %1421 = vmatprep.subr.mxu0 %v5672_v54  ;;  %4107 = vmatprep.subr.mxu1 %v6944_v19 }
 0x549   :  { %1422 = vmatpush1.msra.mxu0 %v5676_v21  ;;  %4108 = vmatpush3.msra.mxu1 %v5791_v24 }
 0x54a   :  { %1423 = vmatprep.subr.mxu0 %v5680_v55  ;;  %4109 = vmatprep.subr.mxu1 %v6944_v19 }
 0x54b   :  { %1424 = vmatpush1.msra.mxu0 %v5684_v1  ;;  %4110 = vmatpush3.msra.mxu1 %v5797_v26 }
 0x54c   :  { %1425 = vmatprep.subr.mxu0 %v5688_v56  ;;  %4111 = vmatprep.subr.mxu1 %v6944_v19 }
 0x54d   :  { %1426 = vmatpush1.msra.mxu0 %v5692_v8  ;;  %4112 = vmatpush3.msra.mxu1 %v5803_v11 }
 0x54e   :  { %1427 = vmatprep.subr.mxu0 %v5696_v57  ;;  %4113 = vmatprep.subr.mxu1 %v6944_v19 }
 0x54f   :  { %1428 = vmatpush1.msra.mxu0 %v5700_v9  ;;  %4114 = vmatpush3.msra.mxu1 %v5809_v28 }
 0x550   :  { %1429 = vmatprep.subr.mxu0 %v5704_v58  ;;  %4115 = vmatprep.subr.mxu1 %v6944_v19 }
 0x551   :  { %1430 = vmatpush1.msra.mxu0 %v5708_v13  ;;  %4116 = vmatpush3.msra.mxu1 %v5815_v29  ;;  %v6980_v29 = vld [vmem:[#allocation38_spill] sm:$0xff] }
 0x552   :  { %1431 = vmatprep.subr.mxu0 %v5712_v59  ;;  %4117 = vmatprep.subr.mxu1 %v6944_v19 }
 0x553   :  { %1432 = vmatpush1.msra.mxu0 %v5716_v14  ;;  %1465 = vmatprep.mubr.f32.mxu0 %v6944_v19 }
 0x554   :  { %4118 = vmatpush3.msra.mxu1 %v5822_v30  ;;  %4119 = vmatprep.mubr.msk.f32.mxu1 %vm4906_vm1, %v6944_v19 }
 0x555   :  { %1564 = vmatprep.subr.mxu0 %v5579_v12  ;;  %4122 = vmatprep.subr.mxu1 %v6944_v19 }
 0x5f4   :  { %v1304_v31 = vpop.f32.mrf.mxu0  ;;  %v1375_v33 = vpop.f32.mrf.mxu1 }
 0x5f5   :  { %v1379_v35 = vadd.f32 %v1304_v31, %v6978_v34  ;;  %v1393_v12 = vadd.f32 %v5355_v6, %v1375_v33  ;;  %v6981_v6 = vld [vmem:[#allocation24_spill] sm:$0xff]  ;;  %v1754_v33 = vld [vmem:[#allocation5 + $0xd8] sm:$0xff] }
 0x5f6   :  { %v4086_v36 = vpop.f32.mrf.mxu1  ;;  %v1306_v39 = vpop.f32.mrf.mxu0 }
 0x5f7   :  { %v3513_v37 = vmul.f32 -1.442695, %v1379_v35  ;;  %v1386_v41 = vadd.f32 %v1306_v39, %v6979_v40 }
 0x5f9   :  { %4577 = vpow2.f32 %v3513_v37  ;;  %v3514_v42 = vmul.f32 -1.442695, %v1386_v41  ;;  %v1752_v41 = vld [vmem:[#allocation5 + $0xc8] sm:$0xff] }
 0x5fb   :  { %4579 = vpow2.f32 %v3514_v42  ;;  %v1753_v42 = vld [vmem:[#allocation5 + $0xd0] sm:$0xff] }
 0x606   :  { %v4578_v45 = vpop.eup %4577 }
 0x607   :  { %v1383_v4 = vadd.f32 1.0, %v4578_v45  ;;  %v6984_v45 = vld [vmem:[#allocation37_spill] sm:$0xff] }
 0x608   :  { %v4580_v5 = vpop.eup %4579 }
 0x609   :  { %4581 = vrcp.f32 %v1383_v4  ;;  %v1390_v30 = vadd.f32 1.0, %v4580_v5  ;;  %v6982_v5 = vld [vmem:[#allocation15_spill] sm:$0xff] }
 0x60a   :  { %v6983_v4 = vld [vmem:[#allocation23_spill] sm:$0xff] }
 0x60b   :  { %4583 = vrcp.f32 %v1390_v30  ;;  %v1756_v30 = vld [vmem:[#allocation5 + $0xe8] sm:$0xff] }
 0x616   :  { %v4582_v14 = vpop.eup %4581 }
 0x617   :  { %v1394_v59 = vmul.f32 %v4582_v14, %v1393_v12  ;;  %v1767_v14 = vld [vmem:[#allocation5 + $0x140] sm:$0xff] }
 0x618   :  { %v4584_v34 = vpop.eup %4583  ;;  %v1751_v12 = vld [vmem:[#allocation5 + $0xc0] sm:$0xff] }
 0x619   :  { %v1395_v31 = vadd.f32 %v1394_v59, %v6980_v29  ;;  %v1397_v35 = vsub.f32 1.0, %v4584_v34  ;;  %v1399_v39 = vmul.f32 %v4584_v34, %v5730_v43  ;;  %v1769_v59 = vld [vmem:[#allocation5 + $0x150] sm:$0xff]  ;;  %v1755_v29 = vld [vmem:[#allocation5 + $0xe0] sm:$0xff]  ;;  %v1750_v34 = vld [vmem:[#allocation5 + $0xb8] sm:$0xff] }
 0x61b   :  { %4585 = vtanh.f32 %v1395_v31  ;;  %v1749_v31 = vld [vmem:[#allocation5 + $0xb0] sm:$0xff] }
 0x628   :  { %v4586_v36 = vpop.eup %4585 }
 0x629   :  { %v1398_v37 = vmul.f32 %v4586_v36, %v1397_v35  ;;  %v1748_v35 = vld [vmem:[#allocation5 + $0xa8] sm:$0xff]  ;;  %v1746_v36 = vld [vmem:[#allocation5 + $0x98] sm:$0xff] }
 0x62b   :  { %v5834_v40 = vadd.f32 %v1399_v39, %v1398_v37  ;;  %v1747_v37 = vld [vmem:[#allocation5 + $0xa0] sm:$0xff]  ;;  %v1745_v39 = vld [vmem:[#allocation5 + $0x90] sm:$0xff] }
 0x62d   :  { %1466 = vmatmul.mubr.f32.vlgmr.msra.gmra.mxu0 %v5834_v40  ;;  %4120 = vmatmul.mubr.f32.vlgmr.msra.gmra.mxu1 %v5834_v40 }
 0x62e   :  { %1565 = vmatpush1.msra.mxu0 %v5592_v46  ;;  %4123 = vmatpush3.msra.mxu1 %v5595_v38  ;;  %v1773_v46 = vld [vmem:[#allocation5 + $0x170] sm:$0xff]  ;;  %v1774_v38 = vld [vmem:[#allocation5 + $0x178] sm:$0xff] }
 0x62f   :  { %1566 = vmatprep.subr.mxu0 %v5598_v49  ;;  %4124 = vmatprep.subr.mxu1 %v6944_v19 }
 0x630   :  { %1567 = vmatpush1.msra.mxu0 %v5602_v61  ;;  %4125 = vmatpush3.msra.mxu1 %v5605_v15  ;;  %v6985_v15 = vld [vmem:[#allocation32_spill] sm:$0xff] }
 0x631   :  { %1568 = vmatprep.subr.mxu0 %v5608_v63  ;;  %4126 = vmatprep.subr.mxu1 %v6944_v19 }
 0x632   :  { %1569 = vmatpush1.msra.mxu0 %v5612_v25  ;;  %4127 = vmatpush3.msra.mxu1 %v5743_v60  ;;  %v1768_v60 = vld [vmem:[#allocation5 + $0x148] sm:$0xff] }
 0x633   :  { %1570 = vmatprep.subr.mxu0 %v5616_v62  ;;  %4128 = vmatprep.subr.mxu1 %v6944_v19 }
 0x634   :  { %1571 = vmatpush1.msra.mxu0 %v5620_v27  ;;  %4129 = vmatpush3.msra.mxu1 %v5749_v7  ;;  %v1766_v7 = vld [vmem:[#allocation5 + $0x138] sm:$0xff] }
 0x635   :  { %1572 = vmatprep.subr.mxu0 %v5624_v32  ;;  %4130 = vmatprep.subr.mxu1 %v6944_v19  ;;  %v6986_v32 = vld [vmem:[#allocation33_spill] sm:$0xff] }
 0x636   :  { %1573 = vmatpush1.msra.mxu0 %v5628_v0  ;;  %4131 = vmatpush3.msra.mxu1 %v5755_v16  ;;  %v6988_v16 = vld [vmem:[#allocation42_spill] sm:$0xff] }
 0x637   :  { %1574 = vmatprep.subr.mxu0 %v5632_v48  ;;  %4132 = vmatprep.subr.mxu1 %v6944_v19 }
 0x638   :  { %1575 = vmatpush1.msra.mxu0 %v5636_v44  ;;  %4133 = vmatpush3.msra.mxu1 %v5761_v17  ;;  %v1764_v17 = vld [vmem:[#allocation5 + $0x128] sm:$0xff] }
 0x639   :  { %1576 = vmatprep.subr.mxu0 %v5640_v50  ;;  %4134 = vmatprep.subr.mxu1 %v6944_v19 }
 0x63a   :  { %1577 = vmatpush1.msra.mxu0 %v5644_v47  ;;  %4135 = vmatpush3.msra.mxu1 %v5767_v18  ;;  %v1765_v18 = vld [vmem:[#allocation5 + $0x130] sm:$0xff] }
 0x63b   :  { %1578 = vmatprep.subr.mxu0 %v5648_v51  ;;  %4136 = vmatprep.subr.mxu1 %v6944_v19 }
 0x63c   :  { %1579 = vmatpush1.msra.mxu0 %v5652_v2  ;;  %4137 = vmatpush3.msra.mxu1 %v5773_v20  ;;  %v5908_v2 = vld [vmem:[%s6857_s4] ss:$0 sm:$0xff] }
 0x63d   :  { %1580 = vmatprep.subr.mxu0 %v5656_v52  ;;  %4138 = vmatprep.subr.mxu1 %v6944_v19  ;;  %v1763_v20 = vld [vmem:[#allocation5 + $0x120] sm:$0xff] }
 0x63e   :  { %1581 = vmatpush1.msra.mxu0 %v5660_v3  ;;  %4139 = vmatpush3.msra.mxu1 %v5779_v22  ;;  %v1761_v22 = vld [vmem:[#allocation5 + $0x110] sm:$0xff] }
 0x63f   :  { %1582 = vmatprep.subr.mxu0 %v5664_v53  ;;  %4140 = vmatprep.subr.mxu1 %v6944_v19 }
 0x640   :  { %1583 = vmatpush1.msra.mxu0 %v5668_v10  ;;  %4141 = vmatpush3.msra.mxu1 %v5785_v23  ;;  %v6987_v10 = vld [vmem:[#allocation41_spill] sm:$0xff] }
 0x641   :  { %1584 = vmatprep.subr.mxu0 %v5672_v54  ;;  %4142 = vmatprep.subr.mxu1 %v6944_v19  ;;  %v1762_v23 = vld [vmem:[#allocation5 + $0x118] sm:$0xff] }
 0x642   :  { %1585 = vmatpush1.msra.mxu0 %v5676_v21  ;;  %4143 = vmatpush3.msra.mxu1 %v5791_v24  ;;  %v1760_v24 = vld [vmem:[#allocation5 + $0x108] sm:$0xff] }
 0x643   :  { %1586 = vmatprep.subr.mxu0 %v5680_v55  ;;  %4144 = vmatprep.subr.mxu1 %v6944_v19 }
 0x644   :  { %1587 = vmatpush1.msra.mxu0 %v5684_v1  ;;  %4145 = vmatpush3.msra.mxu1 %v5797_v26  ;;  %v1758_v26 = vld [vmem:[#allocation5 + $0xf8] sm:$0xff] }
 0x645   :  { %1588 = vmatprep.subr.mxu0 %v5688_v56  ;;  %4146 = vmatprep.subr.mxu1 %v6944_v19 }
 0x646   :  { %1589 = vmatpush1.msra.mxu0 %v5692_v8  ;;  %4147 = vmatpush3.msra.mxu1 %v5803_v11  ;;  %v1759_v11 = vld [vmem:[#allocation5 + $0x100] sm:$0xff] }
 0x647   :  { %1590 = vmatprep.subr.mxu0 %v5696_v57  ;;  %4148 = vmatprep.subr.mxu1 %v6944_v19 }
 0x648   :  { %1591 = vmatpush1.msra.mxu0 %v5700_v9  ;;  %4149 = vmatpush3.msra.mxu1 %v5809_v28  ;;  %v1772_v9 = vld [vmem:[#allocation5 + $0x168] sm:$0xff]  ;;  %v1757_v28 = vld [vmem:[#allocation5 + $0xf0] sm:$0xff] }
 0x649   :  { %1592 = vmatprep.subr.mxu0 %v5704_v58  ;;  %4150 = vmatprep.subr.mxu1 %v6944_v19  ;;  %v1770_v58 = vld [vmem:[#allocation5 + $0x158] sm:$0xff] }
 0x64a   :  { %1593 = vmatpush1.msra.mxu0 %v5708_v13  ;;  %4151 = vmatpush3.msra.mxu1 %v6981_v6  ;;  %v1771_v13 = vld [vmem:[#allocation5 + $0x160] sm:$0xff] }
 0x64b   :  { %1594 = vmatprep.subr.mxu0 %v6982_v5  ;;  %4152 = vmatprep.subr.mxu1 %v6944_v19  ;;  %v1743_v6 = vld [vmem:[#allocation5 + $0x80] sm:$0xff]  ;;  %v1744_v5 = vld [vmem:[#allocation5 + $0x88] sm:$0xff] }
 0x64c   :  { %1595 = vmatpush1.msra.mxu0 %v6983_v4  ;;  %4153 = vmatpush3.msra.mxu1 %v6984_v45  ;;  %v1742_v4 = vld [vmem:[#allocation5 + $0x78] sm:$0xff]  ;;  %v1740_v45 = vld [vmem:[#allocation5 + $0x68] sm:$0xff] }
 0x64d   :  { %1628 = vmatprep.mubr.f32.mxu0 %v6944_v19  ;;  %4154 = vmatprep.mubr.msk.f32.mxu1 %vm4906_vm1, %v6944_v19 }
 0x64e   :  { %1792 = vmatprep.subr.mxu0 %v1773_v46  ;;  %4157 = vmatprep.subr.mxu1 %v1774_v38  ;;  %v1741_v46 = vld [vmem:[#allocation5 + $0x70] sm:$0xff] }
 0x6ed   :  { %v1467_v49 = vpop.f32.mrf.mxu0  ;;  %v1538_v61 = vpop.f32.mrf.mxu1 }
 0x6ee   :  { %v1542_v63 = vadd.f32 %v1467_v49, %v6985_v15  ;;  %v1556_v52 = vadd.f32 %v5908_v2, %v1538_v61  ;;  %v1737_v49 = vld [vmem:[#allocation5 + $0x50] sm:$0xff]  ;;  %v1738_v61 = vld [vmem:[#allocation5 + $0x58] sm:$0xff]  ;;  %v1736_v15 = vld [vmem:[#allocation5 + $0x48] sm:$0xff] }
 0x6ef   :  { %v4121_v25 = vpop.f32.mrf.mxu1  ;;  %v1469_v27 = vpop.f32.mrf.mxu0 }
 0x6f0   :  { %v3515_v62 = vmul.f32 -1.442695, %v1542_v63  ;;  %v1549_v0 = vadd.f32 %v1469_v27, %v6986_v32  ;;  %v1734_v63 = vld [vmem:[#allocation5 + $0x38] sm:$0xff]  ;;  %v1735_v25 = vld [vmem:[#allocation5 + $0x40] sm:$0xff]  ;;  %v1732_v32 = vld [vmem:[#allocation5 + $0x28] sm:$0xff] }
 0x6f1   :  { %v1731_v27 = vld [vmem:[#allocation5 + $0x20] sm:$0xff] }
 0x6f2   :  { %4587 = vpow2.f32 %v3515_v62  ;;  %v3516_v48 = vmul.f32 -1.442695, %v1549_v0  ;;  %v1733_v62 = vld [vmem:[#allocation5 + $0x30] sm:$0xff]  ;;  %v1730_v0 = vld [vmem:[#allocation5 + $0x18] sm:$0xff] }
 0x6f4   :  { %4589 = vpow2.f32 %v3516_v48  ;;  %v1728_v48 = vld [vmem:[#allocation5 + $0x8] sm:$0xff] }
 0x6ff   :  { %v4588_v44 = vpop.eup %4587 }
 0x700   :  { %v1546_v50 = vadd.f32 1.0, %v4588_v44  ;;  %v1729_v44 = vld [vmem:[#allocation5 + $0x10] sm:$0xff] }
 0x701   :  { %v4590_v47 = vpop.eup %4589 }
 0x702   :  { %4591 = vrcp.f32 %v1546_v50  ;;  %v1553_v51 = vadd.f32 1.0, %v4590_v47  ;;  %v1727_v50 = vld [vmem:[#allocation5] sm:$0xff]  ;;  %v6989_v47 = vld [vmem:[#allocation21_spill] sm:$0xff] }
 0x704   :  { %4593 = vrcp.f32 %v1553_v51  ;;  %v6990_v51 = vld [vmem:[#allocation22_spill] sm:$0xff] }
 0x70f   :  { %v4592_v3 = vpop.eup %4591 }
 0x710   :  { %v1557_v53 = vmul.f32 %v4592_v3, %v1556_v52  ;;  %v6991_v52 = vld [vmem:[#allocation29_spill] sm:$0xff]  ;;  %v5940_v3 = vld [vmem:[#allocation7 + $0x170] sm:$0xff] }
 0x711   :  { %v4594_v21 = vpop.eup %4593  ;;  %6992 = vst [vmem:[#allocation18_spill] sm:$0xff] %v5940_v3 }
 0x712   :  { %v1558_v54 = vadd.f32 %v1557_v53, %v6987_v10  ;;  %v1560_v55 = vsub.f32 1.0, %v4594_v21  ;;  %v1562_v8 = vmul.f32 %v4594_v21, %v5834_v40  ;;  %v5943_v53 = vld [vmem:[#allocation7 + $0x168] sm:$0xff]  ;;  %v5946_v10 = vld [vmem:[#allocation7 + $0x158] sm:$0xff] }
 0x713   :  { %v5958_v21 = vld [vmem:[#allocation7 + $0x128] sm:$0xff] }
 0x714   :  { %4595 = vtanh.f32 %v1558_v54  ;;  %v5955_v54 = vld [vmem:[#allocation7 + $0x138] sm:$0xff] }
 0x721   :  { %v4596_v1 = vpop.eup %4595 }
 0x722   :  { %v1561_v56 = vmul.f32 %v4596_v1, %v1560_v55  ;;  %v5961_v55 = vld [vmem:[#allocation7 + $0x120] sm:$0xff]  ;;  %v5964_v1 = vld [vmem:[#allocation7 + $0x110] sm:$0xff] }
 0x724   :  { %v5913_v57 = vadd.f32 %v1562_v8, %v1561_v56  ;;  %v5967_v56 = vld [vmem:[#allocation7 + $0x108] sm:$0xff]  ;;  %v5970_v8 = vld [vmem:[#allocation7 + $0xf8] sm:$0xff] }
 0x726   :  { %1629 = vmatmul.mubr.f32.vlgmr.msra.gmra.mxu0 %v5913_v57  ;;  %4155 = vmatmul.mubr.f32.vlgmr.msra.gmra.mxu1 %v5913_v57 }
 0x727   :  { %1793 = vmatpush1.msra.mxu0 %v1772_v9  ;;  %4158 = vmatpush3.msra.mxu1 %v1774_v38  ;;  %v1739_v38 = vld [vmem:[#allocation5 + $0x60] sm:$0xff]  ;;  %v5973_v9 = vld [vmem:[#allocation7 + $0xf0] sm:$0xff] }
 0x728   :  { %1794 = vmatprep.subr.mxu0 %v1770_v58  ;;  %4159 = vmatprep.subr.mxu1 %v1771_v13  ;;  %v5976_v58 = vld [vmem:[#allocation7 + $0xe0] sm:$0xff] }
 0x729   :  { %4189 = vmatprep.mubr.f32.mxu1 %v6988_v16  ;;  %1795 = vmatpush1.msra.mxu0 %v1769_v59  ;;  %v5982_v59 = vld [vmem:[#allocation7 + $0xc8] sm:$0xff] }
 0x72a   :  { %4160 = vmatpush3.msra.mxu1 %v1771_v13  ;;  %1796 = vmatprep.subr.mxu0 %v1767_v14  ;;  %v5979_v13 = vld [vmem:[#allocation7 + $0xd8] sm:$0xff]  ;;  %v5985_v14 = vld [vmem:[#allocation7 + $0xc0] sm:$0xff] }
 0x72b   :  { %4161 = vmatprep.subr.mxu1 %v1768_v60  ;;  %1797 = vmatpush1.msra.mxu0 %v1766_v7  ;;  %v5991_v7 = vld [vmem:[#allocation7 + $0xa8] sm:$0xff] }
 0x72c   :  { %4162 = vmatpush3.msra.mxu1 %v1768_v60  ;;  %1798 = vmatprep.subr.mxu0 %v1764_v17  ;;  %v5988_v60 = vld [vmem:[#allocation7 + $0xb0] sm:$0xff] }
 0x72d   :  { %4163 = vmatprep.subr.mxu1 %v1765_v18  ;;  %1799 = vmatpush1.msra.mxu0 %v1763_v20  ;;  %v5997_v17 = vld [vmem:[#allocation7 + $0x90] sm:$0xff]  ;;  %v6003_v20 = vld [vmem:[#allocation7 + $0x78] sm:$0xff] }
 0x72e   :  { %4164 = vmatpush3.msra.mxu1 %v1765_v18  ;;  %1800 = vmatprep.subr.mxu0 %v1761_v22  ;;  %v6000_v18 = vld [vmem:[#allocation7 + $0x80] sm:$0xff]  ;;  %v6006_v22 = vld [vmem:[#allocation7 + $0x68] sm:$0xff] }
 0x72f   :  { %4165 = vmatprep.subr.mxu1 %v1762_v23  ;;  %1801 = vmatpush1.msra.mxu0 %v1760_v24  ;;  %v6012_v24 = vld [vmem:[#allocation7 + $0x50] sm:$0xff] }
 0x730   :  { %4166 = vmatpush3.msra.mxu1 %v1762_v23  ;;  %1802 = vmatprep.subr.mxu0 %v1758_v26  ;;  %v6009_v23 = vld [vmem:[#allocation7 + $0x60] sm:$0xff]  ;;  %v6015_v26 = vld [vmem:[#allocation7 + $0x48] sm:$0xff] }
 0x731   :  { %4167 = vmatprep.subr.mxu1 %v1759_v11  ;;  %1803 = vmatpush1.msra.mxu0 %v1757_v28  ;;  %v6021_v28 = vld [vmem:[#allocation7 + $0x30] sm:$0xff] }
 0x732   :  { %4168 = vmatpush3.msra.mxu1 %v1759_v11  ;;  %1804 = vmatprep.subr.mxu0 %v1755_v29  ;;  %v6018_v11 = vld [vmem:[#allocation7 + $0x38] sm:$0xff]  ;;  %v6024_v29 = vld [vmem:[#allocation7 + $0x20] sm:$0xff] }
 0x733   :  { %4169 = vmatprep.subr.mxu1 %v1756_v30  ;;  %1805 = vmatpush1.msra.mxu0 %v1754_v33  ;;  %v6030_v33 = vld [vmem:[#allocation7 + $0x8] sm:$0xff] }
 0x734   :  { %4170 = vmatpush3.msra.mxu1 %v1756_v30  ;;  %1806 = vmatprep.subr.mxu0 %v1752_v41  ;;  %v6027_v30 = vld [vmem:[#allocation7 + $0x18] sm:$0xff]  ;;  %6994 = vst [vmem:[#allocation17_spill] sm:$0xff] %v6030_v33  ;;  %v6032_v41 = vld [vmem:[#allocation7] sm:$0xff] }
 0x735   :  { %4171 = vmatprep.subr.mxu1 %v1753_v42  ;;  %1807 = vmatpush1.msra.mxu0 %v1751_v12  ;;  %6993 = vst [vmem:[#allocation16_spill] sm:$0xff] %v6027_v30  ;;  %6995 = vst [vmem:[#allocation19_spill] sm:$0xff] %v6032_v41  ;;  %v6037_v12 = vld [vmem:[#allocation7 + $0x160] sm:$0xff] }
 0x736   :  { %4172 = vmatpush3.msra.mxu1 %v1753_v42  ;;  %1808 = vmatprep.subr.mxu0 %v1749_v31  ;;  %v6035_v42 = vld [vmem:[#allocation7 + $0x178] sm:$0xff]  ;;  %v6042_v31 = vld [vmem:[#allocation7 + $0x148] sm:$0xff] }
 0x737   :  { %4173 = vmatprep.subr.mxu1 %v1750_v34  ;;  %1809 = vmatpush1.msra.mxu0 %v1748_v35  ;;  %v6051_v35 = vld [vmem:[#allocation7 + $0x118] sm:$0xff] }
 0x738   :  { %4174 = vmatpush3.msra.mxu1 %v1750_v34  ;;  %1810 = vmatprep.subr.mxu0 %v1746_v36  ;;  %v6047_v34 = vld [vmem:[#allocation7 + $0x130] sm:$0xff]  ;;  %v6055_v36 = vld [vmem:[#allocation7 + $0x100] sm:$0xff] }
 0x739   :  { %4175 = vmatprep.subr.mxu1 %v1747_v37  ;;  %1811 = vmatpush1.msra.mxu0 %v1745_v39  ;;  %v6063_v39 = vld [vmem:[#allocation7 + $0xd0] sm:$0xff] }
 0x73a   :  { %4176 = vmatpush3.msra.mxu1 %v1747_v37  ;;  %1812 = vmatprep.subr.mxu0 %v1743_v6  ;;  %v6059_v37 = vld [vmem:[#allocation7 + $0xe8] sm:$0xff]  ;;  %v6067_v6 = vld [vmem:[#allocation7 + $0xb8] sm:$0xff] }
 0x73b   :  { %4177 = vmatprep.subr.mxu1 %v1744_v5  ;;  %1813 = vmatpush1.msra.mxu0 %v1742_v4  ;;  %v6075_v4 = vld [vmem:[#allocation7 + $0x88] sm:$0xff] }
 0x73c   :  { %4178 = vmatpush3.msra.mxu1 %v1744_v5  ;;  %1814 = vmatprep.subr.mxu0 %v1740_v45  ;;  %v6071_v5 = vld [vmem:[#allocation7 + $0xa0] sm:$0xff]  ;;  %v6079_v45 = vld [vmem:[#allocation7 + $0x70] sm:$0xff] }
 0x73d   :  { %4179 = vmatprep.subr.mxu1 %v1741_v46  ;;  %1815 = vmatpush1.msra.mxu0 %v1739_v38  ;;  %v6087_v38 = vld [vmem:[#allocation7 + $0x40] sm:$0xff] }
 0x73e   :  { %4180 = vmatpush3.msra.mxu1 %v1741_v46  ;;  %1816 = vmatprep.subr.mxu0 %v1737_v49  ;;  %v6083_v46 = vld [vmem:[#allocation7 + $0x58] sm:$0xff]  ;;  %v6091_v49 = vld [vmem:[#allocation7 + $0x28] sm:$0xff] }
 0x73f   :  { %4181 = vmatprep.subr.mxu1 %v1738_v61  ;;  %1817 = vmatpush1.msra.mxu0 %v1736_v15  ;;  %6996 = vst [vmem:[#allocation25_spill] sm:$0xff] %v6091_v49 }
 0x740   :  { %4182 = vmatpush3.msra.mxu1 %v1738_v61  ;;  %1818 = vmatprep.subr.mxu0 %v1734_v63  ;;  %v6095_v61 = vld [vmem:[#allocation7 + $0x10] sm:$0xff] }
 0x741   :  { %4183 = vmatprep.subr.mxu1 %v1735_v25  ;;  %1819 = vmatpush1.msra.mxu0 %v1733_v62  ;;  %6997 = vst [vmem:[#allocation26_spill] sm:$0xff] %v6095_v61 }
 0x742   :  { %4184 = vmatpush3.msra.mxu1 %v1735_v25  ;;  %1820 = vmatprep.subr.mxu0 %v1731_v27  ;;  %v6998_v25 = vld [vmem:[#allocation34_spill] sm:$0xff] }
 0x743   :  { %4185 = vmatprep.subr.mxu1 %v1732_v32  ;;  %1821 = vmatpush1.msra.mxu0 %v1730_v0 }
 0x744   :  { %4186 = vmatpush3.msra.mxu1 %v1732_v32  ;;  %1822 = vmatprep.subr.mxu0 %v1728_v48  ;;  %v6999_v48 = vld [vmem:[#allocation35_spill] sm:$0xff] }
 0x745   :  { %4187 = vmatprep.subr.mxu1 %v1729_v44  ;;  %1823 = vmatpush1.msra.mxu0 %v1727_v50 }
 0x746   :  { %1856 = vmatprep.mubr.f32.mxu0 %v6944_v19  ;;  %4188 = vmatpush3.msra.mxu1 %v1729_v44 }
 0x747   :  { %1857 = vmatmul.mubr.f32.vlgmr.msra.gmra.mxu0 %v6988_v16  ;;  %4190 = vmatmul.mubr.f32.vlgmr.msra.gmra.mxu1 %v6989_v47  ;;  %v5994_v16 = vld [vmem:[#allocation7 + $0x98] sm:$0xff] }
 0x748   :  { %4192 = vmatprep.mubr.f32.mxu1 %v6990_v51  ;;  %1862 = vmatprep.mubr.f32.mxu0 %v6944_v19 }
 0x749   :  { %4201 = vmatprep.subr.mxu1 %v6944_v19  ;;  %2059 = vmatprep.subr.mxu0 %v5940_v3 }
 0x74a   :  { %2060 = vmatpush1.msra.mxu0 %v5943_v53  ;;  %4202 = vmatpush3.msra.mxu1 %v6035_v42 }
 0x74b   :  { %1863 = vmatmul.mubr.f32.gmra.mxu0 %v6989_v47  ;;  %4193 = vmatmul.mubr.f32.gmra.mxu1 %v6991_v52 }
 0x74c   :  { %4195 = vmatprep.mubr.f32.mxu1 %v5730_v43  ;;  %1868 = vmatprep.mubr.f32.mxu0 %v6944_v19 }
 0x74d   :  { %2061 = vmatprep.subr.mxu0 %v5946_v10  ;;  %4203 = vmatprep.subr.mxu1 %v6944_v19 }
 0x74e   :  { %4204 = vmatpush3.msra.mxu1 %v6037_v12 }
 0x74f   :  { %1869 = vmatmul.mubr.f32.gmra.mxu0 %v6990_v51  ;;  %4196 = vmatmul.mubr.f32.gmra.mxu1 %v5834_v40 }
 0x750   :  { %4198 = vmatprep.mubr.f32.mxu1 %v5913_v57  ;;  %1874 = vmatprep.mubr.f32.mxu0 %v6944_v19 }
 0x751   :  { %4205 = vmatprep.subr.mxu1 %v6944_v19 }
 0x752   :  { %4206 = vmatpush3.msra.mxu1 %v6042_v31 }
 0x753   :  { %1875 = vmatmul.mubr.f32.gmra.mxu0 %v6991_v52  ;;  %4207 = vmatprep.subr.mxu1 %v6944_v19 }
 0x754   :  { %1880 = vmatprep.mubr.f32.mxu0 %v6944_v19  ;;  %4208 = vmatpush3.msra.mxu1 %v6047_v34 }
 0x755   :  { %4209 = vmatprep.subr.mxu1 %v6944_v19 }
 0x756   :  { %4210 = vmatpush3.msra.mxu1 %v6051_v35 }
 0x757   :  { %1881 = vmatmul.mubr.f32.gmra.mxu0 %v5730_v43  ;;  %v5949_v43 = vld [vmem:[#allocation7 + $0x150] sm:$0xff]  ;;  %4211 = vmatprep.subr.mxu1 %v6944_v19 }
 0x758   :  { %1886 = vmatprep.mubr.f32.mxu0 %v6944_v19  ;;  %2062 = vmatpush1.msra.mxu0 %v5949_v43 }
 0x759   :  { %4212 = vmatpush3.msra.mxu1 %v6055_v36 }
 0x75a   :  { %4213 = vmatprep.subr.mxu1 %v6944_v19 }
 0x75b   :  { %1887 = vmatmul.mubr.f32.gmra.mxu0 %v5834_v40  ;;  %v5952_v40 = vld [vmem:[#allocation7 + $0x140] sm:$0xff]  ;;  %4214 = vmatpush3.msra.mxu1 %v6059_v37 }
 0x75c   :  { %1892 = vmatprep.mubr.f32.mxu0 %v6944_v19  ;;  %2063 = vmatprep.subr.mxu0 %v5952_v40 }
 0x75d   :  { %2064 = vmatpush1.msra.mxu0 %v5955_v54  ;;  %4215 = vmatprep.subr.mxu1 %v6944_v19 }
 0x75e   :  { %2065 = vmatprep.subr.mxu0 %v5958_v21  ;;  %4216 = vmatpush3.msra.mxu1 %v6063_v39 }
 0x75f   :  { %1893 = vmatmul.mubr.f32.gmra.mxu0 %v5913_v57  ;;  %4217 = vmatprep.subr.mxu1 %v6944_v19 }
 0x760   :  { %1898 = vmatprep.mubr.f32.mxu0 %v6944_v19  ;;  %2066 = vmatpush1.msra.mxu0 %v5961_v55 }
 0x761   :  { %2067 = vmatprep.subr.mxu0 %v5964_v1  ;;  %4218 = vmatpush3.msra.mxu1 %v6067_v6 }
 0x762   :  { %2068 = vmatpush1.msra.mxu0 %v5967_v56  ;;  %4219 = vmatprep.subr.mxu1 %v6944_v19 }
 0x763   :  { %2069 = vmatprep.subr.mxu0 %v5970_v8  ;;  %4220 = vmatpush3.msra.mxu1 %v6071_v5 }
 0x764   :  { %2070 = vmatpush1.msra.mxu0 %v5973_v9  ;;  %4221 = vmatprep.subr.mxu1 %v6944_v19 }
 0x765   :  { %2071 = vmatprep.subr.mxu0 %v5976_v58  ;;  %4222 = vmatpush3.msra.mxu1 %v6075_v4 }
 0x766   :  { %2072 = vmatpush1.msra.mxu0 %v5979_v13  ;;  %4223 = vmatprep.subr.mxu1 %v6944_v19 }
 0x767   :  { %2073 = vmatprep.subr.mxu0 %v5982_v59  ;;  %4224 = vmatpush3.msra.mxu1 %v6079_v45 }
 0x768   :  { %2074 = vmatpush1.msra.mxu0 %v5985_v14  ;;  %4225 = vmatprep.subr.mxu1 %v6944_v19 }
 0x769   :  { %2075 = vmatprep.subr.mxu0 %v5988_v60  ;;  %4226 = vmatpush3.msra.mxu1 %v6083_v46 }
 0x76a   :  { %2076 = vmatpush1.msra.mxu0 %v5991_v7  ;;  %4227 = vmatprep.subr.mxu1 %v6944_v19 }
 0x76b   :  { %2077 = vmatprep.subr.mxu0 %v5994_v16  ;;  %4228 = vmatpush3.msra.mxu1 %v6087_v38 }
 0x76c   :  { %2078 = vmatpush1.msra.mxu0 %v5997_v17  ;;  %4229 = vmatprep.subr.mxu1 %v6944_v19 }
 0x76d   :  { %2079 = vmatprep.subr.mxu0 %v6000_v18  ;;  %4230 = vmatpush3.msra.mxu1 %v6091_v49  ;;  %v7000_v49 = vld [vmem:[#allocation40_spill] sm:$0xff] }
 0x76e   :  { %2080 = vmatpush1.msra.mxu0 %v6003_v20  ;;  %4231 = vmatprep.subr.mxu1 %v6944_v19 }
 0x76f   :  { %2081 = vmatprep.subr.mxu0 %v6006_v22  ;;  %4232 = vmatpush3.msra.mxu1 %v6095_v61 }
 0x770   :  { %2082 = vmatpush1.msra.mxu0 %v6009_v23  ;;  %4236 = vmatprep.subr.mxu1 %v6944_v19 }
 0x771   :  { %2083 = vmatprep.subr.mxu0 %v6012_v24 }
 0x772   :  { %2084 = vmatpush1.msra.mxu0 %v6015_v26 }
 0x773   :  { %2085 = vmatprep.subr.mxu0 %v6018_v11 }
 0x774   :  { %2086 = vmatpush1.msra.mxu0 %v6021_v28 }
 0x775   :  { %2087 = vmatprep.subr.mxu0 %v6024_v29 }
 0x776   :  { %2088 = vmatpush1.msra.mxu0 %v6027_v30 }
 0x777   :  { %2089 = vmatprep.subr.mxu0 %v6030_v33 }
 0x778   :  { %2090 = vmatpush1.msra.mxu0 %v6032_v41 }
 0x779   :  { %2228 = vmatprep.subr.mxu0 %v5940_v3 }
 0x7e6   :  { %v1630_v15 = vpop.f32.mrf.mxu0  ;;  %v1701_v63 = vpop.f32.mrf.mxu1 }
 0x7e7   :  { %v1705_v62 = vadd.f32 %v1630_v15, %v6998_v25  ;;  %v1719_v61 = vadd.f32 %v5908_v2, %v1701_v63  ;;  %v7001_v2 = vld [vmem:[#allocation25_spill] sm:$0xff] }
 0x7e8   :  { %v4156_v27 = vpop.f32.mrf.mxu1  ;;  %v1632_v0 = vpop.f32.mrf.mxu0 }
 0x7e9   :  { %v3517_v32 = vmul.f32 -1.442695, %v1705_v62  ;;  %v1712_v44 = vadd.f32 %v1632_v0, %v6999_v48 }
 0x7eb   :  { %4597 = vpow2.f32 %v3517_v32  ;;  %v3518_v50 = vmul.f32 -1.442695, %v1712_v44 }
 0x7ed   :  { %4599 = vpow2.f32 %v3518_v50 }
 0x7f8   :  { %v4598_v47 = vpop.eup %4597 }
 0x7f9   :  { %v1709_v51 = vadd.f32 1.0, %v4598_v47 }
 0x7fa   :  { %v4600_v52 = vpop.eup %4599 }
 0x7fb   :  { %4601 = vrcp.f32 %v1709_v51  ;;  %v1716_v3 = vadd.f32 1.0, %v4600_v52 }
 0x7fd   :  { %4603 = vrcp.f32 %v1716_v3  ;;  %v7003_v3 = vld [vmem:[#allocation19_spill] sm:$0xff] }
 0x808   :  { %v4602_v41 = vpop.eup %4601 }
 0x809   :  { %v1720_v33 = vmul.f32 %v4602_v41, %v1719_v61  ;;  %v7005_v41 = vld [vmem:[#allocation18_spill] sm:$0xff] }
 0x80a   :  { %v4604_v25 = vpop.eup %4603 }
 0x80b   :  { %v1721_v15 = vadd.f32 %v1720_v33, %v7000_v49  ;;  %v1723_v62 = vsub.f32 1.0, %v4604_v25  ;;  %v1725_v0 = vmul.f32 %v4604_v25, %v5913_v57  ;;  %v7002_v57 = vld [vmem:[#allocation17_spill] sm:$0xff]  ;;  %v7004_v33 = vld [vmem:[#allocation26_spill] sm:$0xff]  ;;  %v1858_v49 = vpop.f32.mrf.mxu0 }
 0x80d   :  { %4605 = vtanh.f32 %v1721_v15  ;;  %v1860_v61 = vpop.f32.mrf.mxu0  ;;  %v6190_v15 = vpop.f32.mrf.mxu1 }
 0x80e   :  { %7012 = vst [vmem:[#allocation38_spill] sm:$0xff] %v6190_v15 }
 0x80f   :  { %v6178_v63 = vpop.f32.mrf.mxu0 }
 0x810   :  { %7006 = vst [vmem:[#allocation36_spill] sm:$0xff] %v6178_v63 }
 0x811   :  { %v6180_v44 = vpop.f32.mrf.mxu0 }
 0x812   :  { %7007 = vst [vmem:[#allocation27_spill] sm:$0xff] %v6180_v44 }
 0x813   :  { %v6182_v50 = vpop.f32.mrf.mxu0 }
 0x814   :  { %7008 = vst [vmem:[#allocation28_spill] sm:$0xff] %v6182_v50 }
 0x815   :  { %v6184_v47 = vpop.f32.mrf.mxu0 }
 0x816   :  { %7009 = vst [vmem:[#allocation39_spill] sm:$0xff] %v6184_v47 }
 0x817   :  { %v6186_v51 = vpop.f32.mrf.mxu0 }
 0x818   :  { %7010 = vst [vmem:[#allocation30_spill] sm:$0xff] %v6186_v51 }
 0x819   :  { %v6188_v52 = vpop.f32.mrf.mxu0 }
 0x81a   :  { %v4606_v27 = vpop.eup %4605  ;;  %7011 = vst [vmem:[#allocation31_spill] sm:$0xff] %v6188_v52  ;;  %v1775_v52 = vld [vmem:[%s6860_s7] sm:$0x7] }
 0x81b   :  { %v1724_v32 = vmul.f32 %v4606_v27, %v1723_v62  ;;  %v6192_v25 = vpop.f32.mrf.mxu0  ;;  %v1971_v62 = vpop.f32.mrf.mxu1 }
 0x81c   :  { %7013 = vst [vmem:[#allocation24_spill] sm:$0xff] %v6192_v25 }
 0x81d   :  { %v1726_v48 = vadd.f32 %v1725_v0, %v1724_v32  ;;  %v6194_v27 = vpop.f32.mrf.mxu0  ;;  %v6196_v32 = vpop.f32.mrf.mxu1 }
 0x81e   :  { %7014 = vst [vmem:[#allocation15_spill] sm:$0xff] %v6194_v27  ;;  %7015 = vst [vmem:[#allocation23_spill] sm:$0xff] %v6196_v32  ;;  %v7023_v27 = vld [vmem:[#allocation20_spill] sm:$0xff] }
 0x81f   :  { %1899 = vmatmul.mubr.f32.gmra.mxu0 %v1726_v48  ;;  %4199 = vmatmul.mubr.f32.gmra.mxu1 %v1726_v48  ;;  %v6198_v0 = vpop.f32.mrf.mxu0  ;;  %v6200_v48 = vpop.f32.mrf.mxu1  ;;  %v7024_v32 = vsub.s32 0, %v7023_v27 }
 0x820   :  { %2123 = vmatprep.mubr.f32.mxu0 %v6944_v19  ;;  %4233 = vmatprep.mubr.msk.f32.mxu1 %vm4906_vm1, %v6944_v19  ;;  %7016 = vst [vmem:[#allocation37_spill] sm:$0xff] %v6198_v0  ;;  %7017 = vst [vmem:[#allocation32_spill] sm:$0xff] %v6200_v48 }
 0x821   :  { %v6202_v50 = vpop.f32.mrf.mxu0  ;;  %v6204_v47 = vpop.f32.mrf.mxu1  ;;  %v6217_v44 = vrot.slane %v1775_v52, %v7024_v32 }
 0x822   :  { %7018 = vst [vmem:[#allocation33_spill] sm:$0xff] %v6202_v50  ;;  %7019 = vst [vmem:[#allocation41_spill] sm:$0xff] %v6204_v47 }
 0x823   :  { %2124 = vmatmul.mubr.f32.vlgmr.msra.gmra.mxu0 %v6944_v19  ;;  %4234 = vmatmul.mubr.f32.vlgmr.msra.gmra.mxu1 %v6944_v19  ;;  %v6206_v51 = vpop.f32.mrf.mxu0  ;;  %v6211_v25 = vpop.f32.mrf.mxu1  ;;  %7025 = vst [vmem:[#allocation29_spill] sm:$0xff] %v6217_v44 }
 0x824   :  { %2229 = vmatpush1.msra.mxu0 %v5943_v53  ;;  %4237 = vmatpush3.msra.mxu1 %v6035_v42  ;;  %7020 = vst [vmem:[#allocation42_spill] sm:$0xff] %v6206_v51  ;;  %7021 = vst [vmem:[#allocation21_spill] sm:$0xff] %v6211_v25  ;;  %v1859_v51 = vadd.f32 %v1858_v49, %v6217_v44  ;;  %v7030_v25 = vsub.s32 1, %v7023_v27  ;;  %v6236_v44 = vld [vmem:[%s6861_s8] ss:$0 sm:$0xff] }
 0x825   :  { %2230 = vmatprep.subr.mxu0 %v5946_v10  ;;  %4238 = vmatprep.subr.mxu1 %v6944_v19  ;;  %v6213_v15 = vpop.f32.mrf.mxu0 }
 0x826   :  { %2231 = vmatpush1.msra.mxu0 %v5949_v43  ;;  %4239 = vmatpush3.msra.mxu1 %v6037_v12  ;;  %7022 = vst [vmem:[#allocation22_spill] sm:$0xff] %v6213_v15 }
 0x827   :  { %2232 = vmatprep.subr.mxu0 %v5952_v40  ;;  %4240 = vmatprep.subr.mxu1 %v6944_v19 }
 0x828   :  { %2233 = vmatpush1.msra.mxu0 %v5955_v54  ;;  %4241 = vmatpush3.msra.mxu1 %v6042_v31 }
 0x829   :  { %2234 = vmatprep.subr.mxu0 %v5958_v21  ;;  %4242 = vmatprep.subr.mxu1 %v6944_v19 }
 0x82a   :  { %2235 = vmatpush1.msra.mxu0 %v5961_v55  ;;  %4243 = vmatpush3.msra.mxu1 %v6047_v34 }
 0x82b   :  { %2236 = vmatprep.subr.mxu0 %v5964_v1  ;;  %4244 = vmatprep.subr.mxu1 %v6944_v19 }
 0x82c   :  { %2237 = vmatpush1.msra.mxu0 %v5967_v56  ;;  %4245 = vmatpush3.msra.mxu1 %v6051_v35 }
 0x82d   :  { %2238 = vmatprep.subr.mxu0 %v5970_v8  ;;  %4246 = vmatprep.subr.mxu1 %v6944_v19 }
 0x82e   :  { %2239 = vmatpush1.msra.mxu0 %v5973_v9  ;;  %4247 = vmatpush3.msra.mxu1 %v6055_v36 }
 0x82f   :  { %2240 = vmatprep.subr.mxu0 %v5976_v58  ;;  %4248 = vmatprep.subr.mxu1 %v6944_v19 }
 0x830   :  { %2241 = vmatpush1.msra.mxu0 %v5979_v13  ;;  %4249 = vmatpush3.msra.mxu1 %v6059_v37 }
 0x831   :  { %2242 = vmatprep.subr.mxu0 %v5982_v59  ;;  %4250 = vmatprep.subr.mxu1 %v6944_v19 }
 0x832   :  { %2243 = vmatpush1.msra.mxu0 %v5985_v14  ;;  %4251 = vmatpush3.msra.mxu1 %v6063_v39 }
 0x833   :  { %2244 = vmatprep.subr.mxu0 %v5988_v60  ;;  %4252 = vmatprep.subr.mxu1 %v6944_v19 }
 0x834   :  { %2245 = vmatpush1.msra.mxu0 %v5991_v7  ;;  %4253 = vmatpush3.msra.mxu1 %v6067_v6 }
 0x835   :  { %2246 = vmatprep.subr.mxu0 %v5994_v16  ;;  %4254 = vmatprep.subr.mxu1 %v6944_v19 }
 0x836   :  { %2247 = vmatpush1.msra.mxu0 %v5997_v17  ;;  %4255 = vmatpush3.msra.mxu1 %v6071_v5 }
 0x837   :  { %2248 = vmatprep.subr.mxu0 %v6000_v18  ;;  %4256 = vmatprep.subr.mxu1 %v6944_v19 }
 0x838   :  { %2249 = vmatpush1.msra.mxu0 %v6003_v20  ;;  %4257 = vmatpush3.msra.mxu1 %v6075_v4 }
 0x839   :  { %2250 = vmatprep.subr.mxu0 %v6006_v22  ;;  %4258 = vmatprep.subr.mxu1 %v6944_v19 }
 0x83a   :  { %2251 = vmatpush1.msra.mxu0 %v6009_v23  ;;  %4259 = vmatpush3.msra.mxu1 %v6079_v45 }
 0x83b   :  { %2252 = vmatprep.subr.mxu0 %v6012_v24  ;;  %4260 = vmatprep.subr.mxu1 %v6944_v19 }
 0x83c   :  { %2253 = vmatpush1.msra.mxu0 %v6015_v26  ;;  %4261 = vmatpush3.msra.mxu1 %v6083_v46 }
 0x83d   :  { %2254 = vmatprep.subr.mxu0 %v6018_v11  ;;  %4262 = vmatprep.subr.mxu1 %v6944_v19 }
 0x83e   :  { %2255 = vmatpush1.msra.mxu0 %v6021_v28  ;;  %4263 = vmatpush3.msra.mxu1 %v6087_v38 }
 0x83f   :  { %2256 = vmatprep.subr.mxu0 %v6024_v29  ;;  %4264 = vmatprep.subr.mxu1 %v6944_v19 }
 0x840   :  { %2257 = vmatpush1.msra.mxu0 %v6027_v30  ;;  %4265 = vmatpush3.msra.mxu1 %v7001_v2 }
 0x841   :  { %2258 = vmatprep.subr.mxu0 %v7002_v57  ;;  %4266 = vmatprep.subr.mxu1 %v6944_v19 }
 0x842   :  { %2259 = vmatpush1.msra.mxu0 %v7003_v3  ;;  %2292 = vmatprep.mubr.f32.mxu0 %v6944_v19 }
 0x843   :  { %4267 = vmatpush3.msra.mxu1 %v7004_v33  ;;  %4268 = vmatprep.mubr.msk.f32.mxu1 %vm4906_vm1, %v6944_v19  ;;  %v6230_v33 = vrot.slane %v1775_v52, %v7030_v25 }
 0x844   :  { %2391 = vmatprep.subr.mxu0 %v7005_v41  ;;  %4271 = vmatprep.subr.mxu1 %v6944_v19 }
 0x845   :  { %7031 = vst [vmem:[#allocation43_spill] sm:$0xff] %v6230_v33 }
 0x8df   :  { %v6219_v0 = vpop.f32.mrf.mxu0  ;;  %v6221_v48 = vpop.f32.mrf.mxu1 }
 0x8e0   :  { %7026 = vst [vmem:[#allocation34_spill] sm:$0xff] %v6219_v0  ;;  %7027 = vst [vmem:[#allocation35_spill] sm:$0xff] %v6221_v48  ;;  %v1861_v0 = vadd.f32 %v1860_v61, %v6230_v33 }
 0x8e1   :  { %v6223_v50 = vpop.f32.mrf.mxu0  ;;  %v6225_v47 = vpop.f32.mrf.mxu1 }
 0x8e2   :  { %7028 = vst [vmem:[#allocation40_spill] sm:$0xff] %v6223_v50  ;;  %7029 = vst [vmem:[#allocation20_spill] sm:$0xff] %v6225_v47 }
 0x8e3   :  { %v2125_v63 = vpop.f32.mrf.mxu0  ;;  %v2196_v41 = vpop.f32.mrf.mxu1 }
 0x8e4   :  { %v2200_v15 = vadd.f32 %v2125_v63, %v1859_v51  ;;  %v7032_v63 = vsub.s32 2, %v7023_v27  ;;  %v7036_v27 = vld [vmem:[#allocation26_spill] sm:$0xff] }
 0x8e5   :  { %v4235_v3 = vpop.f32.mrf.mxu1  ;;  %v2127_v57 = vpop.f32.mrf.mxu0 }
 0x8e6   :  { %v3519_v32 = vmul.f32 -1.442695, %v2200_v15  ;;  %v2207_v48 = vadd.f32 %v2127_v57, %v1861_v0  ;;  %v2220_v3 = vadd.f32 %v6236_v44, %v2196_v41  ;;  %v6241_v51 = vrot.slane %v1775_v52, %v7032_v63  ;;  %v7033_v41 = vld [vmem:[#allocation25_spill] sm:$0xff] }
 0x8e7   :  { %v7034_v52 = vld [vmem:[#allocation17_spill] sm:$0xff] }
 0x8e8   :  { %4607 = vpow2.f32 %v3519_v32  ;;  %v3520_v2 = vmul.f32 -1.442695, %v2207_v48  ;;  %v1972_v57 = vadd.f32 %v1971_v62, %v6241_v51  ;;  %v7035_v62 = vld [vmem:[#allocation19_spill] sm:$0xff] }
 0x8ea   :  { %4609 = vpow2.f32 %v3520_v2 }
 0x8f5   :  { %v4608_v50 = vpop.eup %4607 }
 0x8f6   :  { %v2204_v47 = vadd.f32 1.0, %v4608_v50 }
 0x8f7   :  { %v4610_v49 = vpop.eup %4609 }
 0x8f8   :  { %4611 = vrcp.f32 %v2204_v47  ;;  %v2211_v25 = vadd.f32 1.0, %v4610_v49  ;;  %v7037_v49 = vld [vmem:[#allocation18_spill] sm:$0xff] }
 0x8fa   :  { %4613 = vrcp.f32 %v2211_v25  ;;  %v7038_v25 = vld [vmem:[#allocation29_spill] sm:$0xff] }
 0x905   :  { %v4612_v61 = vpop.eup %4611 }
 0x906   :  { %v2221_v2 = vmul.f32 %v4612_v61, %v2220_v3  ;;  %v7039_v3 = vld [vmem:[#allocation36_spill] sm:$0xff] }
 0x907   :  { %v4614_v47 = vpop.eup %4613  ;;  %v1865_v63 = vadd.f32 %v7039_v3, %v7038_v25 }
 0x908   :  { %v2222_v50 = vadd.f32 %v2221_v2, %v1972_v57  ;;  %v2224_v15 = vsub.f32 1.0, %v4614_v47  ;;  %v2226_v32 = vmul.f32 0.0, %v4614_v47 }
 0x90a   :  { %4615 = vtanh.f32 %v2222_v50 }
 0x917   :  { %v4616_v0 = vpop.eup %4615 }
 0x918   :  { %v2225_v48 = vmul.f32 %v4616_v0, %v2224_v15  ;;  %v7040_v0 = vld [vmem:[#allocation43_spill] sm:$0xff] }
 0x91a   :  { %v6244_v33 = vadd.f32 %v2226_v32, %v2225_v48  ;;  %v7041_v48 = vld [vmem:[#allocation27_spill] sm:$0xff] }
 0x91b   :  { %v1867_v32 = vadd.f32 %v7041_v48, %v7040_v0 }
 0x91c   :  { %2293 = vmatmul.mubr.f32.vlgmr.msra.gmra.mxu0 %v6244_v33  ;;  %4269 = vmatmul.mubr.f32.vlgmr.msra.gmra.mxu1 %v6244_v33 }
 0x91d   :  { %2392 = vmatpush1.msra.mxu0 %v5943_v53  ;;  %4272 = vmatpush3.msra.mxu1 %v6035_v42 }
 0x91e   :  { %2393 = vmatprep.subr.mxu0 %v5946_v10  ;;  %4273 = vmatprep.subr.mxu1 %v6944_v19 }
 0x91f   :  { %2394 = vmatpush1.msra.mxu0 %v5949_v43  ;;  %4274 = vmatpush3.msra.mxu1 %v6037_v12 }
 0x920   :  { %2395 = vmatprep.subr.mxu0 %v5952_v40  ;;  %4275 = vmatprep.subr.mxu1 %v6944_v19 }
 0x921   :  { %2396 = vmatpush1.msra.mxu0 %v5955_v54  ;;  %4276 = vmatpush3.msra.mxu1 %v6042_v31 }
 0x922   :  { %2397 = vmatprep.subr.mxu0 %v5958_v21  ;;  %4277 = vmatprep.subr.mxu1 %v6944_v19 }
 0x923   :  { %2398 = vmatpush1.msra.mxu0 %v5961_v55  ;;  %4278 = vmatpush3.msra.mxu1 %v6047_v34 }
 0x924   :  { %2399 = vmatprep.subr.mxu0 %v5964_v1  ;;  %4279 = vmatprep.subr.mxu1 %v6944_v19 }
 0x925   :  { %2400 = vmatpush1.msra.mxu0 %v5967_v56  ;;  %4280 = vmatpush3.msra.mxu1 %v6051_v35 }
 0x926   :  { %2401 = vmatprep.subr.mxu0 %v5970_v8  ;;  %4281 = vmatprep.subr.mxu1 %v6944_v19 }
 0x927   :  { %2402 = vmatpush1.msra.mxu0 %v5973_v9  ;;  %4282 = vmatpush3.msra.mxu1 %v6055_v36 }
 0x928   :  { %2403 = vmatprep.subr.mxu0 %v5976_v58  ;;  %4283 = vmatprep.subr.mxu1 %v6944_v19 }
 0x929   :  { %2404 = vmatpush1.msra.mxu0 %v5979_v13  ;;  %4284 = vmatpush3.msra.mxu1 %v6059_v37 }
 0x92a   :  { %2405 = vmatprep.subr.mxu0 %v5982_v59  ;;  %4285 = vmatprep.subr.mxu1 %v6944_v19 }
 0x92b   :  { %2406 = vmatpush1.msra.mxu0 %v5985_v14  ;;  %4286 = vmatpush3.msra.mxu1 %v6063_v39 }
 0x92c   :  { %2407 = vmatprep.subr.mxu0 %v5988_v60  ;;  %4287 = vmatprep.subr.mxu1 %v6944_v19 }
 0x92d   :  { %2408 = vmatpush1.msra.mxu0 %v5991_v7  ;;  %4288 = vmatpush3.msra.mxu1 %v6067_v6 }
 0x92e   :  { %2409 = vmatprep.subr.mxu0 %v5994_v16  ;;  %4289 = vmatprep.subr.mxu1 %v6944_v19 }
 0x92f   :  { %2410 = vmatpush1.msra.mxu0 %v5997_v17  ;;  %4290 = vmatpush3.msra.mxu1 %v6071_v5 }
 0x930   :  { %2411 = vmatprep.subr.mxu0 %v6000_v18  ;;  %4291 = vmatprep.subr.mxu1 %v6944_v19 }
 0x931   :  { %2412 = vmatpush1.msra.mxu0 %v6003_v20  ;;  %4292 = vmatpush3.msra.mxu1 %v6075_v4 }
 0x932   :  { %2413 = vmatprep.subr.mxu0 %v6006_v22  ;;  %4293 = vmatprep.subr.mxu1 %v6944_v19 }
 0x933   :  { %2414 = vmatpush1.msra.mxu0 %v6009_v23  ;;  %4294 = vmatpush3.msra.mxu1 %v6079_v45 }
 0x934   :  { %2415 = vmatprep.subr.mxu0 %v6012_v24  ;;  %4295 = vmatprep.subr.mxu1 %v6944_v19 }
 0x935   :  { %2416 = vmatpush1.msra.mxu0 %v6015_v26  ;;  %4296 = vmatpush3.msra.mxu1 %v6083_v46 }
 0x936   :  { %2417 = vmatprep.subr.mxu0 %v6018_v11  ;;  %4297 = vmatprep.subr.mxu1 %v6944_v19 }
 0x937   :  { %2418 = vmatpush1.msra.mxu0 %v6021_v28  ;;  %4298 = vmatpush3.msra.mxu1 %v6087_v38 }
 0x938   :  { %2419 = vmatprep.subr.mxu0 %v6024_v29  ;;  %4299 = vmatprep.subr.mxu1 %v6944_v19 }
 0x939   :  { %2420 = vmatpush1.msra.mxu0 %v6027_v30  ;;  %4300 = vmatpush3.msra.mxu1 %v7033_v41 }
 0x93a   :  { %2421 = vmatprep.subr.mxu0 %v7034_v52  ;;  %4301 = vmatprep.subr.mxu1 %v6944_v19 }
 0x93b   :  { %2422 = vmatpush1.msra.mxu0 %v7035_v62  ;;  %2455 = vmatprep.mubr.f32.mxu0 %v6944_v19 }
 0x93c   :  { %4302 = vmatpush3.msra.mxu1 %v7036_v27  ;;  %4303 = vmatprep.mubr.msk.f32.mxu1 %vm4906_vm1, %v6944_v19 }
 0x93d   :  { %2554 = vmatprep.subr.mxu0 %v7037_v49  ;;  %4306 = vmatprep.subr.mxu1 %v6944_v19 }
 0x9dc   :  { %v2294_v61 = vpop.f32.mrf.mxu0  ;;  %v2365_v57 = vpop.f32.mrf.mxu1 }
 0x9dd   :  { %v2369_v2 = vadd.f32 %v2294_v61, %v1865_v63  ;;  %v2383_v3 = vadd.f32 %v6236_v44, %v2365_v57  ;;  %v7042_v63 = vld [vmem:[#allocation38_spill] sm:$0xff] }
 0x9de   :  { %v4270_v50 = vpop.f32.mrf.mxu1  ;;  %v2296_v15 = vpop.f32.mrf.mxu0  ;;  %v1977_v61 = vadd.f32 %v7042_v63, %v6241_v51  ;;  %v7048_v57 = vld [vmem:[#allocation18_spill] sm:$0xff] }
 0x9df   :  { %v3522_v47 = vmul.f32 -1.442695, %v2369_v2  ;;  %v2376_v27 = vadd.f32 %v2296_v15, %v1867_v32  ;;  %v7049_v32 = vld [vmem:[#allocation29_spill] sm:$0xff] }
 0x9e1   :  { %4617 = vpow2.f32 %v3522_v47  ;;  %v3523_v62 = vmul.f32 -1.442695, %v2376_v27 }
 0x9e3   :  { %4619 = vpow2.f32 %v3523_v62 }
 0x9ee   :  { %v4618_v52 = vpop.eup %4617 }
 0x9ef   :  { %v2373_v49 = vadd.f32 1.0, %v4618_v52 }
 0x9f0   :  { %v4620_v41 = vpop.eup %4619 }
 0x9f1   :  { %4621 = vrcp.f32 %v2373_v49  ;;  %v2380_v30 = vadd.f32 1.0, %v4620_v41  ;;  %v7045_v41 = vld [vmem:[#allocation17_spill] sm:$0xff]  ;;  %v7046_v49 = vld [vmem:[#allocation19_spill] sm:$0xff] }
 0x9f3   :  { %4623 = vrcp.f32 %v2380_v30  ;;  %v7043_v30 = vld [vmem:[#allocation16_spill] sm:$0xff] }
 0x9fe   :  { %v4622_v25 = vpop.eup %4621 }
 0x9ff   :  { %v2384_v2 = vmul.f32 %v4622_v25, %v2383_v3  ;;  %v7047_v25 = vld [vmem:[#allocation26_spill] sm:$0xff]  ;;  %v7050_v3 = vld [vmem:[#allocation28_spill] sm:$0xff] }
 0xa00   :  { %v4624_v48 = vpop.eup %4623  ;;  %v1871_v63 = vadd.f32 %v7050_v3, %v7049_v32 }
 0xa01   :  { %v2385_v50 = vadd.f32 %v2384_v2, %v1977_v61  ;;  %v2387_v47 = vsub.f32 1.0, %v4624_v48  ;;  %v2389_v62 = vmul.f32 %v4624_v48, %v6244_v33  ;;  %v7044_v33 = vld [vmem:[#allocation25_spill] sm:$0xff] }
 0xa03   :  { %4625 = vtanh.f32 %v2385_v50 }
 0xa10   :  { %v4626_v15 = vpop.eup %4625 }
 0xa11   :  { %v2388_v27 = vmul.f32 %v4626_v15, %v2387_v47 }
 0xa13   :  { %v6323_v52 = vadd.f32 %v2389_v62, %v2388_v27  ;;  %v7051_v27 = vld [vmem:[#allocation39_spill] sm:$0xff] }
 0xa14   :  { %v1873_v62 = vadd.f32 %v7051_v27, %v7040_v0 }
 0xa15   :  { %2456 = vmatmul.mubr.f32.vlgmr.msra.gmra.mxu0 %v6323_v52  ;;  %4304 = vmatmul.mubr.f32.vlgmr.msra.gmra.mxu1 %v6323_v52 }
 0xa16   :  { %2555 = vmatpush1.msra.mxu0 %v5943_v53  ;;  %4307 = vmatpush3.msra.mxu1 %v6035_v42 }
 0xa17   :  { %2556 = vmatprep.subr.mxu0 %v5946_v10  ;;  %4308 = vmatprep.subr.mxu1 %v6944_v19 }
 0xa18   :  { %2557 = vmatpush1.msra.mxu0 %v5949_v43  ;;  %4309 = vmatpush3.msra.mxu1 %v6037_v12 }
 0xa19   :  { %2558 = vmatprep.subr.mxu0 %v5952_v40  ;;  %4310 = vmatprep.subr.mxu1 %v6944_v19 }
 0xa1a   :  { %2559 = vmatpush1.msra.mxu0 %v5955_v54  ;;  %4311 = vmatpush3.msra.mxu1 %v6042_v31 }
 0xa1b   :  { %2560 = vmatprep.subr.mxu0 %v5958_v21  ;;  %4312 = vmatprep.subr.mxu1 %v6944_v19 }
 0xa1c   :  { %2561 = vmatpush1.msra.mxu0 %v5961_v55  ;;  %4313 = vmatpush3.msra.mxu1 %v6047_v34 }
 0xa1d   :  { %2562 = vmatprep.subr.mxu0 %v5964_v1  ;;  %4314 = vmatprep.subr.mxu1 %v6944_v19 }
 0xa1e   :  { %2563 = vmatpush1.msra.mxu0 %v5967_v56  ;;  %4315 = vmatpush3.msra.mxu1 %v6051_v35 }
 0xa1f   :  { %2564 = vmatprep.subr.mxu0 %v5970_v8  ;;  %4316 = vmatprep.subr.mxu1 %v6944_v19 }
 0xa20   :  { %2565 = vmatpush1.msra.mxu0 %v5973_v9  ;;  %4317 = vmatpush3.msra.mxu1 %v6055_v36 }
 0xa21   :  { %2566 = vmatprep.subr.mxu0 %v5976_v58  ;;  %4318 = vmatprep.subr.mxu1 %v6944_v19 }
 0xa22   :  { %2567 = vmatpush1.msra.mxu0 %v5979_v13  ;;  %4319 = vmatpush3.msra.mxu1 %v6059_v37 }
 0xa23   :  { %2568 = vmatprep.subr.mxu0 %v5982_v59  ;;  %4320 = vmatprep.subr.mxu1 %v6944_v19 }
 0xa24   :  { %2569 = vmatpush1.msra.mxu0 %v5985_v14  ;;  %4321 = vmatpush3.msra.mxu1 %v6063_v39 }
 0xa25   :  { %2570 = vmatprep.subr.mxu0 %v5988_v60  ;;  %4322 = vmatprep.subr.mxu1 %v6944_v19 }
 0xa26   :  { %2571 = vmatpush1.msra.mxu0 %v5991_v7  ;;  %4323 = vmatpush3.msra.mxu1 %v6067_v6 }
 0xa27   :  { %2572 = vmatprep.subr.mxu0 %v5994_v16  ;;  %4324 = vmatprep.subr.mxu1 %v6944_v19 }
 0xa28   :  { %2573 = vmatpush1.msra.mxu0 %v5997_v17  ;;  %4325 = vmatpush3.msra.mxu1 %v6071_v5 }
 0xa29   :  { %2574 = vmatprep.subr.mxu0 %v6000_v18  ;;  %4326 = vmatprep.subr.mxu1 %v6944_v19 }
 0xa2a   :  { %2575 = vmatpush1.msra.mxu0 %v6003_v20  ;;  %4327 = vmatpush3.msra.mxu1 %v6075_v4 }
 0xa2b   :  { %2576 = vmatprep.subr.mxu0 %v6006_v22  ;;  %4328 = vmatprep.subr.mxu1 %v6944_v19 }
 0xa2c   :  { %2577 = vmatpush1.msra.mxu0 %v6009_v23  ;;  %4329 = vmatpush3.msra.mxu1 %v6079_v45 }
 0xa2d   :  { %2578 = vmatprep.subr.mxu0 %v6012_v24  ;;  %4330 = vmatprep.subr.mxu1 %v6944_v19 }
 0xa2e   :  { %2579 = vmatpush1.msra.mxu0 %v6015_v26  ;;  %4331 = vmatpush3.msra.mxu1 %v6083_v46 }
 0xa2f   :  { %2580 = vmatprep.subr.mxu0 %v6018_v11  ;;  %4332 = vmatprep.subr.mxu1 %v6944_v19 }
 0xa30   :  { %2581 = vmatpush1.msra.mxu0 %v6021_v28  ;;  %4333 = vmatpush3.msra.mxu1 %v6087_v38 }
 0xa31   :  { %2582 = vmatprep.subr.mxu0 %v6024_v29  ;;  %4334 = vmatprep.subr.mxu1 %v6944_v19 }
 0xa32   :  { %2583 = vmatpush1.msra.mxu0 %v7043_v30  ;;  %4335 = vmatpush3.msra.mxu1 %v7044_v33 }
 0xa33   :  { %2584 = vmatprep.subr.mxu0 %v7045_v41  ;;  %4336 = vmatprep.subr.mxu1 %v6944_v19 }
 0xa34   :  { %2585 = vmatpush1.msra.mxu0 %v7046_v49  ;;  %2618 = vmatprep.mubr.f32.mxu0 %v6944_v19 }
 0xa35   :  { %4337 = vmatpush3.msra.mxu1 %v7047_v25  ;;  %4338 = vmatprep.mubr.msk.f32.mxu1 %vm4906_vm1, %v6944_v19 }
 0xa36   :  { %2717 = vmatprep.subr.mxu0 %v7048_v57  ;;  %4341 = vmatprep.subr.mxu1 %v6944_v19 }
 0xad5   :  { %v2457_v61 = vpop.f32.mrf.mxu0  ;;  %v2528_v2 = vpop.f32.mrf.mxu1 }
 0xad6   :  { %v2532_v50 = vadd.f32 %v2457_v61, %v1871_v63  ;;  %v2546_v3 = vadd.f32 %v6236_v44, %v2528_v2  ;;  %v7052_v63 = vld [vmem:[#allocation32_spill] sm:$0xff]  ;;  %v6503_v2 = vld [vmem:[#allocation7 + $0x138] sm:$0xff] }
 0xad7   :  { %v4305_v48 = vpop.f32.mrf.mxu1  ;;  %v2459_v15 = vpop.f32.mrf.mxu0  ;;  %v1982_v61 = vadd.f32 %v7052_v63, %v6241_v51  ;;  %v6535_v63 = vld [vmem:[#allocation7 + $0xd8] sm:$0xff] }
 0xad8   :  { %v3524_v47 = vmul.f32 -1.442695, %v2532_v50  ;;  %v2539_v25 = vadd.f32 %v2459_v15, %v1873_v62  ;;  %v6511_v62 = vld [vmem:[#allocation7 + $0x120] sm:$0xff] }
 0xada   :  { %4627 = vpow2.f32 %v3524_v47  ;;  %v3525_v49 = vmul.f32 -1.442695, %v2539_v25 }
 0xadc   :  { %4629 = vpow2.f32 %v3525_v49 }
 0xae7   :  { %v4628_v41 = vpop.eup %4627 }
 0xae8   :  { %v2536_v57 = vadd.f32 1.0, %v4628_v41 }
 0xae9   :  { %v4630_v33 = vpop.eup %4629 }
 0xaea   :  { %4631 = vrcp.f32 %v2536_v57  ;;  %v2543_v30 = vadd.f32 1.0, %v4630_v33  ;;  %v6495_v33 = vld [vmem:[#allocation7 + $0x150] sm:$0xff]  ;;  %v6519_v57 = vld [vmem:[#allocation7 + $0x108] sm:$0xff] }
 0xaec   :  { %4633 = vrcp.f32 %v2543_v30  ;;  %v6491_v30 = vld [vmem:[#allocation7 + $0x158] sm:$0xff] }
 0xaf7   :  { %v4632_v32 = vpop.eup %4631 }
 0xaf8   :  { %v2547_v50 = vmul.f32 %v4632_v32, %v2546_v3  ;;  %v6499_v32 = vld [vmem:[#allocation7 + $0x140] sm:$0xff]  ;;  %v6527_v3 = vld [vmem:[#allocation7 + $0xf0] sm:$0xff] }
 0xaf9   :  { %v4634_v27 = vpop.eup %4633 }
 0xafa   :  { %v2548_v48 = vadd.f32 %v2547_v50, %v1982_v61  ;;  %v2550_v47 = vsub.f32 1.0, %v4634_v27  ;;  %v2552_v49 = vmul.f32 %v4634_v27, %v6323_v52  ;;  %v6487_v52 = vld [vmem:[#allocation7 + $0x168] sm:$0xff]  ;;  %v6543_v61 = vld [vmem:[#allocation7 + $0xc0] sm:$0xff]  ;;  %v6549_v50 = vld [vmem:[#allocation7 + $0xb0] sm:$0xff] }
 0xafb   :  { %v6559_v27 = vld [vmem:[#allocation7 + $0x98] sm:$0xff] }
 0xafc   :  { %4635 = vtanh.f32 %v2548_v48  ;;  %v6556_v48 = vld [vmem:[#allocation7 + $0xb8] sm:$0xff] }
 0xb09   :  { %v4636_v15 = vpop.eup %4635 }
 0xb0a   :  { %v2551_v25 = vmul.f32 %v4636_v15, %v2550_v47  ;;  %v6563_v47 = vld [vmem:[#allocation7 + $0x90] sm:$0xff]  ;;  %v6566_v15 = vld [vmem:[#allocation7 + $0xa0] sm:$0xff] }
 0xb0c   :  { %v6402_v41 = vadd.f32 %v2552_v49, %v2551_v25  ;;  %v6569_v25 = vld [vmem:[#allocation7 + $0x80] sm:$0xff]  ;;  %v6573_v49 = vld [vmem:[#allocation7 + $0x78] sm:$0xff] }
 0xb0e   :  { %2619 = vmatmul.mubr.f32.vlgmr.msra.gmra.mxu0 %v6402_v41  ;;  %4339 = vmatmul.mubr.f32.vlgmr.msra.gmra.mxu1 %v6402_v41 }
 0xb0f   :  { %2718 = vmatpush1.msra.mxu0 %v5943_v53  ;;  %4342 = vmatpush3.msra.mxu1 %v6035_v42  ;;  %v7053_v53 = vld [vmem:[#allocation16_spill] sm:$0xff] }
 0xb10   :  { %2719 = vmatprep.subr.mxu0 %v5946_v10  ;;  %4343 = vmatprep.subr.mxu1 %v6944_v19  ;;  %v7054_v10 = vld [vmem:[#allocation25_spill] sm:$0xff] }
 0xb11   :  { %2720 = vmatpush1.msra.mxu0 %v5949_v43  ;;  %4344 = vmatpush3.msra.mxu1 %v6037_v12  ;;  %v7055_v43 = vld [vmem:[#allocation17_spill] sm:$0xff] }
 0xb12   :  { %2721 = vmatprep.subr.mxu0 %v5952_v40  ;;  %4345 = vmatprep.subr.mxu1 %v6944_v19  ;;  %v7056_v40 = vld [vmem:[#allocation19_spill] sm:$0xff] }
 0xb13   :  { %2722 = vmatpush1.msra.mxu0 %v5955_v54  ;;  %4346 = vmatpush3.msra.mxu1 %v6042_v31  ;;  %v7057_v54 = vld [vmem:[#allocation26_spill] sm:$0xff] }
 0xb14   :  { %2723 = vmatprep.subr.mxu0 %v5958_v21  ;;  %4347 = vmatprep.subr.mxu1 %v6944_v19  ;;  %v6471_v21 = vld [vmem:[#allocation7 + $0x170] sm:$0xff] }
 0xb15   :  { %2724 = vmatpush1.msra.mxu0 %v5961_v55  ;;  %4348 = vmatpush3.msra.mxu1 %v6047_v34  ;;  %v7058_v55 = vld [vmem:[#allocation29_spill] sm:$0xff] }
 0xb16   :  { %2725 = vmatprep.subr.mxu0 %v5964_v1  ;;  %4349 = vmatprep.subr.mxu1 %v6944_v19  ;;  %v7059_v1 = vld [vmem:[#allocation30_spill] sm:$0xff] }
 0xb17   :  { %2726 = vmatpush1.msra.mxu0 %v5967_v56  ;;  %4350 = vmatpush3.msra.mxu1 %v6051_v35  ;;  %v1877_v56 = vadd.f32 %v7059_v1, %v7058_v55  ;;  %v6596_v1 = vld [vmem:[#allocation7 + $0x58] sm:$0xff] }
 0xb18   :  { %2727 = vmatprep.subr.mxu0 %v5970_v8  ;;  %4351 = vmatprep.subr.mxu1 %v6944_v19 }
 0xb19   :  { %2728 = vmatpush1.msra.mxu0 %v5973_v9  ;;  %4352 = vmatpush3.msra.mxu1 %v6055_v36 }
 0xb1a   :  { %2729 = vmatprep.subr.mxu0 %v5976_v58  ;;  %4353 = vmatprep.subr.mxu1 %v6944_v19 }
 0xb1b   :  { %2730 = vmatpush1.msra.mxu0 %v5979_v13  ;;  %4354 = vmatpush3.msra.mxu1 %v6059_v37 }
 0xb1c   :  { %2731 = vmatprep.subr.mxu0 %v5982_v59  ;;  %4355 = vmatprep.subr.mxu1 %v6944_v19 }
 0xb1d   :  { %2732 = vmatpush1.msra.mxu0 %v5985_v14  ;;  %4356 = vmatpush3.msra.mxu1 %v6063_v39 }
 0xb1e   :  { %2733 = vmatprep.subr.mxu0 %v5988_v60  ;;  %4357 = vmatprep.subr.mxu1 %v6944_v19  ;;  %v7060_v60 = vld [vmem:[#allocation31_spill] sm:$0xff] }
 0xb1f   :  { %2734 = vmatpush1.msra.mxu0 %v5991_v7  ;;  %4358 = vmatpush3.msra.mxu1 %v6067_v6  ;;  %v1879_v7 = vadd.f32 %v7060_v60, %v7040_v0  ;;  %v6623_v60 = vld [vmem:[#allocation7] sm:$0xff] }
 0xb20   :  { %2735 = vmatprep.subr.mxu0 %v5994_v16  ;;  %4359 = vmatprep.subr.mxu1 %v6944_v19  ;;  %7065 = vst [vmem:[#allocation38_spill] sm:$0xff] %v6623_v60 }
 0xb21   :  { %2736 = vmatpush1.msra.mxu0 %v5997_v17  ;;  %4360 = vmatpush3.msra.mxu1 %v6071_v5 }
 0xb22   :  { %2737 = vmatprep.subr.mxu0 %v6000_v18  ;;  %4361 = vmatprep.subr.mxu1 %v6944_v19 }
 0xb23   :  { %2738 = vmatpush1.msra.mxu0 %v6003_v20  ;;  %4362 = vmatpush3.msra.mxu1 %v6075_v4 }
 0xb24   :  { %2739 = vmatprep.subr.mxu0 %v6006_v22  ;;  %4363 = vmatprep.subr.mxu1 %v6944_v19 }
 0xb25   :  { %2740 = vmatpush1.msra.mxu0 %v6009_v23  ;;  %4364 = vmatpush3.msra.mxu1 %v6079_v45 }
 0xb26   :  { %2741 = vmatprep.subr.mxu0 %v6012_v24  ;;  %4365 = vmatprep.subr.mxu1 %v6944_v19 }
 0xb27   :  { %2742 = vmatpush1.msra.mxu0 %v6015_v26  ;;  %4366 = vmatpush3.msra.mxu1 %v6083_v46 }
 0xb28   :  { %2743 = vmatprep.subr.mxu0 %v6018_v11  ;;  %4367 = vmatprep.subr.mxu1 %v6944_v19  ;;  %v7061_v11 = vld [vmem:[#allocation23_spill] sm:$0xff] }
 0xb29   :  { %2744 = vmatpush1.msra.mxu0 %v6021_v28  ;;  %4368 = vmatpush3.msra.mxu1 %v6087_v38  ;;  %v1987_v28 = vadd.f32 %v7061_v11, %v6241_v51  ;;  %v7068_v11 = vld [vmem:[#allocation15_spill] sm:$0xff] }
 0xb2a   :  { %2745 = vmatprep.subr.mxu0 %v6024_v29  ;;  %4369 = vmatprep.subr.mxu1 %v6944_v19 }
 0xb2b   :  { %2746 = vmatpush1.msra.mxu0 %v7053_v53  ;;  %4370 = vmatpush3.msra.mxu1 %v7054_v10  ;;  %v6579_v53 = vld [vmem:[#allocation7 + $0x68] sm:$0xff]  ;;  %v6583_v10 = vld [vmem:[#allocation7 + $0x60] sm:$0xff] }
 0xb2c   :  { %2747 = vmatprep.subr.mxu0 %v7055_v43  ;;  %4371 = vmatprep.subr.mxu1 %v6944_v19  ;;  %v6586_v43 = vld [vmem:[#allocation7 + $0x70] sm:$0xff] }
 0xb2d   :  { %2748 = vmatpush1.msra.mxu0 %v7056_v40  ;;  %2781 = vmatprep.mubr.f32.mxu0 %v6944_v19  ;;  %v6589_v40 = vld [vmem:[#allocation7 + $0x50] sm:$0xff] }
 0xb2e   :  { %4372 = vmatpush3.msra.mxu1 %v7057_v54  ;;  %4373 = vmatprep.mubr.msk.f32.mxu1 %vm4906_vm1, %v6944_v19  ;;  %v6593_v54 = vld [vmem:[#allocation7 + $0x48] sm:$0xff] }
 0xb2f   :  { %2880 = vmatprep.subr.mxu0 %v6471_v21  ;;  %4376 = vmatprep.subr.mxu1 %v6944_v19 }
 0xbce   :  { %v2620_v8 = vpop.f32.mrf.mxu0  ;;  %v2691_v9 = vpop.f32.mrf.mxu1 }
 0xbcf   :  { %v2695_v58 = vadd.f32 %v2620_v8, %v1877_v56  ;;  %v2709_v24 = vadd.f32 %v6236_v44, %v2691_v9  ;;  %v6599_v56 = vld [vmem:[#allocation7 + $0x38] sm:$0xff]  ;;  %v6603_v8 = vld [vmem:[#allocation7 + $0x30] sm:$0xff]  ;;  %v6606_v9 = vld [vmem:[#allocation7 + $0x40] sm:$0xff] }
 0xbd0   :  { %v4340_v13 = vpop.f32.mrf.mxu1  ;;  %v2622_v14 = vpop.f32.mrf.mxu0 }
 0xbd1   :  { %v3526_v59 = vmul.f32 -1.442695, %v2695_v58  ;;  %v2702_v16 = vadd.f32 %v2622_v14, %v1879_v7  ;;  %v6609_v58 = vld [vmem:[#allocation7 + $0x20] sm:$0xff]  ;;  %v6613_v13 = vld [vmem:[#allocation7 + $0x18] sm:$0xff]  ;;  %v6619_v14 = vld [vmem:[#allocation7 + $0x8] sm:$0xff] }
 0xbd2   :  { %7062 = vst [vmem:[#allocation36_spill] sm:$0xff] %v6613_v13  ;;  %7064 = vst [vmem:[#allocation27_spill] sm:$0xff] %v6619_v14  ;;  %v6627_v7 = vld [vmem:[#allocation7 + $0x10] sm:$0xff] }
 0xbd3   :  { %4637 = vpow2.f32 %v3526_v59  ;;  %v3527_v17 = vmul.f32 -1.442695, %v2702_v16  ;;  %v6616_v59 = vld [vmem:[#allocation7 + $0x28] sm:$0xff]  ;;  %7066 = vst [vmem:[#allocation18_spill] sm:$0xff] %v6627_v7  ;;  %v7067_v16 = vld [vmem:[#allocation24_spill] sm:$0xff] }
 0xbd4   :  { %7063 = vst [vmem:[#allocation43_spill] sm:$0xff] %v6616_v59 }
 0xbd5   :  { %4639 = vpow2.f32 %v3527_v17  ;;  %v1883_v17 = vadd.f32 %v7067_v16, %v7058_v55 }
 0xbe0   :  { %v4638_v18 = vpop.eup %4637 }
 0xbe1   :  { %v2699_v20 = vadd.f32 1.0, %v4638_v18 }
 0xbe2   :  { %v4640_v22 = vpop.eup %4639 }
 0xbe3   :  { %4641 = vrcp.f32 %v2699_v20  ;;  %v2706_v23 = vadd.f32 1.0, %v4640_v22 }
 0xbe5   :  { %4643 = vrcp.f32 %v2706_v23 }
 0xbf0   :  { %v4642_v26 = vpop.eup %4641 }
 0xbf1   :  { %v2710_v29 = vmul.f32 %v4642_v26, %v2709_v24 }
 0xbf2   :  { %v4644_v6 = vpop.eup %4643 }
 0xbf3   :  { %v2711_v39 = vadd.f32 %v2710_v29, %v1987_v28  ;;  %v2713_v5 = vsub.f32 1.0, %v4644_v6  ;;  %v2715_v46 = vmul.f32 %v4644_v6, %v6402_v41  ;;  %v6576_v41 = vld [vmem:[#allocation7 + $0x88] sm:$0xff]  ;;  %v1885_v28 = vadd.f32 %v7068_v11, %v7040_v0 }
 0xbf5   :  { %4645 = vtanh.f32 %v2711_v39 }
 0xc02   :  { %v4646_v4 = vpop.eup %4645 }
 0xc03   :  { %v2714_v45 = vmul.f32 %v4646_v4, %v2713_v5 }
 0xc05   :  { %v6483_v38 = vadd.f32 %v2715_v46, %v2714_v45 }
 0xc07   :  { %2782 = vmatmul.mubr.f32.vlgmr.msra.gmra.mxu0 %v6483_v38  ;;  %4374 = vmatmul.mubr.f32.vlgmr.msra.gmra.mxu1 %v6483_v38 }
 0xc08   :  { %2881 = vmatpush1.msra.mxu0 %v6487_v52  ;;  %4377 = vmatpush3.msra.mxu1 %v6035_v42  ;;  %v6507_v42 = vld [vmem:[#allocation7 + $0x128] sm:$0xff] }
 0xc09   :  { %2882 = vmatprep.subr.mxu0 %v6491_v30  ;;  %4378 = vmatprep.subr.mxu1 %v6944_v19 }
 0xc0a   :  { %2883 = vmatpush1.msra.mxu0 %v6495_v33  ;;  %4379 = vmatpush3.msra.mxu1 %v6037_v12  ;;  %v6515_v12 = vld [vmem:[#allocation7 + $0x110] sm:$0xff] }
 0xc0b   :  { %2884 = vmatprep.subr.mxu0 %v6499_v32  ;;  %4380 = vmatprep.subr.mxu1 %v6944_v19 }
 0xc0c   :  { %2885 = vmatpush1.msra.mxu0 %v6503_v2  ;;  %4381 = vmatpush3.msra.mxu1 %v6042_v31  ;;  %v6523_v31 = vld [vmem:[#allocation7 + $0xf8] sm:$0xff] }
 0xc0d   :  { %2886 = vmatprep.subr.mxu0 %v6507_v42  ;;  %4382 = vmatprep.subr.mxu1 %v6944_v19 }
 0xc0e   :  { %2887 = vmatpush1.msra.mxu0 %v6511_v62  ;;  %4383 = vmatpush3.msra.mxu1 %v6047_v34  ;;  %v6531_v34 = vld [vmem:[#allocation7 + $0xe0] sm:$0xff] }
 0xc0f   :  { %2888 = vmatprep.subr.mxu0 %v6515_v12  ;;  %4384 = vmatprep.subr.mxu1 %v6944_v19 }
 0xc10   :  { %2889 = vmatpush1.msra.mxu0 %v6519_v57  ;;  %4385 = vmatpush3.msra.mxu1 %v6051_v35  ;;  %v6539_v35 = vld [vmem:[#allocation7 + $0xc8] sm:$0xff] }
 0xc11   :  { %2890 = vmatprep.subr.mxu0 %v6523_v31  ;;  %4386 = vmatprep.subr.mxu1 %v6944_v19 }
 0xc12   :  { %2891 = vmatpush1.msra.mxu0 %v6527_v3  ;;  %4387 = vmatpush3.msra.mxu1 %v6055_v36  ;;  %v6546_v36 = vld [vmem:[#allocation7 + $0xd0] sm:$0xff] }
 0xc13   :  { %2892 = vmatprep.subr.mxu0 %v6531_v34  ;;  %4388 = vmatprep.subr.mxu1 %v6944_v19 }
 0xc14   :  { %2893 = vmatpush1.msra.mxu0 %v6535_v63  ;;  %4389 = vmatpush3.msra.mxu1 %v6059_v37  ;;  %v6553_v37 = vld [vmem:[#allocation7 + $0xa8] sm:$0xff] }
 0xc15   :  { %2894 = vmatprep.subr.mxu0 %v6539_v35  ;;  %4390 = vmatprep.subr.mxu1 %v6944_v19 }
 0xc16   :  { %2895 = vmatpush1.msra.mxu0 %v6543_v61  ;;  %4391 = vmatpush3.msra.mxu1 %v6546_v36 }
 0xc17   :  { %2896 = vmatprep.subr.mxu0 %v6549_v50  ;;  %4392 = vmatprep.subr.mxu1 %v6944_v19 }
 0xc18   :  { %2897 = vmatpush1.msra.mxu0 %v6553_v37  ;;  %4393 = vmatpush3.msra.mxu1 %v6556_v48 }
 0xc19   :  { %2898 = vmatprep.subr.mxu0 %v6559_v27  ;;  %4394 = vmatprep.subr.mxu1 %v6944_v19 }
 0xc1a   :  { %2899 = vmatpush1.msra.mxu0 %v6563_v47  ;;  %4395 = vmatpush3.msra.mxu1 %v6566_v15 }
 0xc1b   :  { %2900 = vmatprep.subr.mxu0 %v6569_v25  ;;  %4396 = vmatprep.subr.mxu1 %v6944_v19 }
 0xc1c   :  { %2901 = vmatpush1.msra.mxu0 %v6573_v49  ;;  %4397 = vmatpush3.msra.mxu1 %v6576_v41 }
 0xc1d   :  { %2902 = vmatprep.subr.mxu0 %v6579_v53  ;;  %4398 = vmatprep.subr.mxu1 %v6944_v19 }
 0xc1e   :  { %2903 = vmatpush1.msra.mxu0 %v6583_v10  ;;  %4399 = vmatpush3.msra.mxu1 %v6586_v43 }
 0xc1f   :  { %2904 = vmatprep.subr.mxu0 %v6589_v40  ;;  %4400 = vmatprep.subr.mxu1 %v6944_v19 }
 0xc20   :  { %2905 = vmatpush1.msra.mxu0 %v6593_v54  ;;  %4401 = vmatpush3.msra.mxu1 %v6596_v1 }
 0xc21   :  { %2906 = vmatprep.subr.mxu0 %v6599_v56  ;;  %4402 = vmatprep.subr.mxu1 %v6944_v19 }
 0xc22   :  { %2907 = vmatpush1.msra.mxu0 %v6603_v8  ;;  %4403 = vmatpush3.msra.mxu1 %v6606_v9 }
 0xc23   :  { %2908 = vmatprep.subr.mxu0 %v6609_v58  ;;  %4404 = vmatprep.subr.mxu1 %v6944_v19 }
 0xc24   :  { %2909 = vmatpush1.msra.mxu0 %v6613_v13  ;;  %4405 = vmatpush3.msra.mxu1 %v6616_v59 }
 0xc25   :  { %2910 = vmatprep.subr.mxu0 %v6619_v14  ;;  %4406 = vmatprep.subr.mxu1 %v6944_v19 }
 0xc26   :  { %2911 = vmatpush1.msra.mxu0 %v6623_v60  ;;  %2944 = vmatprep.mubr.f32.mxu0 %v6944_v19 }
 0xc27   :  { %4407 = vmatpush3.msra.mxu1 %v6627_v7  ;;  %4408 = vmatprep.mubr.msk.f32.mxu1 %vm4906_vm1, %v6944_v19 }
 0xc28   :  { %3043 = vmatprep.subr.mxu0 %v6471_v21  ;;  %4411 = vmatprep.subr.mxu1 %v6944_v19 }
 0xcc7   :  { %v2783_v18 = vpop.f32.mrf.mxu0  ;;  %v2854_v20 = vpop.f32.mrf.mxu1 }
 0xcc8   :  { %v2858_v22 = vadd.f32 %v2783_v18, %v1883_v17  ;;  %v2872_v46 = vadd.f32 %v6236_v44, %v2854_v20  ;;  %v7069_v17 = vld [vmem:[#allocation21_spill] sm:$0xff] }
 0xcc9   :  { %v4375_v23 = vpop.f32.mrf.mxu1  ;;  %v2785_v26 = vpop.f32.mrf.mxu0  ;;  %v1992_v18 = vadd.f32 %v7069_v17, %v6241_v51  ;;  %v6647_v20 = vld [vmem:[#allocation7 + $0x178] sm:$0xff] }
 0xcca   :  { %v3528_v24 = vmul.f32 -1.442695, %v2858_v22  ;;  %v2865_v29 = vadd.f32 %v2785_v26, %v1885_v28 }
 0xccc   :  { %4647 = vpow2.f32 %v3528_v24  ;;  %v3529_v39 = vmul.f32 -1.442695, %v2865_v29 }
 0xcce   :  { %4649 = vpow2.f32 %v3529_v39 }
 0xcd9   :  { %v4648_v6 = vpop.eup %4647 }
 0xcda   :  { %v2862_v5 = vadd.f32 1.0, %v4648_v6  ;;  %v6653_v6 = vld [vmem:[#allocation7 + $0x160] sm:$0xff] }
 0xcdb   :  { %v4650_v4 = vpop.eup %4649 }
 0xcdc   :  { %4651 = vrcp.f32 %v2862_v5  ;;  %v2869_v45 = vadd.f32 1.0, %v4650_v4  ;;  %v6665_v5 = vld [vmem:[#allocation7 + $0x130] sm:$0xff]  ;;  %v6671_v4 = vld [vmem:[#allocation7 + $0x118] sm:$0xff] }
 0xcde   :  { %4653 = vrcp.f32 %v2869_v45  ;;  %v6677_v45 = vld [vmem:[#allocation7 + $0x100] sm:$0xff] }
 0xce9   :  { %v4652_v16 = vpop.eup %4651 }
 0xcea   :  { %v2873_v22 = vmul.f32 %v4652_v16, %v2872_v46  ;;  %v6683_v46 = vld [vmem:[#allocation7 + $0xe8] sm:$0xff]  ;;  %v7070_v16 = vld [vmem:[#allocation37_spill] sm:$0xff] }
 0xceb   :  { %v4654_v11 = vpop.eup %4653  ;;  %v1889_v17 = vadd.f32 %v7070_v16, %v7058_v55 }
 0xcec   :  { %v2874_v23 = vadd.f32 %v2873_v22, %v1992_v18  ;;  %v2876_v24 = vsub.f32 1.0, %v4654_v11  ;;  %v2878_v29 = vmul.f32 %v4654_v11, %v6483_v38  ;;  %v6659_v38 = vld [vmem:[#allocation7 + $0x148] sm:$0xff] }
 0xcee   :  { %4655 = vtanh.f32 %v2874_v23 }
 0xcfb   :  { %v4656_v26 = vpop.eup %4655 }
 0xcfc   :  { %v2877_v28 = vmul.f32 %v4656_v26, %v2876_v24 }
 0xcfe   :  { %v6642_v39 = vadd.f32 %v2878_v29, %v2877_v28  ;;  %v7071_v28 = vld [vmem:[#allocation33_spill] sm:$0xff] }
 0xcff   :  { %v1891_v29 = vadd.f32 %v7071_v28, %v7040_v0 }
 0xd00   :  { %2945 = vmatmul.mubr.f32.vlgmr.msra.gmra.mxu0 %v6642_v39  ;;  %4409 = vmatmul.mubr.f32.vlgmr.msra.gmra.mxu1 %v6642_v39 }
 0xd01   :  { %3044 = vmatpush1.msra.mxu0 %v6487_v52  ;;  %4412 = vmatpush3.msra.mxu1 %v6647_v20 }
 0xd02   :  { %3045 = vmatprep.subr.mxu0 %v6491_v30  ;;  %4413 = vmatprep.subr.mxu1 %v6944_v19 }
 0xd03   :  { %3046 = vmatpush1.msra.mxu0 %v6495_v33  ;;  %4414 = vmatpush3.msra.mxu1 %v6653_v6 }
 0xd04   :  { %3047 = vmatprep.subr.mxu0 %v6499_v32  ;;  %4415 = vmatprep.subr.mxu1 %v6944_v19 }
 0xd05   :  { %3048 = vmatpush1.msra.mxu0 %v6503_v2  ;;  %4416 = vmatpush3.msra.mxu1 %v6659_v38 }
 0xd06   :  { %3049 = vmatprep.subr.mxu0 %v6507_v42  ;;  %4417 = vmatprep.subr.mxu1 %v6944_v19 }
 0xd07   :  { %3050 = vmatpush1.msra.mxu0 %v6511_v62  ;;  %4418 = vmatpush3.msra.mxu1 %v6665_v5 }
 0xd08   :  { %3051 = vmatprep.subr.mxu0 %v6515_v12  ;;  %4419 = vmatprep.subr.mxu1 %v6944_v19 }
 0xd09   :  { %3052 = vmatpush1.msra.mxu0 %v6519_v57  ;;  %4420 = vmatpush3.msra.mxu1 %v6671_v4 }
 0xd0a   :  { %3053 = vmatprep.subr.mxu0 %v6523_v31  ;;  %4421 = vmatprep.subr.mxu1 %v6944_v19 }
 0xd0b   :  { %3054 = vmatpush1.msra.mxu0 %v6527_v3  ;;  %4422 = vmatpush3.msra.mxu1 %v6677_v45 }
 0xd0c   :  { %3055 = vmatprep.subr.mxu0 %v6531_v34  ;;  %4423 = vmatprep.subr.mxu1 %v6944_v19 }
 0xd0d   :  { %3056 = vmatpush1.msra.mxu0 %v6535_v63  ;;  %4424 = vmatpush3.msra.mxu1 %v6683_v46 }
 0xd0e   :  { %3057 = vmatprep.subr.mxu0 %v6539_v35  ;;  %4425 = vmatprep.subr.mxu1 %v6944_v19 }
 0xd0f   :  { %3058 = vmatpush1.msra.mxu0 %v6543_v61  ;;  %4426 = vmatpush3.msra.mxu1 %v6546_v36 }
 0xd10   :  { %3059 = vmatprep.subr.mxu0 %v6549_v50  ;;  %4427 = vmatprep.subr.mxu1 %v6944_v19 }
 0xd11   :  { %3060 = vmatpush1.msra.mxu0 %v6553_v37  ;;  %4428 = vmatpush3.msra.mxu1 %v6556_v48 }
 0xd12   :  { %3061 = vmatprep.subr.mxu0 %v6559_v27  ;;  %4429 = vmatprep.subr.mxu1 %v6944_v19 }
 0xd13   :  { %3062 = vmatpush1.msra.mxu0 %v6563_v47  ;;  %4430 = vmatpush3.msra.mxu1 %v6566_v15 }
 0xd14   :  { %3063 = vmatprep.subr.mxu0 %v6569_v25  ;;  %4431 = vmatprep.subr.mxu1 %v6944_v19 }
 0xd15   :  { %3064 = vmatpush1.msra.mxu0 %v6573_v49  ;;  %4432 = vmatpush3.msra.mxu1 %v6576_v41 }
 0xd16   :  { %3065 = vmatprep.subr.mxu0 %v6579_v53  ;;  %4433 = vmatprep.subr.mxu1 %v6944_v19 }
 0xd17   :  { %3066 = vmatpush1.msra.mxu0 %v6583_v10  ;;  %4434 = vmatpush3.msra.mxu1 %v6586_v43 }
 0xd18   :  { %3067 = vmatprep.subr.mxu0 %v6589_v40  ;;  %4435 = vmatprep.subr.mxu1 %v6944_v19 }
 0xd19   :  { %3068 = vmatpush1.msra.mxu0 %v6593_v54  ;;  %4436 = vmatpush3.msra.mxu1 %v6596_v1 }
 0xd1a   :  { %3069 = vmatprep.subr.mxu0 %v6599_v56  ;;  %4437 = vmatprep.subr.mxu1 %v6944_v19 }
 0xd1b   :  { %3070 = vmatpush1.msra.mxu0 %v6603_v8  ;;  %4438 = vmatpush3.msra.mxu1 %v6606_v9 }
 0xd1c   :  { %3071 = vmatprep.subr.mxu0 %v6609_v58  ;;  %4439 = vmatprep.subr.mxu1 %v6944_v19 }
 0xd1d   :  { %3072 = vmatpush1.msra.mxu0 %v6613_v13  ;;  %4440 = vmatpush3.msra.mxu1 %v6616_v59 }
 0xd1e   :  { %3073 = vmatprep.subr.mxu0 %v6619_v14  ;;  %4441 = vmatprep.subr.mxu1 %v6944_v19 }
 0xd1f   :  { %3074 = vmatpush1.msra.mxu0 %v6623_v60  ;;  %3107 = vmatprep.mubr.f32.mxu0 %v6944_v19 }
 0xd20   :  { %4442 = vmatpush3.msra.mxu1 %v6627_v7  ;;  %4443 = vmatprep.mubr.msk.f32.mxu1 %vm4906_vm1, %v6944_v19 }
 0xd21   :  { %3206 = vmatprep.subr.mxu0 %v6471_v21  ;;  %4446 = vmatprep.subr.mxu1 %v6944_v19 }
 0xdc0   :  { %v2946_v18 = vpop.f32.mrf.mxu0  ;;  %v3017_v22 = vpop.f32.mrf.mxu1 }
 0xdc1   :  { %v3021_v23 = vadd.f32 %v2946_v18, %v1889_v17  ;;  %v3035_v16 = vadd.f32 %v6236_v44, %v3017_v22  ;;  %v7072_v17 = vld [vmem:[#allocation41_spill] sm:$0xff]  ;;  %v7073_v44 = vld [vmem:[#allocation36_spill] sm:$0xff] }
 0xdc2   :  { %v4410_v11 = vpop.f32.mrf.mxu1  ;;  %v2948_v26 = vpop.f32.mrf.mxu0  ;;  %v1997_v18 = vadd.f32 %v7072_v17, %v6241_v51  ;;  %v3372_v22 = vld [vmem:[#allocation8 + $0x18] sm:$0xff]  ;;  %v7082_v17 = vld [vmem:[#allocation34_spill] sm:$0xff] }
 0xdc3   :  { %v3530_v24 = vmul.f32 -1.442695, %v3021_v23  ;;  %v3028_v7 = vadd.f32 %v2948_v26, %v1891_v29  ;;  %v3371_v29 = vld [vmem:[#allocation8 + $0x10] sm:$0xff] }
 0xdc5   :  { %4657 = vpow2.f32 %v3530_v24  ;;  %v3531_v60 = vmul.f32 -1.442695, %v3028_v7 }
 0xdc7   :  { %4659 = vpow2.f32 %v3531_v60 }
 0xdd2   :  { %v4658_v14 = vpop.eup %4657 }
 0xdd3   :  { %v3025_v21 = vadd.f32 1.0, %v4658_v14 }
 0xdd4   :  { %v4660_v59 = vpop.eup %4659 }
 0xdd5   :  { %4661 = vrcp.f32 %v3025_v21  ;;  %v3032_v13 = vadd.f32 1.0, %v4660_v59  ;;  %v3381_v59 = vld [vmem:[#allocation8 + $0x60] sm:$0xff]  ;;  %v3370_v21 = vld [vmem:[#allocation8 + $0x8] sm:$0xff] }
 0xdd7   :  { %4663 = vrcp.f32 %v3032_v13  ;;  %v3382_v13 = vld [vmem:[#allocation8 + $0x68] sm:$0xff] }
 0xde2   :  { %v4662_v55 = vpop.eup %4661 }
 0xde3   :  { %v3036_v23 = vmul.f32 %v4662_v55, %v3035_v16  ;;  %v7074_v55 = vld [vmem:[#allocation43_spill] sm:$0xff]  ;;  %v3369_v16 = vld [vmem:[#allocation8] sm:$0xff] }
 0xde4   :  { %v4664_v28 = vpop.eup %4663 }
 0xde5   :  { %v3037_v11 = vadd.f32 %v3036_v23, %v1997_v18  ;;  %v3039_v24 = vsub.f32 1.0, %v4664_v28  ;;  %v3041_v60 = vmul.f32 %v4664_v28, %v6642_v39  ;;  %v3380_v39 = vld [vmem:[#allocation8 + $0x58] sm:$0xff] }
 0xde7   :  { %4665 = vtanh.f32 %v3037_v11 }
 0xdf4   :  { %v4666_v26 = vpop.eup %4665 }
 0xdf5   :  { %v3040_v7 = vmul.f32 %v4666_v26, %v3039_v24 }
 0xdf7   :  { %v6735_v14 = vadd.f32 %v3041_v60, %v3040_v7  ;;  %v7083_v60 = vld [vmem:[#allocation40_spill] sm:$0xff] }
 0xdf9   :  { %3108 = vmatmul.mubr.f32.vlgmr.msra.gmra.mxu0 %v6735_v14  ;;  %4444 = vmatmul.mubr.f32.vlgmr.msra.gmra.mxu1 %v6735_v14 }
 0xdfa   :  { %3207 = vmatpush1.msra.mxu0 %v6487_v52  ;;  %4447 = vmatpush3.msra.mxu1 %v6647_v20  ;;  %v7075_v52 = vld [vmem:[#allocation27_spill] sm:$0xff]  ;;  %v3379_v20 = vld [vmem:[#allocation8 + $0x50] sm:$0xff] }
 0xdfb   :  { %3208 = vmatprep.subr.mxu0 %v6491_v30  ;;  %4448 = vmatprep.subr.mxu1 %v6944_v19  ;;  %v7076_v30 = vld [vmem:[#allocation38_spill] sm:$0xff] }
 0xdfc   :  { %3209 = vmatpush1.msra.mxu0 %v6495_v33  ;;  %4449 = vmatpush3.msra.mxu1 %v6653_v6  ;;  %v7077_v33 = vld [vmem:[#allocation18_spill] sm:$0xff]  ;;  %v3378_v6 = vld [vmem:[#allocation8 + $0x48] sm:$0xff] }
 0xdfd   :  { %3210 = vmatprep.subr.mxu0 %v6499_v32  ;;  %4450 = vmatprep.subr.mxu1 %v6944_v19  ;;  %v7078_v32 = vld [vmem:[#allocation29_spill] sm:$0xff] }
 0xdfe   :  { %3211 = vmatpush1.msra.mxu0 %v6503_v2  ;;  %4451 = vmatpush3.msra.mxu1 %v6659_v38  ;;  %v7079_v2 = vld [vmem:[#allocation42_spill] sm:$0xff]  ;;  %v1901_v18 = vadd.f32 %v7082_v17, %v7078_v32 }
 0xdff   :  { %3212 = vmatprep.subr.mxu0 %v6507_v42  ;;  %4452 = vmatprep.subr.mxu1 %v6944_v19  ;;  %v1895_v42 = vadd.f32 %v7079_v2, %v7078_v32  ;;  %v3377_v38 = vld [vmem:[#allocation8 + $0x40] sm:$0xff] }
 0xe00   :  { %3213 = vmatpush1.msra.mxu0 %v6511_v62  ;;  %4453 = vmatpush3.msra.mxu1 %v6665_v5  ;;  %v3376_v5 = vld [vmem:[#allocation8 + $0x38] sm:$0xff] }
 0xe01   :  { %3214 = vmatprep.subr.mxu0 %v6515_v12  ;;  %4454 = vmatprep.subr.mxu1 %v6944_v19 }
 0xe02   :  { %3215 = vmatpush1.msra.mxu0 %v6519_v57  ;;  %4455 = vmatpush3.msra.mxu1 %v6671_v4  ;;  %v3375_v4 = vld [vmem:[#allocation8 + $0x30] sm:$0xff] }
 0xe03   :  { %3216 = vmatprep.subr.mxu0 %v6523_v31  ;;  %4456 = vmatprep.subr.mxu1 %v6944_v19 }
 0xe04   :  { %3217 = vmatpush1.msra.mxu0 %v6527_v3  ;;  %4457 = vmatpush3.msra.mxu1 %v6677_v45  ;;  %v3374_v45 = vld [vmem:[#allocation8 + $0x28] sm:$0xff] }
 0xe05   :  { %3218 = vmatprep.subr.mxu0 %v6531_v34  ;;  %4458 = vmatprep.subr.mxu1 %v6944_v19 }
 0xe06   :  { %3219 = vmatpush1.msra.mxu0 %v6535_v63  ;;  %4459 = vmatpush3.msra.mxu1 %v6683_v46  ;;  %v7080_v63 = vld [vmem:[#allocation22_spill] sm:$0xff] }
 0xe07   :  { %3220 = vmatprep.subr.mxu0 %v6539_v35  ;;  %4460 = vmatprep.subr.mxu1 %v6944_v19  ;;  %v1897_v35 = vadd.f32 %v7080_v63, %v7040_v0  ;;  %v3373_v46 = vld [vmem:[#allocation8 + $0x20] sm:$0xff] }
 0xe08   :  { %3221 = vmatpush1.msra.mxu0 %v6543_v61  ;;  %4461 = vmatpush3.msra.mxu1 %v6546_v36 }
 0xe09   :  { %3222 = vmatprep.subr.mxu0 %v6549_v50  ;;  %4462 = vmatprep.subr.mxu1 %v6944_v19 }
 0xe0a   :  { %3223 = vmatpush1.msra.mxu0 %v6553_v37  ;;  %4463 = vmatpush3.msra.mxu1 %v6556_v48 }
 0xe0b   :  { %3224 = vmatprep.subr.mxu0 %v6559_v27  ;;  %4464 = vmatprep.subr.mxu1 %v6944_v19 }
 0xe0c   :  { %3225 = vmatpush1.msra.mxu0 %v6563_v47  ;;  %4465 = vmatpush3.msra.mxu1 %v6566_v15  ;;  %v6812_v47 = vld [vmem:[%s6861_s8] ss:$0 sm:$0xff] }
 0xe0d   :  { %3226 = vmatprep.subr.mxu0 %v6569_v25  ;;  %4466 = vmatprep.subr.mxu1 %v6944_v19 }
 0xe0e   :  { %3227 = vmatpush1.msra.mxu0 %v6573_v49  ;;  %4467 = vmatpush3.msra.mxu1 %v6576_v41  ;;  %v7081_v49 = vld [vmem:[#allocation20_spill] sm:$0xff] }
 0xe0f   :  { %3228 = vmatprep.subr.mxu0 %v6579_v53  ;;  %4468 = vmatprep.subr.mxu1 %v6944_v19  ;;  %v2002_v41 = vadd.f32 %v7081_v49, %v6241_v51 }
 0xe10   :  { %3229 = vmatpush1.msra.mxu0 %v6583_v10  ;;  %4469 = vmatpush3.msra.mxu1 %v6586_v43 }
 0xe11   :  { %3230 = vmatprep.subr.mxu0 %v6589_v40  ;;  %4470 = vmatprep.subr.mxu1 %v6944_v19 }
 0xe12   :  { %3231 = vmatpush1.msra.mxu0 %v6593_v54  ;;  %4471 = vmatpush3.msra.mxu1 %v6596_v1 }
 0xe13   :  { %3232 = vmatprep.subr.mxu0 %v6599_v56  ;;  %4472 = vmatprep.subr.mxu1 %v6944_v19 }
 0xe14   :  { %3233 = vmatpush1.msra.mxu0 %v6603_v8  ;;  %4473 = vmatpush3.msra.mxu1 %v6606_v9  ;;  %v3384_v9 = vld [vmem:[#allocation8 + $0x78] sm:$0xff] }
 0xe15   :  { %3234 = vmatprep.subr.mxu0 %v6609_v58  ;;  %4474 = vmatprep.subr.mxu1 %v6944_v19  ;;  %v3383_v58 = vld [vmem:[#allocation8 + $0x70] sm:$0xff] }
 0xe16   :  { %3235 = vmatpush1.msra.mxu0 %v7073_v44  ;;  %4475 = vmatpush3.msra.mxu1 %v7074_v55 }
 0xe17   :  { %3236 = vmatprep.subr.mxu0 %v7075_v52  ;;  %4476 = vmatprep.subr.mxu1 %v6944_v19 }
 0xe18   :  { %3237 = vmatpush1.msra.mxu0 %v7076_v30  ;;  %3270 = vmatprep.mubr.f32.mxu0 %v6944_v19 }
 0xe19   :  { %4477 = vmatpush3.msra.mxu1 %v7077_v33  ;;  %4478 = vmatprep.mubr.msk.f32.mxu1 %vm4906_vm1, %v6944_v19 }
 0xe1a   :  { %4481 = vmatprep.subr.mxu0 %v6944_v19 }
 0xeb9   :  { %v3109_v62 = vpop.f32.mrf.mxu0  ;;  %v3180_v12 = vpop.f32.mrf.mxu1 }
 0xeba   :  { %v3184_v57 = vadd.f32 %v3109_v62, %v1895_v42  ;;  %v3198_v15 = vadd.f32 %v6812_v47, %v3180_v12  ;;  %v7084_v42 = vld [vmem:[#allocation35_spill] sm:$0xff] }
 0xebb   :  { %v4445_v31 = vpop.f32.mrf.mxu1  ;;  %v3111_v34 = vpop.f32.mrf.mxu0  ;;  %v2007_v62 = vadd.f32 %v7084_v42, %v6241_v51 }
 0xebc   :  { %v3532_v3 = vmul.f32 -1.442695, %v3184_v57  ;;  %v3191_v61 = vadd.f32 %v3111_v34, %v1897_v35 }
 0xebe   :  { %4667 = vpow2.f32 %v3532_v3  ;;  %v3533_v36 = vmul.f32 -1.442695, %v3191_v61  ;;  %v3536_v61 = vld [vmem:[%s6863_s10] ss:$0 sm:$0xff] }
 0xec0   :  { %4669 = vpow2.f32 %v3533_v36 }
 0xecb   :  { %v4668_v50 = vpop.eup %4667 }
 0xecc   :  { %v3188_v37 = vadd.f32 1.0, %v4668_v50 }
 0xecd   :  { %v4670_v48 = vpop.eup %4669 }
 0xece   :  { %4671 = vrcp.f32 %v3188_v37  ;;  %v3195_v27 = vadd.f32 1.0, %v4670_v48 }
 0xed0   :  { %4673 = vrcp.f32 %v3195_v27 }
 0xedb   :  { %v4672_v25 = vpop.eup %4671 }
 0xedc   :  { %v3199_v53 = vmul.f32 %v4672_v25, %v3198_v15 }
 0xedd   :  { %v4674_v43 = vpop.eup %4673 }
 0xede   :  { %v3200_v10 = vadd.f32 %v3199_v53, %v2002_v41  ;;  %v3202_v40 = vsub.f32 1.0, %v4674_v43  ;;  %v3204_v56 = vmul.f32 %v4674_v43, %v6735_v14  ;;  %v1903_v14 = vadd.f32 %v7083_v60, %v7040_v0 }
 0xee0   :  { %4675 = vtanh.f32 %v3200_v10 }
 0xeed   :  { %v4676_v54 = vpop.eup %4675 }
 0xeee   :  { %v3203_v1 = vmul.f32 %v4676_v54, %v3202_v40 }
 0xef0   :  { %v6818_v8 = vadd.f32 %v3204_v56, %v3203_v1 }
 0xef2   :  { %3271 = vmatmul.mubr.f32.vlgmr.msra.gmra.mxu0 %v6818_v8  ;;  %4479 = vmatmul.mubr.f32.vlgmr.msra.gmra.mxu1 %v6818_v8 }
 0xef3   :  { %4513 = vmatprep.mubr.msk.f32.mxu0 %vm4906_vm1, %v6944_v19  ;;  %4482 = vmatpush3.msra.mxu0 %v3384_v9 }
 0xef4   :  { %4483 = vmatprep.subr.mxu0 %v6944_v19 }
 0xef5   :  { %4484 = vmatpush3.msra.mxu0 %v3383_v58 }
 0xef6   :  { %4485 = vmatprep.subr.mxu0 %v6944_v19 }
 0xef7   :  { %4486 = vmatpush3.msra.mxu0 %v3382_v13 }
 0xef8   :  { %4487 = vmatprep.subr.mxu0 %v6944_v19 }
 0xef9   :  { %4488 = vmatpush3.msra.mxu0 %v3381_v59 }
 0xefa   :  { %4489 = vmatprep.subr.mxu0 %v6944_v19 }
 0xefb   :  { %4490 = vmatpush3.msra.mxu0 %v3380_v39 }
 0xefc   :  { %4491 = vmatprep.subr.mxu0 %v6944_v19 }
 0xefd   :  { %4492 = vmatpush3.msra.mxu0 %v3379_v20 }
 0xefe   :  { %4493 = vmatprep.subr.mxu0 %v6944_v19 }
 0xeff   :  { %4494 = vmatpush3.msra.mxu0 %v3378_v6 }
 0xf00   :  { %4495 = vmatprep.subr.mxu0 %v6944_v19 }
 0xf01   :  { %4496 = vmatpush3.msra.mxu0 %v3377_v38 }
 0xf02   :  { %4497 = vmatprep.subr.mxu0 %v6944_v19 }
 0xf03   :  { %4498 = vmatpush3.msra.mxu0 %v3376_v5 }
 0xf04   :  { %4499 = vmatprep.subr.mxu0 %v6944_v19 }
 0xf05   :  { %4500 = vmatpush3.msra.mxu0 %v3375_v4 }
 0xf06   :  { %4501 = vmatprep.subr.mxu0 %v6944_v19 }
 0xf07   :  { %4502 = vmatpush3.msra.mxu0 %v3374_v45 }
 0xf08   :  { %4503 = vmatprep.subr.mxu0 %v6944_v19 }
 0xf09   :  { %4504 = vmatpush3.msra.mxu0 %v3373_v46 }
 0xf0a   :  { %4505 = vmatprep.subr.mxu0 %v6944_v19 }
 0xf0b   :  { %4506 = vmatpush3.msra.mxu0 %v3372_v22 }
 0xf0c   :  { %4507 = vmatprep.subr.mxu0 %v6944_v19 }
 0xf0d   :  { %4508 = vmatpush3.msra.mxu0 %v3371_v29 }
 0xf0e   :  { %4509 = vmatprep.subr.mxu0 %v6944_v19 }
 0xf0f   :  { %4510 = vmatpush3.msra.mxu0 %v3370_v21 }
 0xf10   :  { %4511 = vmatprep.subr.mxu0 %v6944_v19 }
 0xf11   :  { %4512 = vmatpush3.msra.mxu0 %v3369_v16 }
 0xfb2   :  { %v3272_v23 = vpop.f32.mrf.mxu0  ;;  %v3343_v11 = vpop.f32.mrf.mxu1 }
 0xfb3   :  { %v3347_v28 = vadd.f32 %v3272_v23, %v1901_v18  ;;  %v3361_v32 = vadd.f32 %v6812_v47, %v3343_v11 }
 0xfb4   :  { %v4480_v24 = vpop.f32.mrf.mxu1  ;;  %v3274_v7 = vpop.f32.mrf.mxu0 }
 0xfb5   :  { %v3534_v26 = vmul.f32 -1.442695, %v3347_v28  ;;  %v3354_v44 = vadd.f32 %v3274_v7, %v1903_v14 }
 0xfb7   :  { %4677 = vpow2.f32 %v3534_v26  ;;  %v3535_v55 = vmul.f32 -1.442695, %v3354_v44 }
 0xfb9   :  { %4679 = vpow2.f32 %v3535_v55 }
 0xfc4   :  { %v4678_v52 = vpop.eup %4677 }
 0xfc5   :  { %v3351_v30 = vadd.f32 1.0, %v4678_v52 }
 0xfc6   :  { %v4680_v19 = vpop.eup %4679 }
 0xfc7   :  { %4681 = vrcp.f32 %v3351_v30  ;;  %v3358_v33 = vadd.f32 1.0, %v4680_v19 }
 0xfc9   :  { %4683 = vrcp.f32 %v3358_v33 }
 0xfd4   :  { %v4682_v2 = vpop.eup %4681 }
 0xfd5   :  { %v3362_v12 = vmul.f32 %v4682_v2, %v3361_v32 }
 0xfd6   :  { %v4684_v0 = vpop.eup %4683 }
 0xfd7   :  { %v3363_v57 = vadd.f32 %v3362_v12, %v2007_v62  ;;  %v3365_v31 = vsub.f32 1.0, %v4684_v0  ;;  %v3367_v63 = vmul.f32 %v4684_v0, %v6818_v8 }
 0xfd9   :  { %4685 = vtanh.f32 %v3363_v57 }
 0xfe6   :  { %v4686_v3 = vpop.eup %4685 }
 0xfe7   :  { %v3366_v34 = vmul.f32 %v4686_v3, %v3365_v31 }
 0xfe9   :  { %v3368_v35 = vadd.f32 %v3367_v63, %v3366_v34 }
 0xfeb   :  { %4514 = vmatmul.mubr.f32.vlgmr.msra.gmra.mxu0 %v3368_v35 }
0x10ab   :  { %v3458_v36 = vpop.f32.mrf.mxu0 }
0x10ac   :  { %v3459_v50 = vadd.f32 %v3536_v61, %v3458_v36 }
0x10ad   :  { %v4515_v37 = vpop.f32.mrf.mxu0 }
0x10ae   :  { %v3537_v51 = vmul.f32 -1.442695, %v3459_v50 }
0x10b0   :  { %4687 = vpow2.f32 %v3537_v51 }
0x10bd   :  { %v4688_v48 = vpop.eup %4687 }
0x10be   :  { %v3465_v27 = vadd.f32 1.0, %v4688_v48 }
0x10c0   :  { %4689 = vrcp.f32 %v3465_v27 }
0x10cd   :  { %v4690_v47 = vpop.eup %4689 }
0x10ce   :  { %3468 = vst [vmem:[#allocation10] sm:$0xff] %v4690_v47 }
0x10cf   :  { %4880 = shalt.err (!%p4877_p10)
}
0x10d0   :  { %3478 = dma.vmem_to_hbm [thread:$0]  %s3476_s13, 128, %s6864_s11, [#allocation4]  }
0x10d1   :  { %4895 = dma.done.wait [#allocation4], 128  }
0x10d2   :  { %4896 = vsyncadd [#allocation4], 4294967168 }
0x10d3   :  { %3482 = vsyncpa [#allocation3], 1 }
0x10d4   :  { %3483 = vsyncpa [#allocation6], 1 }
0x10d5   :  { %3484 = vsyncpa [#allocation9], 1 }
0x10d6   :  { %3485 = vsyncpa [#allocation4], 1 }

</bundles_post_ra>
